<compile_context>
chip_gen: v7x
topology: tpu7x:2x2x1
jax: 0.10.0
libtpu: 0.0.40
codegen_flags: <defaults>
</compile_context>

<pallas_src>
import numpy as np
import jax
import jax.numpy as jnp
from jax.experimental import pallas as pl
from jax.experimental.pallas import tpu as pltpu

EPS = 1e-6
NEG = -1e10


def decoder_layer_kernel(
    tgt_ref, enc_ref, src_mask_ref, tgt_mask_ref,
    w_self_ref, b_self_ref, w_cross_ref, b_cross_ref,
    w1_ref, b1_ref, w2_ref, b2_ref,
    ln_g_ref, ln_b_ref,
    out_ref, attn_ref,
):
    Bb, T, D = tgt_ref.shape
    S = enc_ref.shape[1]
    H = attn_ref.shape[1]
    hd = D // H
    scale = 1.0 / float(hd) ** 0.5

    # Flatten the batch block so the big matmuls see M = Bb*T rows.
    x = tgt_ref[...].reshape(Bb * T, D)           # f32 residual stream
    enc = enc_ref[...].reshape(Bb * S, D)

    def layer_norm(y, idx):
        g = ln_g_ref[idx]                         # (1, D)
        b = ln_b_ref[idx]                         # (1, D)
        mu = jnp.mean(y, axis=-1, keepdims=True)
        var = jnp.mean(y * y, axis=-1, keepdims=True) - mu * mu   # one-pass
        return (y - mu) * jax.lax.rsqrt(var + EPS) * g + b

    def mha(q_rows, kv_rows, L, key_mask, w_ref, b_ref):
        # Projections: bf16 operands, f32 accumulation (MXU-friendly).
        wq, wk, wv, wo = w_ref[0], w_ref[1], w_ref[2], w_ref[3]   # bf16
        qb = q_rows.astype(jnp.bfloat16)
        kb = kv_rows.astype(jnp.bfloat16)
        q = jnp.dot(qb, wq, preferred_element_type=jnp.float32) + b_ref[0]
        k = jnp.dot(kb, wk, preferred_element_type=jnp.float32) + b_ref[1]
        v = jnp.dot(kb, wv, preferred_element_type=jnp.float32) + b_ref[2]

        # Per-head energies, batched over the Bb batch block; stacked once
        # along a major axis (no lane-axis concat), masked + softmaxed once.
        energies = []
        for h in range(H):
            sl = slice(h * hd, (h + 1) * hd)
            qh = q[:, sl].reshape(Bb, T, hd)
            kh = k[:, sl].reshape(Bb, L, hd)
            e = jax.lax.dot_general(
                qh, kh, (((2,), (2,)), ((0,), (0,))),
                preferred_element_type=jnp.float32)               # (Bb, T, L)
            energies.append(e)
        energy = jnp.stack(energies, axis=1) * scale               # (Bb,H,T,L)

        energy = jnp.where(key_mask[:, :, None, :] > 0, energy, NEG)  # f32
        m = jnp.max(energy, axis=-1, keepdims=True)
        p = jnp.exp(energy - m)
        denom = jnp.sum(p, axis=-1, keepdims=True)
        attn = p * pl.reciprocal(denom, approx=True)               # (Bb,H,T,L)

        # Context + output projection, accumulated per head:
        #   ctx @ Wo == sum_h ctx_h @ Wo[h*hd:(h+1)*hd, :]
        o = None
        for h in range(H):
            sl = slice(h * hd, (h + 1) * hd)
            vh = v[:, sl].reshape(Bb, L, hd)
            ctx = jax.lax.dot_general(
                attn[:, h], vh, (((2,), (1,)), ((0,), (0,))),
                preferred_element_type=jnp.float32)                # (Bb, T, hd)
            ctx = ctx.reshape(Bb * T, hd).astype(jnp.bfloat16)
            part = jnp.dot(ctx, wo[sl, :], preferred_element_type=jnp.float32)
            o = part if o is None else o + part
        return o + b_ref[3], attn

    # --- self attention + residual + LN (dropout == identity in eval) ---
    sa, _ = mha(x, x, T, tgt_mask_ref[...], w_self_ref, b_self_ref)
    x = layer_norm(x + sa, 0)

    # --- encoder (cross) attention + residual + LN; export attention ---
    ca, attn = mha(x, enc, S, src_mask_ref[...], w_cross_ref, b_cross_ref)
    attn_ref[...] = attn                       # single store per grid step
    x = layer_norm(x + ca, 1)

    # --- position-wise feed-forward (ReLU) + residual + LN ---
    h1 = jnp.maximum(
        jnp.dot(x.astype(jnp.bfloat16), w1_ref[...],
                preferred_element_type=jnp.float32) + b1_ref[...], 0.0)
    ff = jnp.dot(h1.astype(jnp.bfloat16), w2_ref[...],
                 preferred_element_type=jnp.float32) + b2_ref[...]
    x = layer_norm(x + ff, 2)

    out_ref[...] = x.reshape(Bb, T, D).astype(out_ref.dtype)


def _pick_block_b(B, T, target_rows=128):
    """Smallest divisor of B whose flattened row count Bb*T reaches target."""
    for cand in range(1, B + 1):
        if B % cand == 0 and cand * T >= target_rows:
            return cand
    return B


def decoder_layer(tgt, enc_src, src_mask, tgt_mask,
                  w_self, b_self, w_cross, b_cross,
                  w1, b1, w2, b2, ln_g, ln_b, *, n_heads, block_b=None):
    B, T, D = tgt.shape
    S = enc_src.shape[1]
    F = w1.shape[1]
    H = n_heads
    if block_b is None:
        block_b = _pick_block_b(B, T)
    assert B % block_b == 0
    Bb = block_b

    # Weight matrices feed the MXU in bf16 (f32 accumulation in-kernel);
    # biases / LayerNorm params stay f32 for the VPU/EUP math.
    w_self_b = w_self.astype(jnp.bfloat16)
    w_cross_b = w_cross.astype(jnp.bfloat16)
    w1_b = w1.astype(jnp.bfloat16)
    w2_b = w2.astype(jnp.bfloat16)

    grid = (B // Bb,)
    in_specs = [
        pl.BlockSpec((Bb, T, D), lambda b: (b, 0, 0)),    # tgt
        pl.BlockSpec((Bb, S, D), lambda b: (b, 0, 0)),    # enc_src
        pl.BlockSpec((Bb, 1, S), lambda b: (b, 0, 0)),    # src_mask
        pl.BlockSpec((Bb, 1, T), lambda b: (b, 0, 0)),    # tgt_mask
        pl.BlockSpec((4, D, D), lambda b: (0, 0, 0)),     # self-attn W (q,k,v,o)
        pl.BlockSpec((4, 1, D), lambda b: (0, 0, 0)),     # self-attn b
        pl.BlockSpec((4, D, D), lambda b: (0, 0, 0)),     # cross-attn W
        pl.BlockSpec((4, 1, D), lambda b: (0, 0, 0)),     # cross-attn b
        pl.BlockSpec((D, F), lambda b: (0, 0)),           # FFN W1
        pl.BlockSpec((1, F), lambda b: (0, 0)),           # FFN b1
        pl.BlockSpec((F, D), lambda b: (0, 0)),           # FFN W2
        pl.BlockSpec((1, D), lambda b: (0, 0)),           # FFN b2
        pl.BlockSpec((3, 1, D), lambda b: (0, 0, 0)),     # LN gammas
        pl.BlockSpec((3, 1, D), lambda b: (0, 0, 0)),     # LN betas
    ]
    out_specs = (
        pl.BlockSpec((Bb, T, D), lambda b: (b, 0, 0)),
        pl.BlockSpec((Bb, H, T, S), lambda b: (b, 0, 0, 0)),
    )
    out_shape = (
        jax.ShapeDtypeStruct((B, T, D), jnp.float32),
        jax.ShapeDtypeStruct((B, H, T, S), jnp.float32),
    )
    # TODO(synk): for realistic D/F on v7x (64 MiB VMEM), single-buffer the
    # constant-index weight specs (pipeline_mode=pl.Buffered(1)) and raise
    # vmem_limit_bytes; unnecessary at these test sizes, so kept at defaults.
    return pl.pallas_call(
        decoder_layer_kernel,
        grid=grid,
        in_specs=in_specs,
        out_specs=out_specs,
        out_shape=out_shape,
        compiler_params=pltpu.CompilerParams(dimension_semantics=("parallel",)),
    )(tgt, enc_src, src_mask, tgt_mask,
      w_self_b, b_self, w_cross_b, b_cross,
      w1_b, b1, w2_b, b2, ln_g, ln_b)


# ------------------------- pure-JAX reference -------------------------
def _ln_ref(x, g, b):
    mu = x.mean(-1, keepdims=True)
    var = ((x - mu) ** 2).mean(-1, keepdims=True)
    return (x - mu) / jnp.sqrt(var + EPS) * g + b


def _mha_ref(q_in, kv_in, mask, w, b, H):
    B, Tq, D = q_in.shape
    L = kv_in.shape[1]
    hd = D // H
    q = q_in @ w[0] + b[0]
    k = kv_in @ w[1] + b[1]
    v = kv_in @ w[2] + b[2]
    qh = q.reshape(B, Tq, H, hd).transpose(0, 2, 1, 3)
    kh = k.reshape(B, L, H, hd).transpose(0, 2, 1, 3)
    vh = v.reshape(B, L, H, hd).transpose(0, 2, 1, 3)
    energy = jnp.einsum('bhqd,bhkd->bhqk', qh, kh) / jnp.sqrt(float(hd))
    energy = jnp.where(mask[:, None, :, :] > 0, energy, NEG)
    attn = jax.nn.softmax(energy, axis=-1)
    ctx = jnp.einsum('bhqk,bhkd->bhqd', attn, vh).transpose(0, 2, 1, 3).reshape(B, Tq, D)
    return ctx @ w[3] + b[3], attn


def reference_decoder(tgt, enc, src_mask, tgt_mask,
                      w_self, b_self, w_cross, b_cross,
                      w1, b1, w2, b2, ln_g, ln_b, H):
    sa, _ = _mha_ref(tgt, tgt, tgt_mask, w_self, b_self, H)
    x = _ln_ref(tgt + sa, ln_g[0], ln_b[0])
    ca, attn = _mha_ref(x, enc, src_mask, w_cross, b_cross, H)
    x = _ln_ref(x + ca, ln_g[1], ln_b[1])
    ff = jnp.maximum(x @ w1 + b1, 0.0) @ w2 + b2
    x = _ln_ref(x + ff, ln_g[2], ln_b[2])
    return x, attn


if __name__ == "__main__":
    B, T, S, D, H, F = 2, 8, 16, 128, 4, 256

    key = jax.random.PRNGKey(0)
    ks = jax.random.split(key, 12)
    tgt = 0.5 * jax.random.normal(ks[0], (B, T, D), jnp.float32)
    enc = 0.5 * jax.random.normal(ks[1], (B, S, D), jnp.float32)

    tgt_valid = jnp.array([T, T - 3])
    src_valid = jnp.array([S, S - 5])
    tgt_mask = (jnp.arange(T)[None, :] < tgt_valid[:, None]).astype(jnp.float32)[:, None, :]
    src_mask = (jnp.arange(S)[None, :] < src_valid[:, None]).astype(jnp.float32)[:, None, :]

    # Deterministic synthetic parameters (q, k, v, o stacked along axis 0).
    w_self  = 0.05 * jax.random.normal(ks[2], (4, D, D), jnp.float32)
    b_self  = 0.02 * jax.random.normal(ks[3], (4, 1, D), jnp.float32)
    w_cross = 0.05 * jax.random.normal(ks[4], (4, D, D), jnp.float32)
    b_cross = 0.02 * jax.random.normal(ks[5], (4, 1, D), jnp.float32)
    w1 = 0.05 * jax.random.normal(ks[6], (D, F), jnp.float32)
    b1 = 0.02 * jax.random.normal(ks[7], (1, F), jnp.float32)
    w2 = 0.05 * jax.random.normal(ks[8], (F, D), jnp.float32)
    b2 = 0.02 * jax.random.normal(ks[9], (1, D), jnp.float32)
    ln_g = 1.0 + 0.1 * jax.random.normal(ks[10], (3, 1, D), jnp.float32)
    ln_b = 0.05 * jax.random.normal(ks[11], (3, 1, D), jnp.float32)

    out, attn = decoder_layer(
        tgt, enc, src_mask, tgt_mask,
        w_self, b_self, w_cross, b_cross,
        w1, b1, w2, b2, ln_g, ln_b, n_heads=H)
    jax.block_until_ready((out, attn))

    ref_out, ref_attn = reference_decoder(
        tgt, enc, src_mask, tgt_mask,
        w_self, b_self, w_cross, b_cross,
        w1, b1, w2, b2, ln_g, ln_b, H)

    np.testing.assert_allclose(np.asarray(out), np.asarray(ref_out), rtol=5e-2, atol=5e-2)
    np.testing.assert_allclose(np.asarray(attn), np.asarray(ref_attn), rtol=5e-2, atol=5e-2)
    assert out.shape == (B, T, D) and attn.shape == (B, H, T, S)
    print("KERNEL_OK")
</pallas_src>

<mosaic_0001>
module attributes {stable_mosaic.version = 11 : i64} {
  func.func @decoder_layer_kernel(%arg0: i32, %arg1: memref<2x8x128xf32, #tpu.memory_space<vmem>>, %arg2: memref<2x16x128xf32, #tpu.memory_space<vmem>>, %arg3: memref<2x1x16xf32, #tpu.memory_space<vmem>>, %arg4: memref<2x1x8xf32, #tpu.memory_space<vmem>>, %arg5: memref<4x128x128xbf16, #tpu.memory_space<vmem>>, %arg6: memref<4x1x128xf32, #tpu.memory_space<vmem>>, %arg7: memref<4x128x128xbf16, #tpu.memory_space<vmem>>, %arg8: memref<4x1x128xf32, #tpu.memory_space<vmem>>, %arg9: memref<128x256xbf16, #tpu.memory_space<vmem>>, %arg10: memref<1x256xf32, #tpu.memory_space<vmem>>, %arg11: memref<256x128xbf16, #tpu.memory_space<vmem>>, %arg12: memref<1x128xf32, #tpu.memory_space<vmem>>, %arg13: memref<3x1x128xf32, #tpu.memory_space<vmem>>, %arg14: memref<3x1x128xf32, #tpu.memory_space<vmem>>, %arg15: memref<2x8x128xf32, #tpu.memory_space<vmem>>, %arg16: memref<2x4x8x16xf32, #tpu.memory_space<vmem>>) attributes {dimension_semantics = [#tpu.dimension_semantics<parallel>], iteration_bounds = array<i64: 1>, scalar_prefetch = 0 : i64, scratch_operands = 0 : i64, tpu.core_type = #tpu.core_type<tc>, window_params = [{transform_indices = @transform_0, window_bounds = array<i64: 2, 8, 128>}, {transform_indices = @transform_1, window_bounds = array<i64: 2, 16, 128>}, {transform_indices = @transform_2, window_bounds = array<i64: 2, 1, 16>}, {transform_indices = @transform_3, window_bounds = array<i64: 2, 1, 8>}, {pipeline_mode = #tpu.pipeline_mode<synchronous>, transform_indices = @transform_4, window_bounds = array<i64: 4, 128, 128>}, {pipeline_mode = #tpu.pipeline_mode<synchronous>, transform_indices = @transform_5, window_bounds = array<i64: 4, 1, 128>}, {pipeline_mode = #tpu.pipeline_mode<synchronous>, transform_indices = @transform_6, window_bounds = array<i64: 4, 128, 128>}, {pipeline_mode = #tpu.pipeline_mode<synchronous>, transform_indices = @transform_7, window_bounds = array<i64: 4, 1, 128>}, {pipeline_mode = #tpu.pipeline_mode<synchronous>, transform_indices = @transform_8, window_bounds = array<i64: 128, 256>}, {pipeline_mode = #tpu.pipeline_mode<synchronous>, transform_indices = @transform_9, window_bounds = array<i64: 1, 256>}, {pipeline_mode = #tpu.pipeline_mode<synchronous>, transform_indices = @transform_10, window_bounds = array<i64: 256, 128>}, {pipeline_mode = #tpu.pipeline_mode<synchronous>, transform_indices = @transform_11, window_bounds = array<i64: 1, 128>}, {pipeline_mode = #tpu.pipeline_mode<synchronous>, transform_indices = @transform_12, window_bounds = array<i64: 3, 1, 128>}, {pipeline_mode = #tpu.pipeline_mode<synchronous>, transform_indices = @transform_13, window_bounds = array<i64: 3, 1, 128>}, {transform_indices = @transform_14, window_bounds = array<i64: 2, 8, 128>}, {transform_indices = @transform_15, window_bounds = array<i64: 2, 4, 8, 16>}]} {
    %c0 = arith.constant 0 : index
    %c0_0 = arith.constant 0 : index
    %c0_1 = arith.constant 0 : index
    %0 = vector.load %arg1[%c0, %c0_0, %c0_1] : memref<2x8x128xf32, #tpu.memory_space<vmem>>, vector<2x8x128xf32>
    %1 = vector.shape_cast %0 : vector<2x8x128xf32> to vector<16x128xf32>
    %c0_2 = arith.constant 0 : index
    %c0_3 = arith.constant 0 : index
    %c0_4 = arith.constant 0 : index
    %2 = vector.load %arg2[%c0_2, %c0_3, %c0_4] : memref<2x16x128xf32, #tpu.memory_space<vmem>>, vector<2x16x128xf32>
    %3 = vector.shape_cast %2 : vector<2x16x128xf32> to vector<32x128xf32>
    %c0_5 = arith.constant 0 : index
    %c0_6 = arith.constant 0 : index
    %c0_7 = arith.constant 0 : index
    %4 = vector.load %arg4[%c0_5, %c0_6, %c0_7] : memref<2x1x8xf32, #tpu.memory_space<vmem>>, vector<2x1x8xf32>
    %c0_8 = arith.constant 0 : index
    %c0_9 = arith.constant 0 : index
    %c0_10 = arith.constant 0 : index
    %5 = vector.load %arg5[%c0_8, %c0_9, %c0_10] : memref<4x128x128xbf16, #tpu.memory_space<vmem>>, vector<1x128x128xbf16>
    %6 = vector.shape_cast %5 : vector<1x128x128xbf16> to vector<128x128xbf16>
    %c1 = arith.constant 1 : index
    %c0_11 = arith.constant 0 : index
    %c0_12 = arith.constant 0 : index
    %7 = vector.load %arg5[%c1, %c0_11, %c0_12] : memref<4x128x128xbf16, #tpu.memory_space<vmem>>, vector<1x128x128xbf16>
    %8 = vector.shape_cast %7 : vector<1x128x128xbf16> to vector<128x128xbf16>
    %c2 = arith.constant 2 : index
    %c0_13 = arith.constant 0 : index
    %c0_14 = arith.constant 0 : index
    %9 = vector.load %arg5[%c2, %c0_13, %c0_14] : memref<4x128x128xbf16, #tpu.memory_space<vmem>>, vector<1x128x128xbf16>
    %10 = vector.shape_cast %9 : vector<1x128x128xbf16> to vector<128x128xbf16>
    %c3 = arith.constant 3 : index
    %c0_15 = arith.constant 0 : index
    %c0_16 = arith.constant 0 : index
    %11 = vector.load %arg5[%c3, %c0_15, %c0_16] : memref<4x128x128xbf16, #tpu.memory_space<vmem>>, vector<1x128x128xbf16>
    %12 = vector.shape_cast %11 : vector<1x128x128xbf16> to vector<128x128xbf16>
    %13 = arith.truncf %1 : vector<16x128xf32> to vector<16x128xbf16>
    %14 = arith.truncf %1 : vector<16x128xf32> to vector<16x128xbf16>
    %cst = arith.constant dense<0.000000e+00> : vector<16x128xf32>
    %15 = tpu.matmul %13, %6, %cst {dimension_numbers = #tpu.dot_dimension_numbers<[1], [0], [0], [1], [0, 0, 1, 1], [], []>} : vector<16x128xbf16>, vector<128x128xbf16>, vector<16x128xf32> -> vector<16x128xf32>
    %c0_17 = arith.constant 0 : index
    %c0_18 = arith.constant 0 : index
    %c0_19 = arith.constant 0 : index
    %16 = vector.load %arg6[%c0_17, %c0_18, %c0_19] : memref<4x1x128xf32, #tpu.memory_space<vmem>>, vector<1x1x128xf32>
    %17 = vector.shape_cast %16 : vector<1x1x128xf32> to vector<1x128xf32>
    %18 = vector.broadcast %17 : vector<1x128xf32> to vector<16x128xf32>
    %19 = arith.addf %15, %18 : vector<16x128xf32>
    %cst_20 = arith.constant dense<0.000000e+00> : vector<16x128xf32>
    %20 = tpu.matmul %14, %8, %cst_20 {dimension_numbers = #tpu.dot_dimension_numbers<[1], [0], [0], [1], [0, 0, 1, 1], [], []>} : vector<16x128xbf16>, vector<128x128xbf16>, vector<16x128xf32> -> vector<16x128xf32>
    %c1_21 = arith.constant 1 : index
    %c0_22 = arith.constant 0 : index
    %c0_23 = arith.constant 0 : index
    %21 = vector.load %arg6[%c1_21, %c0_22, %c0_23] : memref<4x1x128xf32, #tpu.memory_space<vmem>>, vector<1x1x128xf32>
    %22 = vector.shape_cast %21 : vector<1x1x128xf32> to vector<1x128xf32>
    %23 = vector.broadcast %22 : vector<1x128xf32> to vector<16x128xf32>
    %24 = arith.addf %20, %23 : vector<16x128xf32>
    %cst_24 = arith.constant dense<0.000000e+00> : vector<16x128xf32>
    %25 = tpu.matmul %14, %10, %cst_24 {dimension_numbers = #tpu.dot_dimension_numbers<[1], [0], [0], [1], [0, 0, 1, 1], [], []>} : vector<16x128xbf16>, vector<128x128xbf16>, vector<16x128xf32> -> vector<16x128xf32>
    %c2_25 = arith.constant 2 : index
    %c0_26 = arith.constant 0 : index
    %c0_27 = arith.constant 0 : index
    %26 = vector.load %arg6[%c2_25, %c0_26, %c0_27] : memref<4x1x128xf32, #tpu.memory_space<vmem>>, vector<1x1x128xf32>
    %27 = vector.shape_cast %26 : vector<1x1x128xf32> to vector<1x128xf32>
    %28 = vector.broadcast %27 : vector<1x128xf32> to vector<16x128xf32>
    %29 = arith.addf %25, %28 : vector<16x128xf32>
    %30 = vector.extract_strided_slice %19 {offsets = [0, 0], sizes = [16, 32], strides = [1, 1]} : vector<16x128xf32> to vector<16x32xf32>
    %31 = vector.shape_cast %30 : vector<16x32xf32> to vector<2x8x32xf32>
    %32 = vector.extract_strided_slice %24 {offsets = [0, 0], sizes = [16, 32], strides = [1, 1]} : vector<16x128xf32> to vector<16x32xf32>
    %33 = vector.shape_cast %32 : vector<16x32xf32> to vector<2x8x32xf32>
    %cst_28 = arith.constant dense<0.000000e+00> : vector<2x8x8xf32>
    %34 = tpu.matmul %31, %33, %cst_28 {dimension_numbers = #tpu.dot_dimension_numbers<[2], [2], [1], [1], [0, 0, 0, 1, 1, 1], [0], [0]>} : vector<2x8x32xf32>, vector<2x8x32xf32>, vector<2x8x8xf32> -> vector<2x8x8xf32>
    %35 = vector.extract_strided_slice %19 {offsets = [0, 32], sizes = [16, 32], strides = [1, 1]} : vector<16x128xf32> to vector<16x32xf32>
    %36 = vector.shape_cast %35 : vector<16x32xf32> to vector<2x8x32xf32>
    %37 = vector.extract_strided_slice %24 {offsets = [0, 32], sizes = [16, 32], strides = [1, 1]} : vector<16x128xf32> to vector<16x32xf32>
    %38 = vector.shape_cast %37 : vector<16x32xf32> to vector<2x8x32xf32>
    %cst_29 = arith.constant dense<0.000000e+00> : vector<2x8x8xf32>
    %39 = tpu.matmul %36, %38, %cst_29 {dimension_numbers = #tpu.dot_dimension_numbers<[2], [2], [1], [1], [0, 0, 0, 1, 1, 1], [0], [0]>} : vector<2x8x32xf32>, vector<2x8x32xf32>, vector<2x8x8xf32> -> vector<2x8x8xf32>
    %40 = vector.extract_strided_slice %19 {offsets = [0, 64], sizes = [16, 32], strides = [1, 1]} : vector<16x128xf32> to vector<16x32xf32>
    %41 = vector.shape_cast %40 : vector<16x32xf32> to vector<2x8x32xf32>
    %42 = vector.extract_strided_slice %24 {offsets = [0, 64], sizes = [16, 32], strides = [1, 1]} : vector<16x128xf32> to vector<16x32xf32>
    %43 = vector.shape_cast %42 : vector<16x32xf32> to vector<2x8x32xf32>
    %cst_30 = arith.constant dense<0.000000e+00> : vector<2x8x8xf32>
    %44 = tpu.matmul %41, %43, %cst_30 {dimension_numbers = #tpu.dot_dimension_numbers<[2], [2], [1], [1], [0, 0, 0, 1, 1, 1], [0], [0]>} : vector<2x8x32xf32>, vector<2x8x32xf32>, vector<2x8x8xf32> -> vector<2x8x8xf32>
    %45 = vector.extract_strided_slice %19 {offsets = [0, 96], sizes = [16, 32], strides = [1, 1]} : vector<16x128xf32> to vector<16x32xf32>
    %46 = vector.shape_cast %45 : vector<16x32xf32> to vector<2x8x32xf32>
    %47 = vector.extract_strided_slice %24 {offsets = [0, 96], sizes = [16, 32], strides = [1, 1]} : vector<16x128xf32> to vector<16x32xf32>
    %48 = vector.shape_cast %47 : vector<16x32xf32> to vector<2x8x32xf32>
    %cst_31 = arith.constant dense<0.000000e+00> : vector<2x8x8xf32>
    %49 = tpu.matmul %46, %48, %cst_31 {dimension_numbers = #tpu.dot_dimension_numbers<[2], [2], [1], [1], [0, 0, 0, 1, 1, 1], [0], [0]>} : vector<2x8x32xf32>, vector<2x8x32xf32>, vector<2x8x8xf32> -> vector<2x8x8xf32>
    %50 = vector.shape_cast %34 : vector<2x8x8xf32> to vector<2x1x8x8xf32>
    %51 = vector.shape_cast %39 : vector<2x8x8xf32> to vector<2x1x8x8xf32>
    %52 = vector.shape_cast %44 : vector<2x8x8xf32> to vector<2x1x8x8xf32>
    %53 = vector.shape_cast %49 : vector<2x8x8xf32> to vector<2x1x8x8xf32>
    %54 = tpu.concatenate %50, %51, %52, %53 in 1 : vector<2x1x8x8xf32>, vector<2x1x8x8xf32>, vector<2x1x8x8xf32>, vector<2x1x8x8xf32> -> vector<2x4x8x8xf32>
    %cst_32 = arith.constant 0.176776692 : f32
    %55 = vector.broadcast %cst_32 : f32 to vector<2x4x8x8xf32>
    %56 = arith.mulf %54, %55 : vector<2x4x8x8xf32>
    %57 = vector.shape_cast %4 : vector<2x1x8xf32> to vector<2x1x1x8xf32>
    %cst_33 = arith.constant 0.000000e+00 : f32
    %58 = vector.broadcast %cst_33 : f32 to vector<2x1x1x8xf32>
    %59 = arith.cmpf ogt, %57, %58 : vector<2x1x1x8xf32>
    %cst_34 = arith.constant -1.000000e+10 : f32
    %60 = vector.shape_cast %59 : vector<2x1x1x8xi1> to vector<2x1x1x8xi1>
    %61 = vector.broadcast %60 : vector<2x1x1x8xi1> to vector<2x4x8x8xi1>
    %62 = vector.broadcast %cst_34 : f32 to vector<2x4x8x8xf32>
    %63 = arith.select %61, %56, %62 : vector<2x4x8x8xi1>, vector<2x4x8x8xf32>
    %cst_35 = arith.constant dense<0xFF800000> : vector<2x4x8xf32>
    %64 = vector.multi_reduction <maximumf>, %63, %cst_35 [3] : vector<2x4x8x8xf32> to vector<2x4x8xf32>
    %65 = vector.shape_cast %64 : vector<2x4x8xf32> to vector<2x4x8x1xf32>
    %66 = vector.broadcast %65 : vector<2x4x8x1xf32> to vector<2x4x8x8xf32>
    %67 = arith.subf %63, %66 : vector<2x4x8x8xf32>
    %68 = math.exp %67 : vector<2x4x8x8xf32>
    %cst_36 = arith.constant dense<0.000000e+00> : vector<2x4x8xf32>
    %69 = vector.multi_reduction <add>, %68, %cst_36 [3] : vector<2x4x8x8xf32> to vector<2x4x8xf32>
    %70 = vector.shape_cast %69 : vector<2x4x8xf32> to vector<2x4x8x1xf32>
    %71 = tpu.reciprocal %70 {approx = true} : vector<2x4x8x1xf32> -> vector<2x4x8x1xf32>
    %72 = vector.broadcast %71 : vector<2x4x8x1xf32> to vector<2x4x8x8xf32>
    %73 = arith.mulf %68, %72 : vector<2x4x8x8xf32>
    %74 = vector.extract_strided_slice %29 {offsets = [0, 0], sizes = [16, 32], strides = [1, 1]} : vector<16x128xf32> to vector<16x32xf32>
    %75 = vector.shape_cast %74 : vector<16x32xf32> to vector<2x8x32xf32>
    %76 = vector.extract_strided_slice %73 {offsets = [0, 0, 0, 0], sizes = [2, 1, 8, 8], strides = [1, 1, 1, 1]} : vector<2x4x8x8xf32> to vector<2x1x8x8xf32>
    %77 = vector.shape_cast %76 : vector<2x1x8x8xf32> to vector<2x8x8xf32>
    %cst_37 = arith.constant dense<0.000000e+00> : vector<2x8x32xf32>
    %78 = tpu.matmul %77, %75, %cst_37 {dimension_numbers = #tpu.dot_dimension_numbers<[2], [1], [1], [2], [0, 0, 0, 1, 1, 2], [0], [0]>} : vector<2x8x8xf32>, vector<2x8x32xf32>, vector<2x8x32xf32> -> vector<2x8x32xf32>
    %79 = vector.shape_cast %78 : vector<2x8x32xf32> to vector<16x32xf32>
    %80 = arith.truncf %79 : vector<16x32xf32> to vector<16x32xbf16>
    %81 = vector.extract_strided_slice %12 {offsets = [0, 0], sizes = [32, 128], strides = [1, 1]} : vector<128x128xbf16> to vector<32x128xbf16>
    %cst_38 = arith.constant dense<0.000000e+00> : vector<16x128xf32>
    %82 = tpu.matmul %80, %81, %cst_38 {dimension_numbers = #tpu.dot_dimension_numbers<[1], [0], [0], [1], [0, 0, 1, 1], [], []>} : vector<16x32xbf16>, vector<32x128xbf16>, vector<16x128xf32> -> vector<16x128xf32>
    %83 = vector.extract_strided_slice %29 {offsets = [0, 32], sizes = [16, 32], strides = [1, 1]} : vector<16x128xf32> to vector<16x32xf32>
    %84 = vector.shape_cast %83 : vector<16x32xf32> to vector<2x8x32xf32>
    %85 = vector.extract_strided_slice %73 {offsets = [0, 1, 0, 0], sizes = [2, 1, 8, 8], strides = [1, 1, 1, 1]} : vector<2x4x8x8xf32> to vector<2x1x8x8xf32>
    %86 = vector.shape_cast %85 : vector<2x1x8x8xf32> to vector<2x8x8xf32>
    %cst_39 = arith.constant dense<0.000000e+00> : vector<2x8x32xf32>
    %87 = tpu.matmul %86, %84, %cst_39 {dimension_numbers = #tpu.dot_dimension_numbers<[2], [1], [1], [2], [0, 0, 0, 1, 1, 2], [0], [0]>} : vector<2x8x8xf32>, vector<2x8x32xf32>, vector<2x8x32xf32> -> vector<2x8x32xf32>
    %88 = vector.shape_cast %87 : vector<2x8x32xf32> to vector<16x32xf32>
    %89 = arith.truncf %88 : vector<16x32xf32> to vector<16x32xbf16>
    %90 = vector.extract_strided_slice %12 {offsets = [32, 0], sizes = [32, 128], strides = [1, 1]} : vector<128x128xbf16> to vector<32x128xbf16>
    %cst_40 = arith.constant dense<0.000000e+00> : vector<16x128xf32>
    %91 = tpu.matmul %89, %90, %cst_40 {dimension_numbers = #tpu.dot_dimension_numbers<[1], [0], [0], [1], [0, 0, 1, 1], [], []>} : vector<16x32xbf16>, vector<32x128xbf16>, vector<16x128xf32> -> vector<16x128xf32>
    %92 = arith.addf %82, %91 : vector<16x128xf32>
    %93 = vector.extract_strided_slice %29 {offsets = [0, 64], sizes = [16, 32], strides = [1, 1]} : vector<16x128xf32> to vector<16x32xf32>
    %94 = vector.shape_cast %93 : vector<16x32xf32> to vector<2x8x32xf32>
    %95 = vector.extract_strided_slice %73 {offsets = [0, 2, 0, 0], sizes = [2, 1, 8, 8], strides = [1, 1, 1, 1]} : vector<2x4x8x8xf32> to vector<2x1x8x8xf32>
    %96 = vector.shape_cast %95 : vector<2x1x8x8xf32> to vector<2x8x8xf32>
    %cst_41 = arith.constant dense<0.000000e+00> : vector<2x8x32xf32>
    %97 = tpu.matmul %96, %94, %cst_41 {dimension_numbers = #tpu.dot_dimension_numbers<[2], [1], [1], [2], [0, 0, 0, 1, 1, 2], [0], [0]>} : vector<2x8x8xf32>, vector<2x8x32xf32>, vector<2x8x32xf32> -> vector<2x8x32xf32>
    %98 = vector.shape_cast %97 : vector<2x8x32xf32> to vector<16x32xf32>
    %99 = arith.truncf %98 : vector<16x32xf32> to vector<16x32xbf16>
    %100 = vector.extract_strided_slice %12 {offsets = [64, 0], sizes = [32, 128], strides = [1, 1]} : vector<128x128xbf16> to vector<32x128xbf16>
    %cst_42 = arith.constant dense<0.000000e+00> : vector<16x128xf32>
    %101 = tpu.matmul %99, %100, %cst_42 {dimension_numbers = #tpu.dot_dimension_numbers<[1], [0], [0], [1], [0, 0, 1, 1], [], []>} : vector<16x32xbf16>, vector<32x128xbf16>, vector<16x128xf32> -> vector<16x128xf32>
    %102 = arith.addf %92, %101 : vector<16x128xf32>
    %103 = vector.extract_strided_slice %29 {offsets = [0, 96], sizes = [16, 32], strides = [1, 1]} : vector<16x128xf32> to vector<16x32xf32>
    %104 = vector.shape_cast %103 : vector<16x32xf32> to vector<2x8x32xf32>
    %105 = vector.extract_strided_slice %73 {offsets = [0, 3, 0, 0], sizes = [2, 1, 8, 8], strides = [1, 1, 1, 1]} : vector<2x4x8x8xf32> to vector<2x1x8x8xf32>
    %106 = vector.shape_cast %105 : vector<2x1x8x8xf32> to vector<2x8x8xf32>
    %cst_43 = arith.constant dense<0.000000e+00> : vector<2x8x32xf32>
    %107 = tpu.matmul %106, %104, %cst_43 {dimension_numbers = #tpu.dot_dimension_numbers<[2], [1], [1], [2], [0, 0, 0, 1, 1, 2], [0], [0]>} : vector<2x8x8xf32>, vector<2x8x32xf32>, vector<2x8x32xf32> -> vector<2x8x32xf32>
    %108 = vector.shape_cast %107 : vector<2x8x32xf32> to vector<16x32xf32>
    %109 = arith.truncf %108 : vector<16x32xf32> to vector<16x32xbf16>
    %110 = vector.extract_strided_slice %12 {offsets = [96, 0], sizes = [32, 128], strides = [1, 1]} : vector<128x128xbf16> to vector<32x128xbf16>
    %cst_44 = arith.constant dense<0.000000e+00> : vector<16x128xf32>
    %111 = tpu.matmul %109, %110, %cst_44 {dimension_numbers = #tpu.dot_dimension_numbers<[1], [0], [0], [1], [0, 0, 1, 1], [], []>} : vector<16x32xbf16>, vector<32x128xbf16>, vector<16x128xf32> -> vector<16x128xf32>
    %112 = arith.addf %102, %111 : vector<16x128xf32>
    %c3_45 = arith.constant 3 : index
    %c0_46 = arith.constant 0 : index
    %c0_47 = arith.constant 0 : index
    %113 = vector.load %arg6[%c3_45, %c0_46, %c0_47] : memref<4x1x128xf32, #tpu.memory_space<vmem>>, vector<1x1x128xf32>
    %114 = vector.shape_cast %113 : vector<1x1x128xf32> to vector<1x128xf32>
    %115 = vector.broadcast %114 : vector<1x128xf32> to vector<16x128xf32>
    %116 = arith.addf %112, %115 : vector<16x128xf32>
    %117 = arith.addf %1, %116 : vector<16x128xf32>
    %c0_48 = arith.constant 0 : index
    %c0_49 = arith.constant 0 : index
    %c0_50 = arith.constant 0 : index
    %118 = vector.load %arg13[%c0_48, %c0_49, %c0_50] : memref<3x1x128xf32, #tpu.memory_space<vmem>>, vector<1x1x128xf32>
    %119 = vector.shape_cast %118 : vector<1x1x128xf32> to vector<1x128xf32>
    %c0_51 = arith.constant 0 : index
    %c0_52 = arith.constant 0 : index
    %c0_53 = arith.constant 0 : index
    %120 = vector.load %arg14[%c0_51, %c0_52, %c0_53] : memref<3x1x128xf32, #tpu.memory_space<vmem>>, vector<1x1x128xf32>
    %121 = vector.shape_cast %120 : vector<1x1x128xf32> to vector<1x128xf32>
    %cst_54 = arith.constant dense<0.000000e+00> : vector<16xf32>
    %122 = vector.multi_reduction <add>, %117, %cst_54 [1] : vector<16x128xf32> to vector<16xf32>
    %123 = vector.shape_cast %122 : vector<16xf32> to vector<16x1xf32>
    %cst_55 = arith.constant 1.280000e+02 : f32
    %124 = vector.broadcast %cst_55 : f32 to vector<16x1xf32>
    %125 = arith.divf %123, %124 : vector<16x1xf32>
    %126 = arith.mulf %117, %117 : vector<16x128xf32>
    %cst_56 = arith.constant dense<0.000000e+00> : vector<16xf32>
    %127 = vector.multi_reduction <add>, %126, %cst_56 [1] : vector<16x128xf32> to vector<16xf32>
    %128 = vector.shape_cast %127 : vector<16xf32> to vector<16x1xf32>
    %cst_57 = arith.constant 1.280000e+02 : f32
    %129 = vector.broadcast %cst_57 : f32 to vector<16x1xf32>
    %130 = arith.divf %128, %129 : vector<16x1xf32>
    %131 = arith.mulf %125, %125 : vector<16x1xf32>
    %132 = arith.subf %130, %131 : vector<16x1xf32>
    %133 = vector.broadcast %125 : vector<16x1xf32> to vector<16x128xf32>
    %134 = arith.subf %117, %133 : vector<16x128xf32>
    %cst_58 = arith.constant 9.99999997E-7 : f32
    %135 = vector.broadcast %cst_58 : f32 to vector<16x1xf32>
    %136 = arith.addf %132, %135 : vector<16x1xf32>
    %137 = math.rsqrt %136 : vector<16x1xf32>
    %138 = vector.broadcast %137 : vector<16x1xf32> to vector<16x128xf32>
    %139 = arith.mulf %134, %138 : vector<16x128xf32>
    %140 = vector.broadcast %119 : vector<1x128xf32> to vector<16x128xf32>
    %141 = arith.mulf %139, %140 : vector<16x128xf32>
    %142 = vector.broadcast %121 : vector<1x128xf32> to vector<16x128xf32>
    %143 = arith.addf %141, %142 : vector<16x128xf32>
    %c0_59 = arith.constant 0 : index
    %c0_60 = arith.constant 0 : index
    %c0_61 = arith.constant 0 : index
    %144 = vector.load %arg3[%c0_59, %c0_60, %c0_61] : memref<2x1x16xf32, #tpu.memory_space<vmem>>, vector<2x1x16xf32>
    %c0_62 = arith.constant 0 : index
    %c0_63 = arith.constant 0 : index
    %c0_64 = arith.constant 0 : index
    %145 = vector.load %arg7[%c0_62, %c0_63, %c0_64] : memref<4x128x128xbf16, #tpu.memory_space<vmem>>, vector<1x128x128xbf16>
    %146 = vector.shape_cast %145 : vector<1x128x128xbf16> to vector<128x128xbf16>
    %c1_65 = arith.constant 1 : index
    %c0_66 = arith.constant 0 : index
    %c0_67 = arith.constant 0 : index
    %147 = vector.load %arg7[%c1_65, %c0_66, %c0_67] : memref<4x128x128xbf16, #tpu.memory_space<vmem>>, vector<1x128x128xbf16>
    %148 = vector.shape_cast %147 : vector<1x128x128xbf16> to vector<128x128xbf16>
    %c2_68 = arith.constant 2 : index
    %c0_69 = arith.constant 0 : index
    %c0_70 = arith.constant 0 : index
    %149 = vector.load %arg7[%c2_68, %c0_69, %c0_70] : memref<4x128x128xbf16, #tpu.memory_space<vmem>>, vector<1x128x128xbf16>
    %150 = vector.shape_cast %149 : vector<1x128x128xbf16> to vector<128x128xbf16>
    %c3_71 = arith.constant 3 : index
    %c0_72 = arith.constant 0 : index
    %c0_73 = arith.constant 0 : index
    %151 = vector.load %arg7[%c3_71, %c0_72, %c0_73] : memref<4x128x128xbf16, #tpu.memory_space<vmem>>, vector<1x128x128xbf16>
    %152 = vector.shape_cast %151 : vector<1x128x128xbf16> to vector<128x128xbf16>
    %153 = arith.truncf %143 : vector<16x128xf32> to vector<16x128xbf16>
    %154 = arith.truncf %3 : vector<32x128xf32> to vector<32x128xbf16>
    %cst_74 = arith.constant dense<0.000000e+00> : vector<16x128xf32>
    %155 = tpu.matmul %153, %146, %cst_74 {dimension_numbers = #tpu.dot_dimension_numbers<[1], [0], [0], [1], [0, 0, 1, 1], [], []>} : vector<16x128xbf16>, vector<128x128xbf16>, vector<16x128xf32> -> vector<16x128xf32>
    %c0_75 = arith.constant 0 : index
    %c0_76 = arith.constant 0 : index
    %c0_77 = arith.constant 0 : index
    %156 = vector.load %arg8[%c0_75, %c0_76, %c0_77] : memref<4x1x128xf32, #tpu.memory_space<vmem>>, vector<1x1x128xf32>
    %157 = vector.shape_cast %156 : vector<1x1x128xf32> to vector<1x128xf32>
    %158 = vector.broadcast %157 : vector<1x128xf32> to vector<16x128xf32>
    %159 = arith.addf %155, %158 : vector<16x128xf32>
    %cst_78 = arith.constant dense<0.000000e+00> : vector<32x128xf32>
    %160 = tpu.matmul %154, %148, %cst_78 {dimension_numbers = #tpu.dot_dimension_numbers<[1], [0], [0], [1], [0, 0, 1, 1], [], []>} : vector<32x128xbf16>, vector<128x128xbf16>, vector<32x128xf32> -> vector<32x128xf32>
    %c1_79 = arith.constant 1 : index
    %c0_80 = arith.constant 0 : index
    %c0_81 = arith.constant 0 : index
    %161 = vector.load %arg8[%c1_79, %c0_80, %c0_81] : memref<4x1x128xf32, #tpu.memory_space<vmem>>, vector<1x1x128xf32>
    %162 = vector.shape_cast %161 : vector<1x1x128xf32> to vector<1x128xf32>
    %163 = vector.broadcast %162 : vector<1x128xf32> to vector<32x128xf32>
    %164 = arith.addf %160, %163 : vector<32x128xf32>
    %cst_82 = arith.constant dense<0.000000e+00> : vector<32x128xf32>
    %165 = tpu.matmul %154, %150, %cst_82 {dimension_numbers = #tpu.dot_dimension_numbers<[1], [0], [0], [1], [0, 0, 1, 1], [], []>} : vector<32x128xbf16>, vector<128x128xbf16>, vector<32x128xf32> -> vector<32x128xf32>
    %c2_83 = arith.constant 2 : index
    %c0_84 = arith.constant 0 : index
    %c0_85 = arith.constant 0 : index
    %166 = vector.load %arg8[%c2_83, %c0_84, %c0_85] : memref<4x1x128xf32, #tpu.memory_space<vmem>>, vector<1x1x128xf32>
    %167 = vector.shape_cast %166 : vector<1x1x128xf32> to vector<1x128xf32>
    %168 = vector.broadcast %167 : vector<1x128xf32> to vector<32x128xf32>
    %169 = arith.addf %165, %168 : vector<32x128xf32>
    %170 = vector.extract_strided_slice %159 {offsets = [0, 0], sizes = [16, 32], strides = [1, 1]} : vector<16x128xf32> to vector<16x32xf32>
    %171 = vector.shape_cast %170 : vector<16x32xf32> to vector<2x8x32xf32>
    %172 = vector.extract_strided_slice %164 {offsets = [0, 0], sizes = [32, 32], strides = [1, 1]} : vector<32x128xf32> to vector<32x32xf32>
    %173 = vector.shape_cast %172 : vector<32x32xf32> to vector<2x16x32xf32>
    %cst_86 = arith.constant dense<0.000000e+00> : vector<2x8x16xf32>
    %174 = tpu.matmul %171, %173, %cst_86 {dimension_numbers = #tpu.dot_dimension_numbers<[2], [2], [1], [1], [0, 0, 0, 1, 1, 1], [0], [0]>} : vector<2x8x32xf32>, vector<2x16x32xf32>, vector<2x8x16xf32> -> vector<2x8x16xf32>
    %175 = vector.extract_strided_slice %159 {offsets = [0, 32], sizes = [16, 32], strides = [1, 1]} : vector<16x128xf32> to vector<16x32xf32>
    %176 = vector.shape_cast %175 : vector<16x32xf32> to vector<2x8x32xf32>
    %177 = vector.extract_strided_slice %164 {offsets = [0, 32], sizes = [32, 32], strides = [1, 1]} : vector<32x128xf32> to vector<32x32xf32>
    %178 = vector.shape_cast %177 : vector<32x32xf32> to vector<2x16x32xf32>
    %cst_87 = arith.constant dense<0.000000e+00> : vector<2x8x16xf32>
    %179 = tpu.matmul %176, %178, %cst_87 {dimension_numbers = #tpu.dot_dimension_numbers<[2], [2], [1], [1], [0, 0, 0, 1, 1, 1], [0], [0]>} : vector<2x8x32xf32>, vector<2x16x32xf32>, vector<2x8x16xf32> -> vector<2x8x16xf32>
    %180 = vector.extract_strided_slice %159 {offsets = [0, 64], sizes = [16, 32], strides = [1, 1]} : vector<16x128xf32> to vector<16x32xf32>
    %181 = vector.shape_cast %180 : vector<16x32xf32> to vector<2x8x32xf32>
    %182 = vector.extract_strided_slice %164 {offsets = [0, 64], sizes = [32, 32], strides = [1, 1]} : vector<32x128xf32> to vector<32x32xf32>
    %183 = vector.shape_cast %182 : vector<32x32xf32> to vector<2x16x32xf32>
    %cst_88 = arith.constant dense<0.000000e+00> : vector<2x8x16xf32>
    %184 = tpu.matmul %181, %183, %cst_88 {dimension_numbers = #tpu.dot_dimension_numbers<[2], [2], [1], [1], [0, 0, 0, 1, 1, 1], [0], [0]>} : vector<2x8x32xf32>, vector<2x16x32xf32>, vector<2x8x16xf32> -> vector<2x8x16xf32>
    %185 = vector.extract_strided_slice %159 {offsets = [0, 96], sizes = [16, 32], strides = [1, 1]} : vector<16x128xf32> to vector<16x32xf32>
    %186 = vector.shape_cast %185 : vector<16x32xf32> to vector<2x8x32xf32>
    %187 = vector.extract_strided_slice %164 {offsets = [0, 96], sizes = [32, 32], strides = [1, 1]} : vector<32x128xf32> to vector<32x32xf32>
    %188 = vector.shape_cast %187 : vector<32x32xf32> to vector<2x16x32xf32>
    %cst_89 = arith.constant dense<0.000000e+00> : vector<2x8x16xf32>
    %189 = tpu.matmul %186, %188, %cst_89 {dimension_numbers = #tpu.dot_dimension_numbers<[2], [2], [1], [1], [0, 0, 0, 1, 1, 1], [0], [0]>} : vector<2x8x32xf32>, vector<2x16x32xf32>, vector<2x8x16xf32> -> vector<2x8x16xf32>
    %190 = vector.shape_cast %174 : vector<2x8x16xf32> to vector<2x1x8x16xf32>
    %191 = vector.shape_cast %179 : vector<2x8x16xf32> to vector<2x1x8x16xf32>
    %192 = vector.shape_cast %184 : vector<2x8x16xf32> to vector<2x1x8x16xf32>
    %193 = vector.shape_cast %189 : vector<2x8x16xf32> to vector<2x1x8x16xf32>
    %194 = tpu.concatenate %190, %191, %192, %193 in 1 : vector<2x1x8x16xf32>, vector<2x1x8x16xf32>, vector<2x1x8x16xf32>, vector<2x1x8x16xf32> -> vector<2x4x8x16xf32>
    %cst_90 = arith.constant 0.176776692 : f32
    %195 = vector.broadcast %cst_90 : f32 to vector<2x4x8x16xf32>
    %196 = arith.mulf %194, %195 : vector<2x4x8x16xf32>
    %197 = vector.shape_cast %144 : vector<2x1x16xf32> to vector<2x1x1x16xf32>
    %cst_91 = arith.constant 0.000000e+00 : f32
    %198 = vector.broadcast %cst_91 : f32 to vector<2x1x1x16xf32>
    %199 = arith.cmpf ogt, %197, %198 : vector<2x1x1x16xf32>
    %cst_92 = arith.constant -1.000000e+10 : f32
    %200 = vector.shape_cast %199 : vector<2x1x1x16xi1> to vector<2x1x1x16xi1>
    %201 = vector.broadcast %200 : vector<2x1x1x16xi1> to vector<2x4x8x16xi1>
    %202 = vector.broadcast %cst_92 : f32 to vector<2x4x8x16xf32>
    %203 = arith.select %201, %196, %202 : vector<2x4x8x16xi1>, vector<2x4x8x16xf32>
    %cst_93 = arith.constant dense<0xFF800000> : vector<2x4x8xf32>
    %204 = vector.multi_reduction <maximumf>, %203, %cst_93 [3] : vector<2x4x8x16xf32> to vector<2x4x8xf32>
    %205 = vector.shape_cast %204 : vector<2x4x8xf32> to vector<2x4x8x1xf32>
    %206 = vector.broadcast %205 : vector<2x4x8x1xf32> to vector<2x4x8x16xf32>
    %207 = arith.subf %203, %206 : vector<2x4x8x16xf32>
    %208 = math.exp %207 : vector<2x4x8x16xf32>
    %cst_94 = arith.constant dense<0.000000e+00> : vector<2x4x8xf32>
    %209 = vector.multi_reduction <add>, %208, %cst_94 [3] : vector<2x4x8x16xf32> to vector<2x4x8xf32>
    %210 = vector.shape_cast %209 : vector<2x4x8xf32> to vector<2x4x8x1xf32>
    %211 = tpu.reciprocal %210 {approx = true} : vector<2x4x8x1xf32> -> vector<2x4x8x1xf32>
    %212 = vector.broadcast %211 : vector<2x4x8x1xf32> to vector<2x4x8x16xf32>
    %213 = arith.mulf %208, %212 : vector<2x4x8x16xf32>
    %214 = vector.extract_strided_slice %169 {offsets = [0, 0], sizes = [32, 32], strides = [1, 1]} : vector<32x128xf32> to vector<32x32xf32>
    %215 = vector.shape_cast %214 : vector<32x32xf32> to vector<2x16x32xf32>
    %216 = vector.extract_strided_slice %213 {offsets = [0, 0, 0, 0], sizes = [2, 1, 8, 16], strides = [1, 1, 1, 1]} : vector<2x4x8x16xf32> to vector<2x1x8x16xf32>
    %217 = vector.shape_cast %216 : vector<2x1x8x16xf32> to vector<2x8x16xf32>
    %cst_95 = arith.constant dense<0.000000e+00> : vector<2x8x32xf32>
    %218 = tpu.matmul %217, %215, %cst_95 {dimension_numbers = #tpu.dot_dimension_numbers<[2], [1], [1], [2], [0, 0, 0, 1, 1, 2], [0], [0]>} : vector<2x8x16xf32>, vector<2x16x32xf32>, vector<2x8x32xf32> -> vector<2x8x32xf32>
    %219 = vector.shape_cast %218 : vector<2x8x32xf32> to vector<16x32xf32>
    %220 = arith.truncf %219 : vector<16x32xf32> to vector<16x32xbf16>
    %221 = vector.extract_strided_slice %152 {offsets = [0, 0], sizes = [32, 128], strides = [1, 1]} : vector<128x128xbf16> to vector<32x128xbf16>
    %cst_96 = arith.constant dense<0.000000e+00> : vector<16x128xf32>
    %222 = tpu.matmul %220, %221, %cst_96 {dimension_numbers = #tpu.dot_dimension_numbers<[1], [0], [0], [1], [0, 0, 1, 1], [], []>} : vector<16x32xbf16>, vector<32x128xbf16>, vector<16x128xf32> -> vector<16x128xf32>
    %223 = vector.extract_strided_slice %169 {offsets = [0, 32], sizes = [32, 32], strides = [1, 1]} : vector<32x128xf32> to vector<32x32xf32>
    %224 = vector.shape_cast %223 : vector<32x32xf32> to vector<2x16x32xf32>
    %225 = vector.extract_strided_slice %213 {offsets = [0, 1, 0, 0], sizes = [2, 1, 8, 16], strides = [1, 1, 1, 1]} : vector<2x4x8x16xf32> to vector<2x1x8x16xf32>
    %226 = vector.shape_cast %225 : vector<2x1x8x16xf32> to vector<2x8x16xf32>
    %cst_97 = arith.constant dense<0.000000e+00> : vector<2x8x32xf32>
    %227 = tpu.matmul %226, %224, %cst_97 {dimension_numbers = #tpu.dot_dimension_numbers<[2], [1], [1], [2], [0, 0, 0, 1, 1, 2], [0], [0]>} : vector<2x8x16xf32>, vector<2x16x32xf32>, vector<2x8x32xf32> -> vector<2x8x32xf32>
    %228 = vector.shape_cast %227 : vector<2x8x32xf32> to vector<16x32xf32>
    %229 = arith.truncf %228 : vector<16x32xf32> to vector<16x32xbf16>
    %230 = vector.extract_strided_slice %152 {offsets = [32, 0], sizes = [32, 128], strides = [1, 1]} : vector<128x128xbf16> to vector<32x128xbf16>
    %cst_98 = arith.constant dense<0.000000e+00> : vector<16x128xf32>
    %231 = tpu.matmul %229, %230, %cst_98 {dimension_numbers = #tpu.dot_dimension_numbers<[1], [0], [0], [1], [0, 0, 1, 1], [], []>} : vector<16x32xbf16>, vector<32x128xbf16>, vector<16x128xf32> -> vector<16x128xf32>
    %232 = arith.addf %222, %231 : vector<16x128xf32>
    %233 = vector.extract_strided_slice %169 {offsets = [0, 64], sizes = [32, 32], strides = [1, 1]} : vector<32x128xf32> to vector<32x32xf32>
    %234 = vector.shape_cast %233 : vector<32x32xf32> to vector<2x16x32xf32>
    %235 = vector.extract_strided_slice %213 {offsets = [0, 2, 0, 0], sizes = [2, 1, 8, 16], strides = [1, 1, 1, 1]} : vector<2x4x8x16xf32> to vector<2x1x8x16xf32>
    %236 = vector.shape_cast %235 : vector<2x1x8x16xf32> to vector<2x8x16xf32>
    %cst_99 = arith.constant dense<0.000000e+00> : vector<2x8x32xf32>
    %237 = tpu.matmul %236, %234, %cst_99 {dimension_numbers = #tpu.dot_dimension_numbers<[2], [1], [1], [2], [0, 0, 0, 1, 1, 2], [0], [0]>} : vector<2x8x16xf32>, vector<2x16x32xf32>, vector<2x8x32xf32> -> vector<2x8x32xf32>
    %238 = vector.shape_cast %237 : vector<2x8x32xf32> to vector<16x32xf32>
    %239 = arith.truncf %238 : vector<16x32xf32> to vector<16x32xbf16>
    %240 = vector.extract_strided_slice %152 {offsets = [64, 0], sizes = [32, 128], strides = [1, 1]} : vector<128x128xbf16> to vector<32x128xbf16>
    %cst_100 = arith.constant dense<0.000000e+00> : vector<16x128xf32>
    %241 = tpu.matmul %239, %240, %cst_100 {dimension_numbers = #tpu.dot_dimension_numbers<[1], [0], [0], [1], [0, 0, 1, 1], [], []>} : vector<16x32xbf16>, vector<32x128xbf16>, vector<16x128xf32> -> vector<16x128xf32>
    %242 = arith.addf %232, %241 : vector<16x128xf32>
    %243 = vector.extract_strided_slice %169 {offsets = [0, 96], sizes = [32, 32], strides = [1, 1]} : vector<32x128xf32> to vector<32x32xf32>
    %244 = vector.shape_cast %243 : vector<32x32xf32> to vector<2x16x32xf32>
    %245 = vector.extract_strided_slice %213 {offsets = [0, 3, 0, 0], sizes = [2, 1, 8, 16], strides = [1, 1, 1, 1]} : vector<2x4x8x16xf32> to vector<2x1x8x16xf32>
    %246 = vector.shape_cast %245 : vector<2x1x8x16xf32> to vector<2x8x16xf32>
    %cst_101 = arith.constant dense<0.000000e+00> : vector<2x8x32xf32>
    %247 = tpu.matmul %246, %244, %cst_101 {dimension_numbers = #tpu.dot_dimension_numbers<[2], [1], [1], [2], [0, 0, 0, 1, 1, 2], [0], [0]>} : vector<2x8x16xf32>, vector<2x16x32xf32>, vector<2x8x32xf32> -> vector<2x8x32xf32>
    %248 = vector.shape_cast %247 : vector<2x8x32xf32> to vector<16x32xf32>
    %249 = arith.truncf %248 : vector<16x32xf32> to vector<16x32xbf16>
    %250 = vector.extract_strided_slice %152 {offsets = [96, 0], sizes = [32, 128], strides = [1, 1]} : vector<128x128xbf16> to vector<32x128xbf16>
    %cst_102 = arith.constant dense<0.000000e+00> : vector<16x128xf32>
    %251 = tpu.matmul %249, %250, %cst_102 {dimension_numbers = #tpu.dot_dimension_numbers<[1], [0], [0], [1], [0, 0, 1, 1], [], []>} : vector<16x32xbf16>, vector<32x128xbf16>, vector<16x128xf32> -> vector<16x128xf32>
    %252 = arith.addf %242, %251 : vector<16x128xf32>
    %c3_103 = arith.constant 3 : index
    %c0_104 = arith.constant 0 : index
    %c0_105 = arith.constant 0 : index
    %253 = vector.load %arg8[%c3_103, %c0_104, %c0_105] : memref<4x1x128xf32, #tpu.memory_space<vmem>>, vector<1x1x128xf32>
    %254 = vector.shape_cast %253 : vector<1x1x128xf32> to vector<1x128xf32>
    %255 = vector.broadcast %254 : vector<1x128xf32> to vector<16x128xf32>
    %256 = arith.addf %252, %255 : vector<16x128xf32>
    %c0_106 = arith.constant 0 : index
    %c0_107 = arith.constant 0 : index
    %c0_108 = arith.constant 0 : index
    %c0_109 = arith.constant 0 : index
    %257 = vector.load %arg16[%c0_106, %c0_107, %c0_108, %c0_109] : memref<2x4x8x16xf32, #tpu.memory_space<vmem>>, vector<2x4x8x16xf32>
    tpu.vector_store %arg16[%c0_106, %c0_107, %c0_108, %c0_109], %213 {strides = array<i32>} : memref<2x4x8x16xf32, #tpu.memory_space<vmem>>, vector<2x4x8x16xf32>,
    %258 = arith.addf %143, %256 : vector<16x128xf32>
    %c1_110 = arith.constant 1 : index
    %c0_111 = arith.constant 0 : index
    %c0_112 = arith.constant 0 : index
    %259 = vector.load %arg13[%c1_110, %c0_111, %c0_112] : memref<3x1x128xf32, #tpu.memory_space<vmem>>, vector<1x1x128xf32>
    %260 = vector.shape_cast %259 : vector<1x1x128xf32> to vector<1x128xf32>
    %c1_113 = arith.constant 1 : index
    %c0_114 = arith.constant 0 : index
    %c0_115 = arith.constant 0 : index
    %261 = vector.load %arg14[%c1_113, %c0_114, %c0_115] : memref<3x1x128xf32, #tpu.memory_space<vmem>>, vector<1x1x128xf32>
    %262 = vector.shape_cast %261 : vector<1x1x128xf32> to vector<1x128xf32>
    %cst_116 = arith.constant dense<0.000000e+00> : vector<16xf32>
    %263 = vector.multi_reduction <add>, %258, %cst_116 [1] : vector<16x128xf32> to vector<16xf32>
    %264 = vector.shape_cast %263 : vector<16xf32> to vector<16x1xf32>
    %cst_117 = arith.constant 1.280000e+02 : f32
    %265 = vector.broadcast %cst_117 : f32 to vector<16x1xf32>
    %266 = arith.divf %264, %265 : vector<16x1xf32>
    %267 = arith.mulf %258, %258 : vector<16x128xf32>
    %cst_118 = arith.constant dense<0.000000e+00> : vector<16xf32>
    %268 = vector.multi_reduction <add>, %267, %cst_118 [1] : vector<16x128xf32> to vector<16xf32>
    %269 = vector.shape_cast %268 : vector<16xf32> to vector<16x1xf32>
    %cst_119 = arith.constant 1.280000e+02 : f32
    %270 = vector.broadcast %cst_119 : f32 to vector<16x1xf32>
    %271 = arith.divf %269, %270 : vector<16x1xf32>
    %272 = arith.mulf %266, %266 : vector<16x1xf32>
    %273 = arith.subf %271, %272 : vector<16x1xf32>
    %274 = vector.broadcast %266 : vector<16x1xf32> to vector<16x128xf32>
    %275 = arith.subf %258, %274 : vector<16x128xf32>
    %cst_120 = arith.constant 9.99999997E-7 : f32
    %276 = vector.broadcast %cst_120 : f32 to vector<16x1xf32>
    %277 = arith.addf %273, %276 : vector<16x1xf32>
    %278 = math.rsqrt %277 : vector<16x1xf32>
    %279 = vector.broadcast %278 : vector<16x1xf32> to vector<16x128xf32>
    %280 = arith.mulf %275, %279 : vector<16x128xf32>
    %281 = vector.broadcast %260 : vector<1x128xf32> to vector<16x128xf32>
    %282 = arith.mulf %280, %281 : vector<16x128xf32>
    %283 = vector.broadcast %262 : vector<1x128xf32> to vector<16x128xf32>
    %284 = arith.addf %282, %283 : vector<16x128xf32>
    %285 = arith.truncf %284 : vector<16x128xf32> to vector<16x128xbf16>
    %c0_121 = arith.constant 0 : index
    %c0_122 = arith.constant 0 : index
    %286 = vector.load %arg9[%c0_121, %c0_122] : memref<128x256xbf16, #tpu.memory_space<vmem>>, vector<128x256xbf16>
    %cst_123 = arith.constant dense<0.000000e+00> : vector<16x256xf32>
    %287 = tpu.matmul %285, %286, %cst_123 {dimension_numbers = #tpu.dot_dimension_numbers<[1], [0], [0], [1], [0, 0, 1, 1], [], []>} : vector<16x128xbf16>, vector<128x256xbf16>, vector<16x256xf32> -> vector<16x256xf32>
    %c0_124 = arith.constant 0 : index
    %c0_125 = arith.constant 0 : index
    %288 = vector.load %arg10[%c0_124, %c0_125] : memref<1x256xf32, #tpu.memory_space<vmem>>, vector<1x256xf32>
    %289 = vector.broadcast %288 : vector<1x256xf32> to vector<16x256xf32>
    %290 = arith.addf %287, %289 : vector<16x256xf32>
    %cst_126 = arith.constant 0.000000e+00 : f32
    %291 = vector.broadcast %cst_126 : f32 to vector<16x256xf32>
    %292 = arith.maximumf %290, %291 : vector<16x256xf32>
    %293 = arith.truncf %292 : vector<16x256xf32> to vector<16x256xbf16>
    %c0_127 = arith.constant 0 : index
    %c0_128 = arith.constant 0 : index
    %294 = vector.load %arg11[%c0_127, %c0_128] : memref<256x128xbf16, #tpu.memory_space<vmem>>, vector<256x128xbf16>
    %cst_129 = arith.constant dense<0.000000e+00> : vector<16x128xf32>
    %295 = tpu.matmul %293, %294, %cst_129 {dimension_numbers = #tpu.dot_dimension_numbers<[1], [0], [0], [1], [0, 0, 1, 1], [], []>} : vector<16x256xbf16>, vector<256x128xbf16>, vector<16x128xf32> -> vector<16x128xf32>
    %c0_130 = arith.constant 0 : index
    %c0_131 = arith.constant 0 : index
    %296 = vector.load %arg12[%c0_130, %c0_131] : memref<1x128xf32, #tpu.memory_space<vmem>>, vector<1x128xf32>
    %297 = vector.broadcast %296 : vector<1x128xf32> to vector<16x128xf32>
    %298 = arith.addf %295, %297 : vector<16x128xf32>
    %299 = arith.addf %284, %298 : vector<16x128xf32>
    %c2_132 = arith.constant 2 : index
    %c0_133 = arith.constant 0 : index
    %c0_134 = arith.constant 0 : index
    %300 = vector.load %arg13[%c2_132, %c0_133, %c0_134] : memref<3x1x128xf32, #tpu.memory_space<vmem>>, vector<1x1x128xf32>
    %301 = vector.shape_cast %300 : vector<1x1x128xf32> to vector<1x128xf32>
    %c2_135 = arith.constant 2 : index
    %c0_136 = arith.constant 0 : index
    %c0_137 = arith.constant 0 : index
    %302 = vector.load %arg14[%c2_135, %c0_136, %c0_137] : memref<3x1x128xf32, #tpu.memory_space<vmem>>, vector<1x1x128xf32>
    %303 = vector.shape_cast %302 : vector<1x1x128xf32> to vector<1x128xf32>
    %cst_138 = arith.constant dense<0.000000e+00> : vector<16xf32>
    %304 = vector.multi_reduction <add>, %299, %cst_138 [1] : vector<16x128xf32> to vector<16xf32>
    %305 = vector.shape_cast %304 : vector<16xf32> to vector<16x1xf32>
    %cst_139 = arith.constant 1.280000e+02 : f32
    %306 = vector.broadcast %cst_139 : f32 to vector<16x1xf32>
    %307 = arith.divf %305, %306 : vector<16x1xf32>
    %308 = arith.mulf %299, %299 : vector<16x128xf32>
    %cst_140 = arith.constant dense<0.000000e+00> : vector<16xf32>
    %309 = vector.multi_reduction <add>, %308, %cst_140 [1] : vector<16x128xf32> to vector<16xf32>
    %310 = vector.shape_cast %309 : vector<16xf32> to vector<16x1xf32>
    %cst_141 = arith.constant 1.280000e+02 : f32
    %311 = vector.broadcast %cst_141 : f32 to vector<16x1xf32>
    %312 = arith.divf %310, %311 : vector<16x1xf32>
    %313 = arith.mulf %307, %307 : vector<16x1xf32>
    %314 = arith.subf %312, %313 : vector<16x1xf32>
    %315 = vector.broadcast %307 : vector<16x1xf32> to vector<16x128xf32>
    %316 = arith.subf %299, %315 : vector<16x128xf32>
    %cst_142 = arith.constant 9.99999997E-7 : f32
    %317 = vector.broadcast %cst_142 : f32 to vector<16x1xf32>
    %318 = arith.addf %314, %317 : vector<16x1xf32>
    %319 = math.rsqrt %318 : vector<16x1xf32>
    %320 = vector.broadcast %319 : vector<16x1xf32> to vector<16x128xf32>
    %321 = arith.mulf %316, %320 : vector<16x128xf32>
    %322 = vector.broadcast %301 : vector<1x128xf32> to vector<16x128xf32>
    %323 = arith.mulf %321, %322 : vector<16x128xf32>
    %324 = vector.broadcast %303 : vector<1x128xf32> to vector<16x128xf32>
    %325 = arith.addf %323, %324 : vector<16x128xf32>
    %326 = vector.shape_cast %325 : vector<16x128xf32> to vector<2x8x128xf32>
    %c0_143 = arith.constant 0 : index
    %c0_144 = arith.constant 0 : index
    %c0_145 = arith.constant 0 : index
    %327 = vector.load %arg15[%c0_143, %c0_144, %c0_145] : memref<2x8x128xf32, #tpu.memory_space<vmem>>, vector<2x8x128xf32>
    tpu.vector_store %arg15[%c0_143, %c0_144, %c0_145], %326 {strides = array<i32>} : memref<2x8x128xf32, #tpu.memory_space<vmem>>, vector<2x8x128xf32>,
    return
  }
  func.func @transform_0(%arg0: i32) -> (i32, i32, i32) {
    %c0_i32 = arith.constant 0 : i32
    %c0_i32_0 = arith.constant 0 : i32
    %c0_i32_1 = arith.constant 0 : i32
    return %arg0, %c0_i32, %c0_i32_0 : i32, i32, i32
  }
  func.func @transform_1(%arg0: i32) -> (i32, i32, i32) {
    %c0_i32 = arith.constant 0 : i32
    %c0_i32_0 = arith.constant 0 : i32
    %c0_i32_1 = arith.constant 0 : i32
    return %arg0, %c0_i32, %c0_i32_0 : i32, i32, i32
  }
  func.func @transform_2(%arg0: i32) -> (i32, i32, i32) {
    %c0_i32 = arith.constant 0 : i32
    %c0_i32_0 = arith.constant 0 : i32
    %c0_i32_1 = arith.constant 0 : i32
    return %arg0, %c0_i32, %c0_i32_0 : i32, i32, i32
  }
  func.func @transform_3(%arg0: i32) -> (i32, i32, i32) {
    %c0_i32 = arith.constant 0 : i32
    %c0_i32_0 = arith.constant 0 : i32
    %c0_i32_1 = arith.constant 0 : i32
    return %arg0, %c0_i32, %c0_i32_0 : i32, i32, i32
  }
  func.func @transform_4(%arg0: i32) -> (i32, i32, i32) {
    %c0_i32 = arith.constant 0 : i32
    %c0_i32_0 = arith.constant 0 : i32
    %c0_i32_1 = arith.constant 0 : i32
    %c0_i32_2 = arith.constant 0 : i32
    return %c0_i32, %c0_i32_0, %c0_i32_1 : i32, i32, i32
  }
  func.func @transform_5(%arg0: i32) -> (i32, i32, i32) {
    %c0_i32 = arith.constant 0 : i32
    %c0_i32_0 = arith.constant 0 : i32
    %c0_i32_1 = arith.constant 0 : i32
    %c0_i32_2 = arith.constant 0 : i32
    return %c0_i32, %c0_i32_0, %c0_i32_1 : i32, i32, i32
  }
  func.func @transform_6(%arg0: i32) -> (i32, i32, i32) {
    %c0_i32 = arith.constant 0 : i32
    %c0_i32_0 = arith.constant 0 : i32
    %c0_i32_1 = arith.constant 0 : i32
    %c0_i32_2 = arith.constant 0 : i32
    return %c0_i32, %c0_i32_0, %c0_i32_1 : i32, i32, i32
  }
  func.func @transform_7(%arg0: i32) -> (i32, i32, i32) {
    %c0_i32 = arith.constant 0 : i32
    %c0_i32_0 = arith.constant 0 : i32
    %c0_i32_1 = arith.constant 0 : i32
    %c0_i32_2 = arith.constant 0 : i32
    return %c0_i32, %c0_i32_0, %c0_i32_1 : i32, i32, i32
  }
  func.func @transform_8(%arg0: i32) -> (i32, i32) {
    %c0_i32 = arith.constant 0 : i32
    %c0_i32_0 = arith.constant 0 : i32
    %c0_i32_1 = arith.constant 0 : i32
    return %c0_i32, %c0_i32_0 : i32, i32
  }
  func.func @transform_9(%arg0: i32) -> (i32, i32) {
    %c0_i32 = arith.constant 0 : i32
    %c0_i32_0 = arith.constant 0 : i32
    %c0_i32_1 = arith.constant 0 : i32
    return %c0_i32, %c0_i32_0 : i32, i32
  }
  func.func @transform_10(%arg0: i32) -> (i32, i32) {
    %c0_i32 = arith.constant 0 : i32
    %c0_i32_0 = arith.constant 0 : i32
    %c0_i32_1 = arith.constant 0 : i32
    return %c0_i32, %c0_i32_0 : i32, i32
  }
  func.func @transform_11(%arg0: i32) -> (i32, i32) {
    %c0_i32 = arith.constant 0 : i32
    %c0_i32_0 = arith.constant 0 : i32
    %c0_i32_1 = arith.constant 0 : i32
    return %c0_i32, %c0_i32_0 : i32, i32
  }
  func.func @transform_12(%arg0: i32) -> (i32, i32, i32) {
    %c0_i32 = arith.constant 0 : i32
    %c0_i32_0 = arith.constant 0 : i32
    %c0_i32_1 = arith.constant 0 : i32
    %c0_i32_2 = arith.constant 0 : i32
    return %c0_i32, %c0_i32_0, %c0_i32_1 : i32, i32, i32
  }
  func.func @transform_13(%arg0: i32) -> (i32, i32, i32) {
    %c0_i32 = arith.constant 0 : i32
    %c0_i32_0 = arith.constant 0 : i32
    %c0_i32_1 = arith.constant 0 : i32
    %c0_i32_2 = arith.constant 0 : i32
    return %c0_i32, %c0_i32_0, %c0_i32_1 : i32, i32, i32
  }
  func.func @transform_14(%arg0: i32) -> (i32, i32, i32) {
    %c0_i32 = arith.constant 0 : i32
    %c0_i32_0 = arith.constant 0 : i32
    %c0_i32_1 = arith.constant 0 : i32
    return %arg0, %c0_i32, %c0_i32_0 : i32, i32, i32
  }
  func.func @transform_15(%arg0: i32) -> (i32, i32, i32, i32) {
    %c0_i32 = arith.constant 0 : i32
    %c0_i32_0 = arith.constant 0 : i32
    %c0_i32_1 = arith.constant 0 : i32
    %c0_i32_2 = arith.constant 0 : i32
    return %arg0, %c0_i32, %c0_i32_0, %c0_i32_1 : i32, i32, i32, i32
  }
}

</mosaic_0001>

<bundles_post_ra>
// kernel: tpu_custom_call.1
= control target key start
LH: loop header
LB: loop body
LE: loop exit
PB: predicated region body
PF: predicated region fallthrough
CT: control target
= control target key end

     0   :  { %21 = vsyncpa [#allocation3], 0  ;;  %s6737_s0 = inlined_call_operand.hbm [shape: f32[2,8,128], index: 0, kind: input, shape index: {}]   ;;  %s6738_s1 = inlined_call_operand.hbm [shape: f32[2,16,128], index: 1, kind: input, shape index: {}]   ;;  %s6739_s2 = inlined_call_operand.hbm [shape: f32[2,1,16], index: 2, kind: input, shape index: {}]   ;;  %s6740_s3 = inlined_call_operand.hbm [shape: f32[2,1,8], index: 3, kind: input, shape index: {}]   ;;  %s6741_s4 = inlined_call_operand.hbm [shape: bf16[4,128,128], index: 4, kind: input, shape index: {}]   ;;  %s6742_s5 = inlined_call_operand.vmem [shape: f32[4,1,128], index: 5, kind: input, shape index: {}]   ;;  %s6743_s6 = inlined_call_operand.hbm [shape: bf16[4,128,128], index: 6, kind: input, shape index: {}]   ;;  %s6744_s7 = inlined_call_operand.vmem [shape: f32[4,1,128], index: 7, kind: input, shape index: {}]   ;;  %s6745_s8 = inlined_call_operand.hbm [shape: bf16[128,256], index: 8, kind: input, shape index: {}]   ;;  %s6746_s9 = inlined_call_operand.vmem [shape: f32[1,256], index: 9, kind: input, shape index: {}]   ;;  %s6747_s10 = inlined_call_operand.hbm [shape: bf16[256,128], index: 10, kind: input, shape index: {}]   ;;  %s6748_s11 = inlined_call_operand.vmem [shape: f32[1,128], index: 11, kind: input, shape index: {}]   ;;  %s6749_s12 = inlined_call_operand.vmem [shape: f32[3,1,128], index: 12, kind: input, shape index: {}]   ;;  %s6750_s13 = inlined_call_operand.vmem [shape: f32[3,1,128], index: 13, kind: input, shape index: {}]   ;;  %s6751_s14 = inlined_call_operand.hbm [shape: f32[2,8,128], index: 14, kind: output, shape index: {0}]   ;;  %s6752_s15 = inlined_call_operand.hbm [shape: f32[2,4,8,16], index: 15, kind: output, shape index: {1}]  }
   0x1   :  { %22 = vsyncpa [#allocation6], 0 }
   0x2   :  { %23 = vsyncpa [#allocation9], 0 }
   0x3   :  { %24 = vsyncpa [#allocation12], 0 }
   0x4   :  { %25 = vsyncpa [#allocation15], 0 }
   0x5   :  { %26 = vsyncpa [#allocation4], 0 }
   0x6   :  { %27 = vsyncpa [#allocation18], 0  ;;  %s5947_s18 = smov [#allocation5]   ;;  %s5713_s22 = scalar_lea.hbm %s6738_s1, 512 }
   0x7   :  { %s45_s19 = sshll.u32 %s5947_s18, 4  ;;  %p5714_p0 = scmp.ne.s32.totalorder %s6738_s1, %s5713_s22  ;;  %s46_s19 = int_to_ptr.vmem [resolvable:$true] %s45_s19 }
   0x8   :  { %p5717_p1 = scmp.lt.u32.totalorder %s5713_s22, %s6738_s1 }
   0xa   :  { %p5719_p2 = pnand %p5717_p1, %p5714_p0 }
   0xc   :  { %5722 = shalt.err (!%p5719_p2)
}
   0xd   :  { %s5723_s27 = scalar_lea.vmem %s46_s19, 512  ;;  %p5728_p4 = scmp.lt.s32.totalorder %s46_s19, %s46_s19 }
   0xe   :  { %p5724_p3 = scmp.ne.s32.totalorder %s46_s19, %s5723_s27  ;;  %p5729_p5 = scmp.lt.s32.totalorder %s5723_s27, %s5723_s27 }
  0x10   :  { %p5730_p6 = por %p5729_p5, %p5728_p4 }
  0x12   :  { %p5731_p7 = pnand %p5730_p6, %p5724_p3 }
  0x14   :  { %5734 = shalt.err (!%p5731_p7)
}
  0x15   :  { %s6753_s28 = smov 128   ;;  %s6755_s29 = smov 8  }
  0x16   :  { %51 = dma.hbm_to_vmem [thread:$0]  %s6738_s1, 512, %s46_s19, [#allocation6], %s6753_s28, %s6753_s28, %s6755_s29  }
  0x17   :  { %s5950_s17 = smov [#allocation8]   ;;  %s5735_s22 = scalar_lea.hbm %s6740_s3, 32 }
  0x18   :  { %s69_s18 = sshll.u32 %s5950_s17, 4  ;;  %p5736_p8 = scmp.ne.s32.totalorder %s6740_s3, %s5735_s22  ;;  %s70_s18 = int_to_ptr.vmem [resolvable:$true] %s69_s18 }
  0x19   :  { %p5739_p9 = scmp.lt.u32.totalorder %s5735_s22, %s6740_s3 }
  0x1b   :  { %p5741_p10 = pnand %p5739_p9, %p5736_p8 }
  0x1d   :  { %5744 = shalt.err (!%p5741_p10)
}
  0x1e   :  { %s5745_s27 = scalar_lea.vmem %s70_s18, 32  ;;  %p5750_p12 = scmp.lt.s32.totalorder %s70_s18, %s70_s18 }
  0x1f   :  { %p5746_p11 = scmp.ne.s32.totalorder %s70_s18, %s5745_s27  ;;  %p5751_p13 = scmp.lt.s32.totalorder %s5745_s27, %s5745_s27 }
  0x21   :  { %p5752_p0 = por %p5751_p13, %p5750_p12 }
  0x23   :  { %p5753_p1 = pnand %p5752_p0, %p5746_p11 }
  0x25   :  { %5756 = shalt.err (!%p5753_p1)
}
  0x26   :  { %s5951_s1 = smov 16   ;;  %s5952_s19 = smov 1  }
  0x27   :  { %75 = dma.hbm_to_vmem [thread:$0]  %s6740_s3, 32, %s70_s18, [#allocation9], %s5951_s1, %s5951_s1, %s5952_s19  }
  0x28   :  { %s5953_s17 = smov [#allocation11]   ;;  %s5954_s21 = smov [#allocation2]  }
  0x29   :  { %s95_s20 = sshll.u32 %s5953_s17, 4  ;;  %s33_s22 = sshll.u32 %s5954_s21, 4  ;;  %s96_s20 = int_to_ptr.vmem [resolvable:$true] %s95_s20  ;;  %s6079_s22 = int_to_ptr.vmem [resolvable:$true] %s33_s22 }
  0x2a   :  { %s5757_s25 = scalar_lea.hbm %s6743_s6, 4096 }
  0x2b   :  { %p5758_p2 = scmp.ne.s32.totalorder %s6743_s6, %s5757_s25  ;;  %p5761_p3 = scmp.lt.u32.totalorder %s5757_s25, %s6743_s6 }
  0x2d   :  { %p5763_p4 = pnand %p5761_p3, %p5758_p2 }
  0x2f   :  { %5766 = shalt.err (!%p5763_p4)
}
  0x30   :  { %s5767_s3 = scalar_lea.vmem %s96_s20, 4096  ;;  %p5772_p6 = scmp.lt.s32.totalorder %s96_s20, %s96_s20 }
  0x31   :  { %p5768_p5 = scmp.ne.s32.totalorder %s96_s20, %s5767_s3  ;;  %p5773_p7 = scmp.lt.s32.totalorder %s5767_s3, %s5767_s3 }
  0x33   :  { %p5774_p8 = por %p5773_p7, %p5772_p6 }
  0x35   :  { %p5775_p9 = pnand %p5774_p8, %p5768_p5 }
  0x37   :  { %5778 = shalt.err (!%p5775_p9)
}
  0x38   :  { %s6757_s18 = smov 64   ;;  %s6759_s30 = smov 4  }
  0x39   :  { %101 = dma.hbm_to_vmem [thread:$0]  %s6743_s6, 4096, %s96_s20, [#allocation12], %s6757_s18, %s6757_s18, %s6759_s30  }
  0x3a   :  { %s5779_s21 = scalar_lea.hbm %s6737_s0, 256 }
  0x3b   :  { %p5780_p10 = scmp.ne.s32.totalorder %s6737_s0, %s5779_s21  ;;  %p5783_p11 = scmp.lt.u32.totalorder %s5779_s21, %s6737_s0 }
  0x3d   :  { %p5785_p12 = pnand %p5783_p11, %p5780_p10 }
  0x3f   :  { %5788 = shalt.err (!%p5785_p12)
}
  0x40   :  { %s5789_s27 = scalar_lea.vmem %s6079_s22, 256  ;;  %p5794_p0 = scmp.lt.s32.totalorder %s6079_s22, %s6079_s22 }
  0x41   :  { %p5790_p13 = scmp.ne.s32.totalorder %s6079_s22, %s5789_s27  ;;  %p5795_p1 = scmp.lt.s32.totalorder %s5789_s27, %s5789_s27 }
  0x43   :  { %p5796_p2 = por %p5795_p1, %p5794_p0 }
  0x45   :  { %p5797_p3 = pnand %p5796_p2, %p5790_p13 }
  0x47   :  { %5800 = shalt.err (!%p5797_p3)
}
  0x48   :  { %s6761_s6 = smov 8   ;;  %s6762_s20 = smov 128  }
  0x49   :  { %39 = dma.hbm_to_vmem [thread:$0]  %s6737_s0, 256, %s6079_s22, [#allocation3], %s6762_s20, %s6762_s20, %s6761_s6  }
  0x4a   :  { %s5957_s17 = smov [#allocation7]   ;;  %s5958_s29 = smov [#allocation10]  }
  0x4b   :  { %s57_s28 = sshll.u32 %s5957_s17, 4  ;;  %s81_s21 = sshll.u32 %s5958_s29, 4  ;;  %s58_s28 = int_to_ptr.vmem [resolvable:$true] %s57_s28  ;;  %s6116_s21 = int_to_ptr.vmem [resolvable:$true] %s81_s21 }
  0x4c   :  { %s5801_s25 = scalar_lea.hbm %s6739_s2, 32 }
  0x4d   :  { %p5802_p4 = scmp.ne.s32.totalorder %s6739_s2, %s5801_s25  ;;  %p5805_p5 = scmp.lt.u32.totalorder %s5801_s25, %s6739_s2 }
  0x4f   :  { %p5807_p6 = pnand %p5805_p5, %p5802_p4 }
  0x51   :  { %5810 = shalt.err (!%p5807_p6)
}
  0x52   :  { %s5811_s0 = scalar_lea.vmem %s58_s28, 32  ;;  %p5816_p8 = scmp.lt.s32.totalorder %s58_s28, %s58_s28 }
  0x53   :  { %p5812_p7 = scmp.ne.s32.totalorder %s58_s28, %s5811_s0  ;;  %p5817_p9 = scmp.lt.s32.totalorder %s5811_s0, %s5811_s0 }
  0x55   :  { %p5818_p10 = por %p5817_p9, %p5816_p8 }
  0x57   :  { %p5819_p11 = pnand %p5818_p10, %p5812_p7 }
  0x59   :  { %5822 = shalt.err (!%p5819_p11)
}
  0x5a   :  { %63 = dma.hbm_to_vmem [thread:$0]  %s6739_s2, 32, %s58_s28, [#allocation6], %s5951_s1, %s5951_s1, %s5952_s19  }
  0x5b   :  { %s5823_s18 = scalar_lea.hbm %s6741_s4, 4096 }
  0x5c   :  { %p5824_p12 = scmp.ne.s32.totalorder %s6741_s4, %s5823_s18  ;;  %p5827_p13 = scmp.lt.u32.totalorder %s5823_s18, %s6741_s4 }
  0x5e   :  { %p5829_p0 = pnand %p5827_p13, %p5824_p12 }
  0x60   :  { %5832 = shalt.err (!%p5829_p0)
}
  0x61   :  { %s5833_s25 = scalar_lea.vmem %s6116_s21, 4096  ;;  %p5838_p2 = scmp.lt.s32.totalorder %s6116_s21, %s6116_s21 }
  0x62   :  { %p5834_p1 = scmp.ne.s32.totalorder %s6116_s21, %s5833_s25  ;;  %p5839_p3 = scmp.lt.s32.totalorder %s5833_s25, %s5833_s25 }
  0x64   :  { %p5840_p4 = por %p5839_p3, %p5838_p2 }
  0x66   :  { %p5841_p5 = pnand %p5840_p4, %p5834_p1 }
  0x68   :  { %5844 = shalt.err (!%p5841_p5)
}
  0x69   :  { %s6763_s2 = smov 4   ;;  %s6764_s1 = smov 64  }
  0x6a   :  { %87 = dma.hbm_to_vmem [thread:$0]  %s6741_s4, 4096, %s6116_s21, [#allocation9], %s6764_s1, %s6764_s1, %s6763_s2  }
  0x6b   :  { %s5959_s26 = smov [#allocation13]   ;;  %s5960_s0 = smov [#allocation14]  }
  0x6c   :  { %s109_s27 = sshll.u32 %s5959_s26, 4  ;;  %s123_s22 = sshll.u32 %s5960_s0, 4  ;;  %s110_s27 = int_to_ptr.vmem [resolvable:$true] %s109_s27  ;;  %s6153_s22 = int_to_ptr.vmem [resolvable:$true] %s123_s22 }
  0x6d   :  { %s5845_s17 = scalar_lea.hbm %s6745_s8, 2048 }
  0x6e   :  { %p5846_p6 = scmp.ne.s32.totalorder %s6745_s8, %s5845_s17  ;;  %p5849_p7 = scmp.lt.u32.totalorder %s5845_s17, %s6745_s8 }
  0x70   :  { %p5851_p8 = pnand %p5849_p7, %p5846_p6 }
  0x72   :  { %5854 = shalt.err (!%p5851_p8)
}
  0x73   :  { %s5855_s4 = scalar_lea.vmem %s110_s27, 2048  ;;  %p5860_p10 = scmp.lt.s32.totalorder %s110_s27, %s110_s27 }
  0x74   :  { %p5856_p9 = scmp.ne.s32.totalorder %s110_s27, %s5855_s4  ;;  %p5861_p11 = scmp.lt.s32.totalorder %s5855_s4, %s5855_s4 }
  0x76   :  { %p5862_p12 = por %p5861_p11, %p5860_p10 }
  0x78   :  { %p5863_p13 = pnand %p5862_p12, %p5856_p9 }
  0x7a   :  { %5866 = shalt.err (!%p5863_p13)
}
  0x7b   :  { %115 = dma.hbm_to_vmem [thread:$0]  %s6745_s8, 2048, %s110_s27, [#allocation12], %s6762_s20, %s6762_s20, %s6761_s6  }
  0x7c   :  { %s5867_s28 = scalar_lea.hbm %s6747_s10, 2048 }
  0x7d   :  { %p5868_p0 = scmp.ne.s32.totalorder %s6747_s10, %s5867_s28  ;;  %p5871_p1 = scmp.lt.u32.totalorder %s5867_s28, %s6747_s10 }
  0x7f   :  { %p5873_p2 = pnand %p5871_p1, %p5868_p0 }
  0x81   :  { %5876 = shalt.err (!%p5873_p2)
}
  0x82   :  { %s5877_s17 = scalar_lea.vmem %s6153_s22, 2048  ;;  %p5882_p4 = scmp.lt.s32.totalorder %s6153_s22, %s6153_s22 }
  0x83   :  { %p5878_p3 = scmp.ne.s32.totalorder %s6153_s22, %s5877_s17  ;;  %p5883_p5 = scmp.lt.s32.totalorder %s5877_s17, %s5877_s17 }
  0x85   :  { %p5884_p6 = por %p5883_p5, %p5882_p4 }
  0x87   :  { %p5885_p7 = pnand %p5884_p6, %p5878_p3 }
  0x89   :  { %5888 = shalt.err (!%p5885_p7)
}
  0x8a   :  { %129 = dma.hbm_to_vmem [thread:$0]  %s6747_s10, 2048, %s6153_s22, [#allocation15], %s6764_s1, %s6764_s1, %s6763_s2  }
  0x8b   :  { %5933 = dma.done.wait [#allocation3], 256  }
  0x8c   :  { %5934 = vsyncadd [#allocation3], 4294967040 }
  0x8d   :  { %5935 = dma.done.wait [#allocation6], 544  }
  0x8e   :  { %5936 = vsyncadd [#allocation6], 4294966752 }
  0x8f   :  { %5937 = dma.done.wait [#allocation9], 4128  }
  0x90   :  { %5938 = vsyncadd [#allocation9], 4294963168 }
  0x91   :  { %5939 = dma.done.wait [#allocation12], 6144  }
  0x92   :  { %5940 = vsyncadd [#allocation12], 4294961152 }
  0x93   :  { %5941 = dma.done.wait [#allocation15], 2048  }
  0x94   :  { %5942 = vsyncadd [#allocation15], 4294965248  ;;  %v5961_v0 = vmov 0.0   ;;  %vm5962_vm0 = vmmov 0   ;;  %v5531_v1 = vld [vmem:[#allocation10 + $0x40] sm:$0xff]   ;;  %v5533_v3 = vld [vmem:[#allocation10 + $0x48] sm:$0xff]   ;;  %v1160_v54 = vlaneseq }
  0x95   :  { %5037 = vmatprep.subr.bf16.mxu1 %v5961_v0  ;;  %5017 = vmatprep.subr.bf16.mxu0 %v5961_v0  ;;  %v5532_v2 = vld [vmem:[#allocation10] sm:$0xff]   ;;  %v5534_v4 = vld [vmem:[#allocation10 + $0x8] sm:$0xff]   ;;  %v5535_v5 = vld [vmem:[#allocation10 + $0x50] sm:$0xff]   ;;  %vm527_vm1 = vcmask 261120   ;;  %s5963_s30 = smov 96   ;;  %s5964_s29 = smov 32  }
  0x96   :  { %5053 = vmatprep.mubr.msk.bf16.mxu1 %vm5962_vm0, %v5961_v0  ;;  %5033 = vmatprep.mubr.msk.bf16.mxu0 %vm5962_vm0, %v5961_v0  ;;  %v5536_v6 = vld [vmem:[#allocation10 + $0x10] sm:$0xff]   ;;  %v5537_v7 = vld [vmem:[#allocation10 + $0x58] sm:$0xff]   ;;  %v5539_v9 = vld [vmem:[#allocation10 + $0x60] sm:$0xff]   ;;  %v6289_v56 = vshrl.u32 %v1160_v54, 7  ;;  %v5965_v59 = vmov 0   ;;  %vm1178_vm5 = vcmask 64512  }
  0x97   :  { %5038 = vmatpush3.bf16.msra.mxu1 %v5531_v1  ;;  %5018 = vmatpush3.bf16.msra.mxu0 %v5532_v2  ;;  %v5538_v8 = vld [vmem:[#allocation10 + $0x18] sm:$0xff]   ;;  %v5540_v10 = vld [vmem:[#allocation10 + $0x20] sm:$0xff]   ;;  %v5541_v11 = vld [vmem:[#allocation10 + $0x68] sm:$0xff]   ;;  %vm3218_vm11 = vcmask 130048   ;;  %s5967_s23 = smov [#allocation17]  }
  0x98   :  { %5039 = vmatprep.subr.bf16.mxu1 %v5961_v0  ;;  %5019 = vmatprep.subr.bf16.mxu0 %v5961_v0  ;;  %v5542_v12 = vld [vmem:[#allocation10 + $0x28] sm:$0xff]   ;;  %v5543_v13 = vld [vmem:[#allocation10 + $0x70] sm:$0xff]   ;;  %v5545_v15 = vld [vmem:[#allocation10 + $0x78] sm:$0xff]   ;;  %v6292_v58 = vsub.s32 0, %v6289_v56  ;;  %s4630_s4 = sshll.u32 %s5967_s23, 4  ;;  %s4631_s4 = int_to_ptr.vmem [resolvable:$true] %s4630_s4 }
  0x99   :  { %v5544_v14 = vld [vmem:[#allocation10 + $0x30] sm:$0xff]   ;;  %v5546_v18 = vld [vmem:[#allocation10 + $0x38] sm:$0xff]   ;;  %v4660_v20 = vld [vmem:[%s6742_s5 + $0x1] ss:$0 sm:$0xff]  ;;  %s5889_s21 = scalar_lea.vmem %s4631_s4, 1024  ;;  %p5894_p9 = scmp.lt.s32.totalorder %s4631_s4, %s4631_s4 }
  0x9a   :  { %v161_v16 = vld [vmem:[#allocation2] sm:$0xff]  ;;  %v162_v17 = vld [vmem:[#allocation2 + $0x8] sm:$0xff]  ;;  %v5547_v34 = vld [vmem:[#allocation10 + $0x80] sm:$0xff]   ;;  %p5890_p8 = scmp.ne.s32.totalorder %s4631_s4, %s5889_s21  ;;  %p5895_p10 = scmp.lt.s32.totalorder %s5889_s21, %s5889_s21 }
  0x9b   :  { %5040 = vmatpush3.bf16.msra.mxu1 %v5533_v3  ;;  %5020 = vmatpush3.bf16.msra.mxu0 %v5534_v4  ;;  %v6210_v19 = vpack.c.bf16 %v162_v17, %v161_v16  ;;  %v4650_v21 = vld [vmem:[%s6742_s5] ss:$0 sm:$0xff]  ;;  %v5549_v36 = vld [vmem:[#allocation10 + $0x90] sm:$0xff]   ;;  %v5550_v37 = vld [vmem:[#allocation10 + $0x98] sm:$0xff]  }
  0x9c   :  { %5041 = vmatprep.subr.bf16.mxu1 %v5961_v0  ;;  %5021 = vmatprep.subr.bf16.mxu0 %v5961_v0  ;;  %v5548_v35 = vld [vmem:[#allocation10 + $0x88] sm:$0xff]   ;;  %v5551_v38 = vld [vmem:[#allocation10 + $0xa0] sm:$0xff]   ;;  %v5553_v42 = vld [vmem:[#allocation10 + $0xb0] sm:$0xff]   ;;  %p5896_p11 = por %p5895_p10, %p5894_p9 }
  0x9d   :  { %v5552_v39 = vld [vmem:[#allocation10 + $0xa8] sm:$0xff]   ;;  %v5554_v45 = vld [vmem:[#allocation10 + $0xb8] sm:$0xff]   ;;  %vm6460_vm7 = vmpackc.low %vm527_vm1, %vm527_vm1 }
  0x9e   :  { %v167_v55 = vld [vmem:[#allocation8] sm:$0x1]  ;;  %v168_v57 = vld [vmem:[#allocation8 + $0x1] sm:$0x1]  ;;  %p5897_p12 = pnand %p5896_p11, %p5890_p8 }
  0x9f   :  { %5042 = vmatpush3.bf16.msra.mxu1 %v5535_v5  ;;  %5022 = vmatpush3.bf16.msra.mxu0 %v5536_v6  ;;  %vm1156_vm2 = vcmp.gt.f32.partialorder %v167_v55, 0.0  ;;  %vm1157_vm3 = vcmp.gt.f32.partialorder %v168_v57, 0.0 }
  0xa0   :  { %5043 = vmatprep.subr.bf16.mxu1 %v5961_v0  ;;  %5023 = vmatprep.subr.bf16.mxu0 %v5961_v0  ;;  %v1158_v60 = vsel %vm1156_vm2, 1, %v5965_v59  ;;  %v1159_v62 = vsel %vm1157_vm3, 1, %v5965_v59 }
  0xa1   :  { %v1163_v61 = vrot.slane %v1158_v60, %v6292_v58  ;;  %v1167_v2 = vrot.slane %v1159_v62, %v6292_v58 }
  0xa3   :  { %5044 = vmatpush3.bf16.msra.mxu1 %v5537_v7  ;;  %5024 = vmatpush3.bf16.msra.mxu0 %v5538_v8  ;;  %vm6297_vm4 = vcmp.eq.s32.totalorder %v1163_v61, 1  ;;  %vm6305_vm6 = vcmp.eq.s32.totalorder %v1167_v2, 1 }
  0xa4   :  { %5045 = vmatprep.subr.bf16.mxu1 %v5961_v0  ;;  %5025 = vmatprep.subr.bf16.mxu0 %v5961_v0 }
  0xa7   :  { %5046 = vmatpush3.bf16.msra.mxu1 %v5539_v9  ;;  %5026 = vmatpush3.bf16.msra.mxu0 %v5540_v10 }
  0xa8   :  { %5047 = vmatprep.subr.bf16.mxu1 %v5961_v0  ;;  %5027 = vmatprep.subr.bf16.mxu0 %v5961_v0 }
  0xab   :  { %5048 = vmatpush3.bf16.msra.mxu1 %v5541_v11  ;;  %5028 = vmatpush3.bf16.msra.mxu0 %v5542_v12 }
  0xac   :  { %5049 = vmatprep.subr.bf16.mxu1 %v5961_v0  ;;  %5029 = vmatprep.subr.bf16.mxu0 %v5961_v0 }
  0xaf   :  { %5050 = vmatpush3.bf16.msra.mxu1 %v5543_v13  ;;  %5030 = vmatpush3.bf16.msra.mxu0 %v5544_v14 }
  0xb0   :  { %5051 = vmatprep.subr.bf16.mxu1 %v5961_v0  ;;  %5031 = vmatprep.subr.bf16.mxu0 %v5961_v0 }
  0xb3   :  { %5052 = vmatpush3.bf16.msra.mxu1 %v5545_v15  ;;  %5032 = vmatpush3.bf16.msra.mxu0 %v5546_v18 }
  0xb4   :  { %5077 = vmatprep.subr.mxu1 %v5961_v0  ;;  %5057 = vmatprep.subr.bf16.mxu0 %v5961_v0 }
  0xb6   :  { %5054 = vmatmul.mubr.bf16.vlgmr.msra.gmra.mrb[0].mxu1 %v6210_v19  ;;  %5034 = vmatmul.mubr.bf16.vlgmr.msra.gmra.mrb[0].mxu0 %v6210_v19 }
  0xb7   :  { %5079 = vmatprep.mubr.msk.f32.mxu1 %vm5962_vm0, %v5961_v0  ;;  %5073 = vmatprep.mubr.msk.bf16.mxu0 %vm5962_vm0, %v5961_v0 }
  0xb8   :  { %5058 = vmatpush3.bf16.msra.mxu0 %v5547_v34 }
  0xb9   :  { %5059 = vmatprep.subr.bf16.mxu0 %v5961_v0 }
  0xbc   :  { %5060 = vmatpush3.bf16.msra.mxu0 %v5548_v35 }
  0xbd   :  { %5061 = vmatprep.subr.bf16.mxu0 %v5961_v0 }
  0xc0   :  { %5062 = vmatpush3.bf16.msra.mxu0 %v5549_v36 }
  0xc1   :  { %5063 = vmatprep.subr.bf16.mxu0 %v5961_v0 }
  0xc4   :  { %5064 = vmatpush3.bf16.msra.mxu0 %v5550_v37  ;;  %v4670_v37 = vld [vmem:[%s6742_s5 + $0x2] ss:$0 sm:$0xff] }
  0xc5   :  { %5065 = vmatprep.subr.bf16.mxu0 %v5961_v0 }
  0xc8   :  { %5066 = vmatpush3.bf16.msra.mxu0 %v5551_v38 }
  0xc9   :  { %5067 = vmatprep.subr.bf16.mxu0 %v5961_v0 }
  0xcc   :  { %5068 = vmatpush3.bf16.msra.mxu0 %v5552_v39 }
  0xcd   :  { %5069 = vmatprep.subr.bf16.mxu0 %v5961_v0 }
  0xd0   :  { %5070 = vmatpush3.bf16.msra.mxu0 %v5553_v42 }
  0xd1   :  { %5071 = vmatprep.subr.bf16.mxu0 %v5961_v0 }
  0xd4   :  { %5072 = vmatpush3.bf16.msra.mxu0 %v5554_v45 }
  0xd5   :  { %5127 = vmatprep.subr.mxu0 %v5961_v0 }
  0xd7   :  { %5074 = vmatmul.mubr.bf16.vlgmr.msra.gmra.mrb[4].mxu0 %v6210_v19 }
  0xd8   :  { %5129 = vmatprep.mubr.msk.f32.mxu0 %vm5962_vm0, %v5961_v0 }
 0x189   :  { %v423_v22 = vpop.f32.mrb[0].mxu1  ;;  %v326_v24 = vpop.f32.mrb[0].mxu0 }
 0x18a   :  { %v424_v23 = vadd.f32 %v4660_v20, %v423_v22  ;;  %v5055_v25 = vpop.f32.mrb[1].mxu1  ;;  %v327_v26 = vadd.f32 %v4650_v21, %v326_v24  ;;  %v5035_v27 = vpop.f32.mrb[1].mxu0 }
 0x18b   :  { %v426_v28 = vpop.f32.mrb[2].mxu1  ;;  %v329_v30 = vpop.f32.mrb[2].mxu0 }
 0x18c   :  { %v427_v29 = vadd.f32 %v4660_v20, %v426_v28  ;;  %682 = vrot.lane.b32.xlu0 %v424_v23, %s5963_s30  ;;  %v5056_v31 = vpop.f32.mrb[3].mxu1  ;;  %5078 = vmatpush3.xpose.msk.msra.mxu1 %vm527_vm1, %v424_v23  ;;  %v5036_v32 = vpop.f32.mrb[3].mxu0  ;;  %v330_v33 = vadd.f32 %v4650_v21, %v329_v30 }
 0x18d   :  { %5082 = vmatprep.subr.mxu1 %v5961_v0 }
 0x18e   :  { %760 = vrot.lane.b32.xlu1 %v427_v29, %s5963_s30 }
 0x18f   :  { %5080 = vmatmul.mubr.msk.f32.vlgmr.msra.gmra.mrb[4].mxu1 %vm527_vm1, %v327_v26 }
 0x190   :  { %680 = vrot.lane.b32.xlu0 %v327_v26, %s5963_s30  ;;  %5083 = vmatpush3.xpose.msk.msra.mxu1 %vm527_vm1, %v427_v29 }
 0x191   :  { %5084 = vmatprep.mubr.msk.f32.mxu1 %vm5962_vm0, %v5961_v0  ;;  %5087 = vmatprep.subr.mxu1 %v5961_v0 }
 0x192   :  { %758 = vrot.lane.b32.xlu1 %v330_v33, %s5963_s30 }
 0x193   :  { %5085 = vmatmul.mubr.msk.f32.vlgmr.msra.gmra.mrb[6].mxu1 %vm527_vm1, %v330_v33 }
 0x194   :  { %838 = vrot.lane.b32.xlu0 %v424_v23, %s6764_s1  ;;  %5089 = vmatprep.mubr.msk.f32.mxu1 %vm5962_vm0, %v5961_v0 }
 0x196   :  { %836 = vrot.lane.b32.xlu1 %v327_v26, %s6764_s1 }
 0x198   :  { %916 = vrot.lane.b32.xlu0 %v427_v29, %s6764_s1 }
 0x19a   :  { %914 = vrot.lane.b32.xlu1 %v330_v33, %s6764_s1 }
 0x19c   :  { %994 = vrot.lane.b32.xlu0 %v424_v23, %s5964_s29 }
 0x19e   :  { %992 = vrot.lane.b32.xlu1 %v327_v26, %s5964_s29 }
 0x1a0   :  { %1072 = vrot.lane.b32.xlu0 %v427_v29, %s5964_s29 }
 0x1a2   :  { %1070 = vrot.lane.b32.xlu1 %v330_v33, %s5964_s29 }
 0x1aa   :  { %v520_v38 = vpop.f32.mrb[4].mxu0 }
 0x1ab   :  { %v6323_v39 = vadd.f32 %v4670_v37, %v520_v38 }
 0x1fe   :  { %v683_v40 = vpop.permute.xlu0 %682 }
 0x1ff   :  { %5088 = vmatpush3.xpose.msk.msra.mxu1 %vm527_vm1, %v683_v40  ;;  %v5075_v40 = vpop.f32.mrb[5].mxu0 }
 0x200   :  { %v761_v41 = vpop.permute.xlu1 %760  ;;  %5092 = vmatprep.subr.mxu1 %v5961_v0  ;;  %v523_v45 = vpop.f32.mrb[6].mxu0 }
 0x202   :  { %v681_v43 = vpop.permute.xlu0 %680 }
 0x203   :  { %5090 = vmatmul.mubr.msk.f32.vlgmr.msra.gmra.mrb[8].mxu1 %vm527_vm1, %v681_v43 }
 0x204   :  { %5093 = vmatpush3.xpose.msk.msra.mxu1 %vm527_vm1, %v761_v41  ;;  %v759_v44 = vpop.permute.xlu1 %758  ;;  %5094 = vmatprep.mubr.msk.f32.mxu1 %vm5962_vm0, %v5961_v0 }
 0x205   :  { %5097 = vmatprep.subr.mxu1 %v5961_v0 }
 0x206   :  { %v839_v46 = vpop.permute.xlu0 %838 }
 0x207   :  { %5095 = vmatmul.mubr.msk.f32.vlgmr.msra.gmra.mrb[10].mxu1 %vm527_vm1, %v759_v44 }
 0x208   :  { %5098 = vmatpush3.xpose.msk.msra.mxu1 %vm527_vm1, %v839_v46  ;;  %v837_v47 = vpop.permute.xlu1 %836  ;;  %5099 = vmatprep.mubr.msk.f32.mxu1 %vm5962_vm0, %v5961_v0  ;;  %v6329_v46 = vadd.f32 %v4670_v37, %v523_v45 }
 0x209   :  { %5102 = vmatprep.subr.mxu1 %v5961_v0 }
 0x20a   :  { %v917_v48 = vpop.permute.xlu0 %916 }
 0x20b   :  { %5100 = vmatmul.mubr.msk.f32.vlgmr.msra.gmra.mrb[12].mxu1 %vm527_vm1, %v837_v47  ;;  %v5076_v47 = vpop.f32.mrb[7].mxu0 }
 0x20c   :  { %5103 = vmatpush3.xpose.msk.msra.mxu1 %vm527_vm1, %v917_v48  ;;  %v915_v49 = vpop.permute.xlu1 %914  ;;  %5104 = vmatprep.mubr.msk.f32.mxu1 %vm5962_vm0, %v5961_v0 }
 0x20d   :  { %5107 = vmatprep.subr.mxu1 %v5961_v0 }
 0x20e   :  { %v995_v50 = vpop.permute.xlu0 %994 }
 0x20f   :  { %5105 = vmatmul.mubr.msk.f32.vlgmr.msra.gmra.mrb[14].mxu1 %vm527_vm1, %v915_v49 }
 0x210   :  { %5108 = vmatpush3.xpose.msk.msra.mxu1 %vm527_vm1, %v995_v50  ;;  %v993_v51 = vpop.permute.xlu1 %992  ;;  %5109 = vmatprep.mubr.msk.f32.mxu1 %vm5962_vm0, %v5961_v0 }
 0x211   :  { %5112 = vmatprep.subr.mxu1 %v5961_v0 }
 0x212   :  { %v1073_v52 = vpop.permute.xlu0 %1072 }
 0x213   :  { %5110 = vmatmul.mubr.msk.f32.vlgmr.msra.gmra.mrb[16].mxu1 %vm527_vm1, %v993_v51 }
 0x214   :  { %5113 = vmatpush3.xpose.msk.msra.mxu1 %vm527_vm1, %v1073_v52  ;;  %5114 = vmatprep.mubr.msk.f32.mxu1 %vm5962_vm0, %v5961_v0  ;;  %v1071_v53 = vpop.permute.xlu1 %1070 }
 0x215   :  { %5117 = vmatprep.subr.mxu1 %v5961_v0 }
 0x217   :  { %5115 = vmatmul.mubr.msk.f32.vlgmr.msra.gmra.mrb[18].mxu1 %vm527_vm1, %v1071_v53 }
 0x218   :  { %5119 = vmatprep.mubr.msk.f32.mxu1 %vm5962_vm0, %v5961_v0  ;;  %5118 = vmatpush3.msra.mxu1 %v6323_v39 }
 0x219   :  { %5122 = vmatprep.subr.mxu1 %v5961_v0 }
 0x262   :  { %v600_v63 = vpop.f32.mrb[4].mxu1 }
 0x263   :  { %v1148_v3 = vmul.f32 0.17677669, %v600_v63  ;;  %v5081_v4 = vpop.f32.mrb[5].mxu1 }
 0x265   :  { %v1170_v5 = vsel %vm6297_vm4, %v1148_v3, -1e+10 }
 0x266   :  { %v676_v6 = vpop.f32.mrb[6].mxu1  ;;  %v1179_v7 = vsel %vm1178_vm5, %v1170_v5, -inf }
 0x267   :  { %v1152_v9 = vmul.f32 0.17677669, %v676_v6  ;;  %1180 = vmax.xlane.f32.xlu0 %v1179_v7  ;;  %v5086_v10 = vpop.f32.mrb[7].mxu1 }
 0x269   :  { %v1174_v11 = vsel %vm6305_vm6, %v1152_v9, -1e+10 }
 0x26a   :  { %v1191_v12 = vsel %vm1178_vm5, %v1174_v11, -inf }
 0x26b   :  { %1192 = vmax.xlane.f32.xlu1 %v1191_v12 }
 0x2d6   :  { %v754_v13 = vpop.f32.mrb[8].mxu1 }
 0x2d7   :  { %v1149_v14 = vmul.f32 0.17677669, %v754_v13  ;;  %v5091_v15 = vpop.f32.mrb[9].mxu1 }
 0x2d9   :  { %v1171_v16 = vsel %vm6297_vm4, %v1149_v14, -1e+10 }
 0x2da   :  { %v832_v17 = vpop.f32.mrb[10].mxu1  ;;  %v1182_v18 = vsel %vm1178_vm5, %v1171_v16, -inf }
 0x2db   :  { %v1153_v19 = vmul.f32 0.17677669, %v832_v17  ;;  %1183 = vmax.xlane.f32.xlu0 %v1182_v18  ;;  %v5096_v20 = vpop.f32.mrb[11].mxu1 }
 0x2dd   :  { %v1175_v21 = vsel %vm6305_vm6, %v1153_v19, -1e+10 }
 0x2de   :  { %v6317_v22 = vpop.f32.mrb[12].mxu1  ;;  %v1194_v23 = vsel %vm1178_vm5, %v1175_v21, -inf }
 0x2df   :  { %1195 = vmax.xlane.f32.xlu0 %v1194_v23  ;;  %v5101_v24 = vpop.f32.mrb[13].mxu1  ;;  %v5555_v23 = vld [vmem:[#allocation10 + $0xc0] sm:$0xff]  }
 0x2e2   :  { %v988_v25 = vpop.f32.mrb[14].mxu1 }
 0x2e3   :  { %v5106_v26 = vpop.f32.mrb[15].mxu1  ;;  %v1154_v6 = vmul.f32 0.17677669, %v988_v25  ;;  %v5556_v25 = vld [vmem:[#allocation10 + $0xc8] sm:$0xff]  }
 0x2e5   :  { %v1176_v13 = vsel %vm6305_vm6, %v1154_v6, -1e+10 }
 0x2e6   :  { %v1066_v27 = vpop.f32.mrb[16].mxu1  ;;  %v1197_v15 = vsel %vm1178_vm5, %v1176_v13, -inf }
 0x2e7   :  { %v5111_v28 = vpop.f32.mrb[17].mxu1  ;;  %v1151_v7 = vmul.f32 0.17677669, %v1066_v27 }
 0x2e9   :  { %v1173_v12 = vsel %vm6297_vm4, %v1151_v7, -1e+10 }
 0x2ea   :  { %v1144_v29 = vpop.f32.mrb[18].mxu1  ;;  %v1188_v14 = vsel %vm1178_vm5, %v1173_v12, -inf }
 0x2eb   :  { %v5116_v30 = vpop.f32.mrb[19].mxu1 }
 0x2f4   :  { %v1181_v31 = vpop.xlane.xlu0 %1180 }
 0x2f5   :  { %v1203_v32 = vsub.f32 %v1170_v5, %v1181_v31  ;;  %v1150_v5 = vmul.f32 0.17677669, %v6317_v22 }
 0x2f7   :  { %v1211_v33 = vmul.f32 1.442695, %v1203_v32  ;;  %v1172_v9 = vsel %vm6297_vm4, %v1150_v5, -1e+10 }
 0x2f8   :  { %v1193_v34 = vpop.xlane.xlu1 %1192  ;;  %v1185_v10 = vsel %vm1178_vm5, %v1172_v9, -inf }
 0x2f9   :  { %5635 = vpow2.f32 %v1211_v33  ;;  %v1207_v35 = vsub.f32 %v1174_v11, %v1193_v34  ;;  %v1155_v11 = vmul.f32 0.17677669, %v1144_v29 }
 0x2fb   :  { %v1219_v36 = vmul.f32 1.442695, %v1207_v35 }
 0x2fd   :  { %5637 = vpow2.f32 %v1219_v36 }
 0x303   :  { %v5636_v41 = vpop.eup %5635 }
 0x304   :  { %v1227_v42 = vsel %vm1178_vm5, %v5636_v41, 0.0 }
 0x305   :  { %1228 = vadd.xlane.f32.xlu1 %v1227_v42 }
 0x307   :  { %v5638_v43 = vpop.eup %5637 }
 0x308   :  { %v1239_v44 = vsel %vm1178_vm5, %v5638_v43, 0.0 }
 0x309   :  { %1240 = vadd.xlane.f32.xlu0 %v1239_v44 }
 0x368   :  { %v1184_v48 = vpop.xlane.xlu0 %1183 }
 0x369   :  { %v1204_v49 = vsub.f32 %v1171_v16, %v1184_v48  ;;  %v1177_v16 = vsel %vm6305_vm6, %v1155_v11, -1e+10  ;;  %v5557_v48 = vld [vmem:[#allocation10 + $0xd0] sm:$0xff]  }
 0x36a   :  { %v1200_v17 = vsel %vm1178_vm5, %v1177_v16, -inf }
 0x36b   :  { %v1213_v50 = vmul.f32 1.442695, %v1204_v49  ;;  %v5558_v49 = vld [vmem:[#allocation10 + $0xd8] sm:$0xff]  }
 0x36c   :  { %v1196_v51 = vpop.xlane.xlu0 %1195 }
 0x36d   :  { %5639 = vpow2.f32 %v1213_v50  ;;  %v1208_v52 = vsub.f32 %v1175_v21, %v1196_v51 }
 0x36f   :  { %v1221_v53 = vmul.f32 1.442695, %v1208_v52 }
 0x371   :  { %5641 = vpow2.f32 %v1221_v53 }
 0x377   :  { %v5640_v54 = vpop.eup %5639 }
 0x378   :  { %v1230_v55 = vsel %vm1178_vm5, %v5640_v54, 0.0 }
 0x379   :  { %1231 = vadd.xlane.f32.xlu1 %v1230_v55 }
 0x37b   :  { %v5642_v57 = vpop.eup %5641 }
 0x37c   :  { %v1242_v60 = vsel %vm1178_vm5, %v5642_v57, 0.0 }
 0x37d   :  { %1243 = vadd.xlane.f32.xlu0 %v1242_v60 }
 0x38a   :  { %1415 = vrot.lane.b32.xlu1 %v6323_v39, %s5963_s30 }
 0x392   :  { %v1229_v61 = vpop.xlane.xlu1 %1228 }
 0x393   :  { %5643 = vrcp.f32 %v1229_v61  ;;  %1492 = vrot.lane.b32.xlu0 %v6329_v46, %s5963_s30 }
 0x396   :  { %v1241_v62 = vpop.xlane.xlu0 %1240 }
 0x397   :  { %5645 = vrcp.f32 %v1241_v62 }
 0x39d   :  { %v5644_v63 = vpop.eup %5643 }
 0x39e   :  { %v1259_v2 = vmul.f32 %v5644_v63, %v5636_v41 }
 0x3a0   :  { %5120 = vmatmul.mubr.msk.f32.vlgmr.msra.gmra.mrb[20].mxu1 %vm1178_vm5, %v1259_v2 }
 0x3a1   :  { %v5646_v3 = vpop.eup %5645  ;;  %5123 = vmatpush3.msra.mxu1 %v6329_v46  ;;  %5124 = vmatprep.mubr.msk.f32.mxu1 %vm5962_vm0, %v5961_v0 }
 0x3a2   :  { %v1263_v4 = vmul.f32 %v5646_v3, %v5638_v43  ;;  %5132 = vmatprep.subr.mxu1 %v5961_v0 }
 0x3a4   :  { %5125 = vmatmul.mubr.msk.f32.vlgmr.msra.gmra.mrb[22].mxu1 %vm1178_vm5, %v1263_v4 }
 0x3a5   :  { %5134 = vmatprep.mubr.msk.f32.mxu1 %vm5962_vm0, %v5961_v0 }
 0x3ae   :  { %1186 = vmax.xlane.f32.xlu1 %v1185_v10 }
 0x3b2   :  { %1189 = vmax.xlane.f32.xlu1 %v1188_v14  ;;  %1198 = vmax.xlane.f32.xlu0 %v1197_v15 }
 0x3b6   :  { %1201 = vmax.xlane.f32.xlu0 %v1200_v17  ;;  %v5560_v17 = vld [vmem:[#allocation10 + $0xe8] sm:$0xff]  }
 0x3c3   :  { %1681 = vrot.lane.b32.xlu1 %v6323_v39, %s6764_s1 }
 0x406   :  { %v1232_v1 = vpop.xlane.xlu1 %1231 }
 0x407   :  { %5647 = vrcp.f32 %v1232_v1 }
 0x40a   :  { %v1244_v18 = vpop.xlane.xlu0 %1243  ;;  %v1416_v19 = vpop.permute.xlu1 %1415 }
 0x40b   :  { %5649 = vrcp.f32 %v1244_v18  ;;  %5128 = vmatpush3.msra.mxu0 %v1416_v19 }
 0x40c   :  { %5137 = vmatprep.subr.bf16.mxu0 %v5961_v0 }
 0x40e   :  { %v1493_v20 = vpop.permute.xlu0 %1492 }
 0x40f   :  { %5133 = vmatpush3.msra.mxu1 %v1493_v20 }
 0x410   :  { %5145 = vmatprep.subr.bf16.mxu1 %v5961_v0 }
 0x411   :  { %v5648_v8 = vpop.eup %5647 }
 0x412   :  { %v1260_v21 = vmul.f32 %v5648_v8, %v5640_v54 }
 0x414   :  { %5130 = vmatmul.mubr.msk.f32.vlgmr.msra.gmra.mrb[8].mxu0 %vm1178_vm5, %v1260_v21 }
 0x415   :  { %v5650_v22 = vpop.eup %5649  ;;  %5141 = vmatprep.mubr.msk.bf16.mxu0 %vm5962_vm0, %v5961_v0  ;;  %5138 = vmatpush3.bf16.msra.mxu0 %v5557_v48 }
 0x416   :  { %v1264_v24 = vmul.f32 %v5650_v22, %v5642_v57  ;;  %5139 = vmatprep.subr.bf16.mxu0 %v5961_v0 }
 0x418   :  { %5135 = vmatmul.mubr.msk.f32.vlgmr.msra.gmra.mrb[24].mxu1 %vm1178_vm5, %v1264_v24 }
 0x419   :  { %5146 = vmatpush3.bf16.msra.mxu1 %v5555_v23  ;;  %5149 = vmatprep.mubr.msk.bf16.mxu1 %vm5962_vm0, %v5961_v0 }
 0x41a   :  { %5147 = vmatprep.subr.bf16.mxu1 %v5961_v0  ;;  %5140 = vmatpush3.bf16.msra.mxu0 %v5558_v49 }
 0x41b   :  { %5153 = vmatprep.subr.mxu0 %v5961_v0 }
 0x41d   :  { %5148 = vmatpush3.bf16.msra.mxu1 %v5556_v25 }
 0x41e   :  { %5158 = vmatprep.subr.mxu1 %v5961_v0 }
 0x43b   :  { %v1187_v26 = vpop.xlane.xlu1 %1186 }
 0x43c   :  { %v1205_v27 = vsub.f32 %v1172_v9, %v1187_v26 }
 0x43e   :  { %v1215_v28 = vmul.f32 1.442695, %v1205_v27 }
 0x43f   :  { %v1190_v29 = vpop.xlane.xlu1 %1189  ;;  %v1199_v30 = vpop.xlane.xlu0 %1198 }
 0x440   :  { %5651 = vpow2.f32 %v1215_v28  ;;  %v1206_v31 = vsub.f32 %v1173_v12, %v1190_v29  ;;  %v1209_v32 = vsub.f32 %v1176_v13, %v1199_v30 }
 0x442   :  { %v1217_v33 = vmul.f32 1.442695, %v1206_v31  ;;  %v1223_v34 = vmul.f32 1.442695, %v1209_v32 }
 0x443   :  { %v1202_v35 = vpop.xlane.xlu0 %1201 }
 0x444   :  { %5653 = vpow2.f32 %v1217_v33  ;;  %v1210_v36 = vsub.f32 %v1177_v16, %v1202_v35  ;;  %v5559_v16 = vld [vmem:[#allocation10 + $0xe0] sm:$0xff]  }
 0x445   :  { %5655 = vpow2.f32 %v1223_v34  ;;  %v5561_v34 = vld [vmem:[#allocation10 + $0xf0] sm:$0xff]  }
 0x446   :  { %v1225_v37 = vmul.f32 1.442695, %v1210_v36 }
 0x448   :  { %5657 = vpow2.f32 %v1225_v37  ;;  %v5562_v37 = vld [vmem:[#allocation10 + $0xf8] sm:$0xff]  }
 0x44a   :  { %v6370_v38 = vpop.eup %5651 }
 0x44b   :  { %v1233_v40 = vsel %vm1178_vm5, %v6370_v38, 0.0 }
 0x44c   :  { %1234 = vadd.xlane.f32.xlu1 %v1233_v40  ;;  %v5564_v40 = vld [vmem:[#allocation11 + $0x48] sm:$0xff]  }
 0x44e   :  { %v5654_v41 = vpop.eup %5653 }
 0x44f   :  { %v5656_v42 = vpop.eup %5655  ;;  %v1236_v43 = vsel %vm1178_vm5, %v5654_v41, 0.0 }
 0x450   :  { %1237 = vadd.xlane.f32.xlu1 %v1236_v43  ;;  %v1245_v44 = vsel %vm1178_vm5, %v5656_v42, 0.0  ;;  %v5567_v43 = vld [vmem:[#allocation11 + $0x60] sm:$0xff]  }
 0x451   :  { %1246 = vadd.xlane.f32.xlu0 %v1245_v44  ;;  %v5568_v44 = vld [vmem:[#allocation11 + $0x68] sm:$0xff]  }
 0x452   :  { %v5658_v45 = vpop.eup %5657 }
 0x453   :  { %v1248_v47 = vsel %vm1178_vm5, %v5658_v45, 0.0 }
 0x455   :  { %1249 = vadd.xlane.f32.xlu0 %v1248_v47  ;;  %v5570_v47 = vld [vmem:[#allocation11 + $0x78] sm:$0xff]  }
 0x461   :  { %1892 = vrot.lane.b32.xlu1 %v6323_v39, %s5964_s29  ;;  %v1682_v39 = vpop.permute.xlu1 %1681 }
 0x465   :  { %1968 = vrot.lane.b32.xlu1 %v6329_v46, %s5964_s29 }
 0x46b   :  { %1757 = vrot.lane.b32.xlu0 %v6329_v46, %s6764_s1 }
 0x473   :  { %v1336_v50 = vpop.f32.mrb[20].mxu1 }
 0x474   :  { %v5121_v51 = vpop.f32.mrb[21].mxu1 }
 0x477   :  { %v1409_v52 = vpop.f32.mrb[22].mxu1 }
 0x478   :  { %v1413_v53 = vpack.c.bf16 %v1409_v52, %v1336_v50  ;;  %v5126_v54 = vpop.f32.mrb[23].mxu1 }
 0x47a   :  { %5150 = vmatmul.mubr.msk.bf16.vlgmr.msra.gmra.mrb[28].mxu1 %vm527_vm1, %v1413_v53 }
 0x47b   :  { %5160 = vmatprep.mubr.msk.f32.mxu1 %vm5962_vm0, %v5961_v0 }
 0x4d9   :  { %v1235_v55 = vpop.xlane.xlu1 %1234 }
 0x4dd   :  { %v1238_v57 = vpop.xlane.xlu1 %1237 }
 0x4de   :  { %v1247_v60 = vpop.xlane.xlu0 %1246 }
 0x4df   :  { %5659 = vrcp.f32 %v1247_v60 }
 0x4e0   :  { %5661 = vrcp.f32 %v1238_v57 }
 0x4e1   :  { %v1893_v4 = vpop.permute.xlu1 %1892 }
 0x4e2   :  { %v1250_v46 = vpop.xlane.xlu0 %1249 }
 0x4e3   :  { %5663 = vrcp.f32 %v1250_v46 }
 0x4e4   :  { %5665 = vrcp.f32 %v1235_v55 }
 0x4e5   :  { %v1969_v12 = vpop.permute.xlu1 %1968 }
 0x4e6   :  { %v1758_v61 = vpop.permute.xlu0 %1757 }
 0x4e7   :  { %5159 = vmatpush3.msra.mxu1 %v1758_v61  ;;  %v1487_v62 = vpop.f32.mrb[8].mxu0 }
 0x4e8   :  { %v5131_v63 = vpop.f32.mrb[9].mxu0  ;;  %5171 = vmatprep.subr.mxu1 %v5961_v0 }
 0x4e9   :  { %v5660_v2 = vpop.eup %5659 }
 0x4ea   :  { %v1265_v3 = vmul.f32 %v5660_v2, %v5656_v42  ;;  %v5662_v5 = vpop.eup %5661  ;;  %v5566_v42 = vld [vmem:[#allocation11 + $0x58] sm:$0xff]   ;;  %v5711_v2 = vld [vmem:[#allocation2] sm:$0xff] }
 0x4eb   :  { %v1564_v6 = vpop.f32.mrb[24].mxu1  ;;  %v1262_v10 = vmul.f32 %v5662_v5, %v5654_v41  ;;  %v5565_v41 = vld [vmem:[#allocation11 + $0x50] sm:$0xff]  }
 0x4ec   :  { %v1568_v7 = vpack.c.bf16 %v1564_v6, %v1487_v62  ;;  %5161 = vmatmul.mubr.msk.f32.vlgmr.msra.gmra.mrb[26].mxu1 %vm1178_vm5, %v1265_v3  ;;  %v5136_v9 = vpop.f32.mrb[25].mxu1 }
 0x4ed   :  { %5172 = vmatpush3.msra.mxu1 %v1893_v4  ;;  %5173 = vmatprep.mubr.msk.f32.mxu1 %vm5962_vm0, %v5961_v0  ;;  %v5664_v11 = vpop.eup %5663  ;;  %v5712_v4 = vld [vmem:[#allocation2 + $0x8] sm:$0xff]  ;;  %v163_v9 = vld [vmem:[#allocation5] sm:$0xff] }
 0x4ee   :  { %5142 = vmatmul.mubr.msk.bf16.vlgmr.msra.gmra.mrb[12].mxu0 %vm527_vm1, %v1568_v7  ;;  %5176 = vmatprep.subr.mxu1 %v5961_v0  ;;  %v5666_v13 = vpop.eup %5665  ;;  %v1266_v14 = vmul.f32 %v5664_v11, %v5658_v45  ;;  %v5569_v45 = vld [vmem:[#allocation11 + $0x70] sm:$0xff]   ;;  %v5571_v11 = vld [vmem:[#allocation11] sm:$0xff]  }
 0x4ef   :  { %5154 = vmatpush3.msra.mxu0 %v1682_v39  ;;  %5155 = vmatprep.mubr.msk.f32.mxu0 %vm5962_vm0, %v5961_v0  ;;  %v1261_v15 = vmul.f32 %v5666_v13, %v6370_v38  ;;  %v5563_v38 = vld [vmem:[#allocation11 + $0x40] sm:$0xff]   ;;  %v4716_v39 = vld [vmem:[%s6742_s5 + $0x3] ss:$0 sm:$0xff] }
 0x4f0   :  { %5174 = vmatmul.mubr.msk.f32.vlgmr.msra.gmra.mrb[32].mxu1 %vm1178_vm5, %v1262_v10  ;;  %5163 = vmatprep.subr.bf16.mxu0 %v5961_v0  ;;  %v164_v10 = vld [vmem:[#allocation5 + $0x8] sm:$0xff]  ;;  %v165_v13 = vld [vmem:[#allocation5 + $0x10] sm:$0xff] }
 0x4f1   :  { %5177 = vmatpush3.msra.mxu1 %v1969_v12  ;;  %5178 = vmatprep.mubr.msk.f32.mxu1 %vm5962_vm0, %v5961_v0  ;;  %v2230_v12 = vpack.c.bf16 %v164_v10, %v163_v9  ;;  %v5583_v9 = vld [vmem:[#allocation11 + $0xa0] sm:$0xff]   ;;  %v5584_v10 = vld [vmem:[#allocation11 + $0xa8] sm:$0xff]  }
 0x4f2   :  { %5189 = vmatprep.subr.bf16.mxu1 %v5961_v0 }
 0x4f4   :  { %5179 = vmatmul.mubr.msk.f32.vlgmr.msra.gmra.mrb[34].mxu1 %vm1178_vm5, %v1266_v14  ;;  %v166_v14 = vld [vmem:[#allocation5 + $0x18] sm:$0xff] }
 0x4f5   :  { %5205 = vmatprep.mubr.msk.bf16.mxu1 %vm5962_vm0, %v5961_v0  ;;  %5190 = vmatpush3.bf16.msra.mxu1 %v5571_v11  ;;  %v5585_v11 = vld [vmem:[#allocation11 + $0xb0] sm:$0xff]  }
 0x4f6   :  { %5156 = vmatmul.mubr.msk.f32.vlgmr.msra.gmra.mrb[10].mxu0 %vm1178_vm5, %v1261_v15  ;;  %v6423_v15 = vpack.c.bf16 %v166_v14, %v165_v13  ;;  %5191 = vmatprep.subr.bf16.mxu1 %v5961_v0 }
 0x4f7   :  { %5167 = vmatprep.mubr.msk.bf16.mxu0 %vm5962_vm0, %v5961_v0  ;;  %5164 = vmatpush3.bf16.msra.mxu0 %v5559_v16  ;;  %v5572_v16 = vld [vmem:[#allocation11 + $0x8] sm:$0xff]  }
 0x4f8   :  { %5165 = vmatprep.subr.bf16.mxu0 %v5961_v0 }
 0x4f9   :  { %5192 = vmatpush3.bf16.msra.mxu1 %v5572_v16 }
 0x4fa   :  { %5193 = vmatprep.subr.bf16.mxu1 %v5961_v0 }
 0x4fb   :  { %5166 = vmatpush3.bf16.msra.mxu0 %v5560_v17  ;;  %v5573_v17 = vld [vmem:[#allocation11 + $0x10] sm:$0xff]  }
 0x4fc   :  { %5181 = vmatprep.subr.bf16.mxu0 %v5961_v0 }
 0x4fd   :  { %5194 = vmatpush3.bf16.msra.mxu1 %v5573_v17 }
 0x4fe   :  { %5195 = vmatprep.subr.bf16.mxu1 %v5961_v0 }
 0x54d   :  { %v1674_v1 = vpop.f32.mrb[28].mxu1 }
 0x54e   :  { %v5151_v18 = vpop.f32.mrb[29].mxu1 }
 0x54f   :  { %v1677_v19 = vpop.f32.mrb[30].mxu1  ;;  %v5575_v18 = vld [vmem:[#allocation11 + $0x20] sm:$0xff]  }
 0x550   :  { %v5152_v20 = vpop.f32.mrb[31].mxu1 }
 0x551   :  { %v5577_v20 = vld [vmem:[#allocation11 + $0x30] sm:$0xff]  }
 0x5bf   :  { %v1829_v8 = vpop.f32.mrb[26].mxu1 }
 0x5c0   :  { %v5162_v21 = vpop.f32.mrb[27].mxu1 }
 0x5c1   :  { %v1618_v22 = vpop.f32.mrb[12].mxu0  ;;  %v5966_v21 = vmov 0.0|0.0  }
 0x5c2   :  { %v1675_v23 = vadd.f32 %v1674_v1, %v1618_v22  ;;  %v5143_v24 = vpop.f32.mrb[13].mxu0  ;;  %v5574_v1 = vld [vmem:[#allocation11 + $0x18] sm:$0xff]  }
 0x5c3   :  { %v1964_v25 = vpop.f32.mrb[32].mxu1  ;;  %v1621_v26 = vpop.f32.mrb[14].mxu0  ;;  %5196 = vmatpush3.bf16.msra.mxu1 %v5574_v1 }
 0x5c4   :  { %v1678_v27 = vadd.f32 %v1677_v19, %v1621_v26  ;;  %v5175_v28 = vpop.f32.mrb[33].mxu1  ;;  %v5144_v29 = vpop.f32.mrb[15].mxu0  ;;  %5197 = vmatprep.subr.bf16.mxu1 %v5961_v0  ;;  %v5576_v19 = vld [vmem:[#allocation11 + $0x28] sm:$0xff]  }
 0x5c7   :  { %v2040_v30 = vpop.f32.mrb[34].mxu1  ;;  %5198 = vmatpush3.bf16.msra.mxu1 %v5575_v18  ;;  %v4719_v18 = vld [vmem:[%s6744_s7] ss:$0 sm:$0xff] }
 0x5c8   :  { %v2044_v31 = vpack.c.bf16 %v2040_v30, %v1964_v25  ;;  %v5180_v32 = vpop.f32.mrb[35].mxu1  ;;  %5199 = vmatprep.subr.bf16.mxu1 %v5961_v0 }
 0x5c9   :  { %v1753_v33 = vpop.f32.mrb[10].mxu0 }
 0x5ca   :  { %v1833_v35 = vpack.c.bf16 %v1829_v8, %v1753_v33  ;;  %v5157_v36 = vpop.f32.mrb[11].mxu0  ;;  %v5578_v8 = vld [vmem:[#allocation11 + $0x38] sm:$0xff]  }
 0x5cb   :  { %5200 = vmatpush3.bf16.msra.mxu1 %v5576_v19 }
 0x5cc   :  { %5168 = vmatmul.mubr.msk.bf16.vlgmr.msra.gmra.mrb[16].mxu0 %vm527_vm1, %v1833_v35  ;;  %5201 = vmatprep.subr.bf16.mxu1 %v5961_v0 }
 0x5cd   :  { %5182 = vmatpush3.bf16.msra.mxu0 %v5561_v34  ;;  %5185 = vmatprep.mubr.msk.bf16.mxu0 %vm5962_vm0, %v5961_v0 }
 0x5ce   :  { %5183 = vmatprep.subr.bf16.mxu0 %v5961_v0 }
 0x5cf   :  { %5202 = vmatpush3.bf16.msra.mxu1 %v5577_v20 }
 0x5d0   :  { %5203 = vmatprep.subr.bf16.mxu1 %v5961_v0 }
 0x5d1   :  { %5184 = vmatpush3.bf16.msra.mxu0 %v5562_v37 }
 0x5d2   :  { %5209 = vmatprep.subr.bf16.mxu0 %v5563_v38 }
 0x5d3   :  { %5204 = vmatpush3.bf16.msra.mxu1 %v5578_v8 }
 0x5d4   :  { %5186 = vmatmul.mubr.msk.bf16.vlgmr.msra.gmra.mrb[20].mxu0 %vm527_vm1, %v2044_v31 }
 0x5d5   :  { %5210 = vmatpush3.bf16.msra.mxu0 %v5563_v38  ;;  %5225 = vmatprep.mubr.bf16.mxu0 %v2230_v12 }
 0x5d6   :  { %5211 = vmatprep.subr.bf16.mxu0 %v5564_v40 }
 0x5d9   :  { %5212 = vmatpush3.bf16.msra.mxu0 %v5564_v40  ;;  %v4717_v40 = vld [vmem:[%s6749_s12] ss:$0 sm:$0xff] }
 0x5da   :  { %5213 = vmatprep.subr.bf16.mxu0 %v5565_v41 }
 0x5dd   :  { %5214 = vmatpush3.bf16.msra.mxu0 %v5565_v41 }
 0x5de   :  { %5215 = vmatprep.subr.bf16.mxu0 %v5566_v42 }
 0x5e1   :  { %5216 = vmatpush3.bf16.msra.mxu0 %v5566_v42 }
 0x5e2   :  { %5217 = vmatprep.subr.bf16.mxu0 %v5567_v43 }
 0x5e5   :  { %5218 = vmatpush3.bf16.msra.mxu0 %v5567_v43 }
 0x5e6   :  { %5219 = vmatprep.subr.bf16.mxu0 %v5568_v44 }
 0x5e9   :  { %5220 = vmatpush3.bf16.msra.mxu0 %v5568_v44 }
 0x5ea   :  { %5221 = vmatprep.subr.bf16.mxu0 %v5569_v45 }
 0x5ed   :  { %5222 = vmatpush3.bf16.msra.mxu0 %v5569_v45  ;;  %v4718_v45 = vld [vmem:[%s6750_s13] ss:$0 sm:$0xff] }
 0x5ee   :  { %5223 = vmatprep.subr.bf16.mxu0 %v5570_v47 }
 0x5f1   :  { %5224 = vmatpush3.bf16.msra.mxu0 %v5570_v47 }
 0x5f2   :  { %5393 = vmatprep.subr.bf16.mxu0 %v5966_v21 }
 0x5f4   :  { %5226 = vmatmul.mubr.bf16.vlgmr.msra.gmra.mrb[24].mxu0 %v6423_v15 }
 0x5f5   :  { %5253 = vmatprep.mubr.msk.f32.mxu0 %vm5962_vm0, %v5961_v0 }
 0x69f   :  { %v1883_v48 = vpop.f32.mrb[16].mxu0 }
 0x6a0   :  { %v1890_v49 = vadd.f32 %v1883_v48, %v1675_v23  ;;  %v5169_v50 = vpop.f32.mrb[17].mxu0 }
 0x6a1   :  { %v1886_v51 = vpop.f32.mrb[18].mxu0 }
 0x6a2   :  { %v1891_v52 = vadd.f32 %v1886_v51, %v1678_v27  ;;  %v5170_v53 = vpop.f32.mrb[19].mxu0  ;;  %v4729_v51 = vld [vmem:[%s6744_s7 + $0x1] ss:$0 sm:$0xff] }
 0x6a7   :  { %v2094_v54 = vpop.f32.mrb[20].mxu0 }
 0x6a8   :  { %v2101_v55 = vadd.f32 %v2094_v54, %v1890_v49  ;;  %v5187_v57 = vpop.f32.mrb[21].mxu0 }
 0x6a9   :  { %v2097_v60 = vpop.f32.mrb[22].mxu0 }
 0x6aa   :  { %v2111_v46 = vadd.f32 %v4716_v39, %v2101_v55  ;;  %v2102_v61 = vadd.f32 %v2097_v60, %v1891_v52  ;;  %v5188_v62 = vpop.f32.mrb[23].mxu0 }
 0x6ac   :  { %v2112_v63 = vadd.f32 %v4716_v39, %v2102_v61  ;;  %v2113_v3 = vadd.f32 %v5711_v2, %v2111_v46 }
 0x6ae   :  { %2117 = vadd.xlane.f32.xlu0 %v2113_v3  ;;  %v6418_v5 = vadd.f32 %v5712_v4, %v2112_v63  ;;  %v2124_v6 = vmul.f32 %v2113_v3, %v2113_v3  ;;  %v5579_v4 = vld [vmem:[#allocation11 + $0x80] sm:$0xff]  }
 0x6af   :  { %5229 = vmatprep.subr.bf16.mxu1 %v5579_v4 }
 0x6b0   :  { %2119 = vadd.xlane.f32.xlu1 %v6418_v5  ;;  %v2125_v7 = vmul.f32 %v6418_v5, %v6418_v5 }
 0x6b2   :  { %2126 = vadd.xlane.f32.xlu0 %v2124_v6  ;;  %v5581_v6 = vld [vmem:[#allocation11 + $0x90] sm:$0xff]  }
 0x6b6   :  { %2128 = vadd.xlane.f32.xlu0 %v2125_v7  ;;  %v5582_v7 = vld [vmem:[#allocation11 + $0x98] sm:$0xff]  }
 0x6c7   :  { %v5227_v52 = vpop.f32.mrb[24].mxu0 }
 0x6c8   :  { %v6452_v53 = vadd.f32 %v5227_v52, %v4729_v51  ;;  %v2418_v54 = vpop.f32.mrb[25].mxu0 }
 0x6c9   :  { %v2419_v39 = vadd.f32 %v4729_v51, %v2418_v54  ;;  %v5228_v55 = vpop.f32.mrb[26].mxu0 }
 0x6ca   :  { %v2430_v57 = vadd.f32 %v5228_v55, %v4729_v51  ;;  %v2421_v60 = vpop.f32.mrb[27].mxu0 }
 0x6cb   :  { %v2422_v46 = vadd.f32 %v4729_v51, %v2421_v60 }
 0x6cc   :  { %v5398_v61 = vpack.c.bf16 %v2430_v57, %v6452_v53  ;;  %v6456_v62 = vpack.i.bf16 %v2430_v57, %v6452_v53  ;;  %v2160_v53 = vld [vmem:[#allocation7] sm:$0x1]  ;;  %v4739_v57 = vld [vmem:[%s6744_s7 + $0x2] ss:$0 sm:$0xff] }
 0x6cd   :  { %v5394_v2 = vpack.c.bf16 %v2422_v46, %v2419_v39  ;;  %vm3196_vm8 = vcmp.gt.f32.partialorder %v2160_v53, 0.0 }
 0x6ce   :  { %5477 = vrot.lane.b32.xlu0 %v6456_v62, %s5963_s30  ;;  %v3198_v54 = vsel %vm3196_vm8, 1, %v5965_v59 }
 0x6cf   :  { %5396 = vmatpush3.bf16.xpose.msk.msra.mxu0 %vm6460_vm7, %v5394_v2  ;;  %v3203_v60 = vrot.slane %v3198_v54, %v6292_v58 }
 0x6d0   :  { %5397 = vmatprep.subr.bf16.mxu0 %v5966_v21 }
 0x6d1   :  { %vm6543_vm10 = vcmp.eq.s32.totalorder %v3203_v60, 1 }
 0x73b   :  { %v2118_v22 = vpop.xlane.xlu0 %2117 }
 0x73c   :  { %v2122_v23 = vmul.f32 0.0078125, %v2118_v22 }
 0x73d   :  { %v2120_v24 = vpop.xlane.xlu1 %2119 }
 0x73e   :  { %v2132_v26 = vmul.f32 %v2122_v23, %v2122_v23  ;;  %v2123_v27 = vmul.f32 0.0078125, %v2120_v24  ;;  %v2136_v36 = vsub.f32 %v2113_v3, %v2122_v23  ;;  %v5481_v3 = vpack.i.bf16 %v2422_v46, %v2419_v39  ;;  %v2161_v39 = vld [vmem:[#allocation7 + $0x1] sm:$0x1] }
 0x73f   :  { %v2127_v25 = vpop.xlane.xlu0 %2126  ;;  %vm3197_vm9 = vcmp.gt.f32.partialorder %v2161_v39, 0.0 }
 0x740   :  { %v2130_v28 = vmul.f32 0.0078125, %v2127_v25  ;;  %v2133_v31 = vmul.f32 %v2123_v27, %v2123_v27  ;;  %v2137_v41 = vsub.f32 %v6418_v5, %v2123_v27  ;;  %5472 = vrot.lane.b32.xlu1 %v5481_v3, %s5963_s30  ;;  %5482 = vrot.lane.b32.xlu0 %v5481_v3, %s6764_s1  ;;  %v5580_v5 = vld [vmem:[#allocation11 + $0x88] sm:$0xff]  }
 0x742   :  { %v2134_v29 = vsub.f32 %v2130_v28, %v2132_v26 }
 0x743   :  { %v2129_v30 = vpop.xlane.xlu0 %2128 }
 0x744   :  { %v2138_v32 = vadd.f32 1e-06, %v2134_v29  ;;  %v2131_v33 = vmul.f32 0.0078125, %v2129_v30  ;;  %5492 = vrot.lane.b32.xlu0 %v5481_v3, %s5964_s29 }
 0x746   :  { %5667 = vrsqrt.f32 %v2138_v32  ;;  %v2135_v34 = vsub.f32 %v2131_v33, %v2133_v31 }
 0x747   :  { %v5478_v13 = vpop.permute.xlu0 %5477 }
 0x748   :  { %v2139_v35 = vadd.f32 1e-06, %v2135_v34  ;;  %5497 = vrot.lane.b32.xlu0 %v6456_v62, %s5964_s29  ;;  %v5480_v28 = vunpack.i.h.bf16 %v5478_v13  ;;  %v5479_v29 = vunpack.i.l.bf16 %v5478_v13 }
 0x74a   :  { %5669 = vrsqrt.f32 %v2139_v35  ;;  %v5406_v30 = vpack.c.bf16 %v5480_v28, %v5479_v29 }
 0x750   :  { %v5668_v37 = vpop.eup %5667 }
 0x751   :  { %v2142_v38 = vmul.f32 %v5668_v37, %v2136_v36 }
 0x753   :  { %v2150_v44 = vmul.f32 %v4717_v40, %v2142_v38 }
 0x754   :  { %v5670_v42 = vpop.eup %5669 }
 0x755   :  { %v2143_v43 = vmul.f32 %v5670_v42, %v2137_v41  ;;  %v6443_v48 = vadd.f32 %v4718_v45, %v2150_v44 }
 0x757   :  { %v2151_v47 = vmul.f32 %v4717_v40, %v2143_v43 }
 0x759   :  { %v6445_v49 = vadd.f32 %v4718_v45, %v2151_v47 }
 0x75b   :  { %v2229_v50 = vpack.c.bf16 %v6445_v49, %v6443_v48 }
 0x75d   :  { %5206 = vmatmul.mubr.bf16.vlgmr.msra.gmra.mrb[36].mxu1 %v2229_v50 }
 0x75e   :  { %5245 = vmatprep.mubr.bf16.mxu1 %v2230_v12  ;;  %5230 = vmatpush3.bf16.msra.mxu1 %v5579_v4  ;;  %v5586_v12 = vld [vmem:[#allocation11 + $0xb8] sm:$0xff]  }
 0x75f   :  { %5231 = vmatprep.subr.bf16.mxu1 %v5580_v5 }
 0x762   :  { %5232 = vmatpush3.bf16.msra.mxu1 %v5580_v5 }
 0x763   :  { %5233 = vmatprep.subr.bf16.mxu1 %v5581_v6 }
 0x766   :  { %5234 = vmatpush3.bf16.msra.mxu1 %v5581_v6 }
 0x767   :  { %5235 = vmatprep.subr.bf16.mxu1 %v5582_v7 }
 0x76a   :  { %5236 = vmatpush3.bf16.msra.mxu1 %v5582_v7  ;;  %v3199_v7 = vsel %vm3197_vm9, 1, %v5965_v59 }
 0x76b   :  { %5237 = vmatprep.subr.bf16.mxu1 %v5583_v9 }
 0x76e   :  { %5238 = vmatpush3.bf16.msra.mxu1 %v5583_v9 }
 0x76f   :  { %5239 = vmatprep.subr.bf16.mxu1 %v5584_v10 }
 0x772   :  { %5240 = vmatpush3.bf16.msra.mxu1 %v5584_v10 }
 0x773   :  { %5241 = vmatprep.subr.bf16.mxu1 %v5585_v11 }
 0x776   :  { %5242 = vmatpush3.bf16.msra.mxu1 %v5585_v11  ;;  %v3207_v11 = vrot.slane %v3199_v7, %v6292_v58 }
 0x777   :  { %5243 = vmatprep.subr.bf16.mxu1 %v5586_v12 }
 0x778   :  { %vm6552_vm12 = vcmp.eq.s32.totalorder %v3207_v11, 1 }
 0x77a   :  { %5244 = vmatpush3.bf16.msra.mxu1 %v5586_v12 }
 0x77b   :  { %5409 = vmatprep.subr.bf16.mxu1 %v5966_v21 }
 0x77d   :  { %5246 = vmatmul.mubr.bf16.vlgmr.msra.gmra.mrb[40].mxu1 %v6423_v15 }
 0x77e   :  { %5281 = vmatprep.mubr.msk.f32.mxu1 %vm5962_vm0, %v5961_v0 }
 0x7b2   :  { %v5483_v14 = vpop.permute.xlu0 %5482  ;;  %v5473_v22 = vpop.permute.xlu1 %5472 }
 0x7b3   :  { %v5485_v16 = vunpack.i.h.bf16 %v5483_v14  ;;  %v5484_v17 = vunpack.i.l.bf16 %v5483_v14  ;;  %v5475_v25 = vunpack.i.h.bf16 %v5473_v22  ;;  %v5474_v26 = vunpack.i.l.bf16 %v5473_v22 }
 0x7b5   :  { %v5410_v1 = vpack.c.bf16 %v5485_v16, %v5484_v17  ;;  %v5402_v27 = vpack.c.bf16 %v5475_v25, %v5474_v26 }
 0x7b6   :  { %v5493_v33 = vpop.permute.xlu0 %5492 }
 0x7b7   :  { %5412 = vmatpush3.bf16.xpose.msk.msra.mxu1 %vm6460_vm7, %v5410_v1  ;;  %v5495_v34 = vunpack.i.h.bf16 %v5493_v33  ;;  %v5494_v35 = vunpack.i.l.bf16 %v5493_v33 }
 0x7b8   :  { %5417 = vmatprep.subr.bf16.mxu1 %v5966_v21 }
 0x7b9   :  { %v5418_v41 = vpack.c.bf16 %v5495_v34, %v5494_v35 }
 0x7ba   :  { %v5498_v42 = vpop.permute.xlu0 %5497 }
 0x7bb   :  { %v5500_v44 = vunpack.i.h.bf16 %v5498_v42  ;;  %v5499_v45 = vunpack.i.l.bf16 %v5498_v42 }
 0x7bd   :  { %v5422_v47 = vpack.c.bf16 %v5500_v44, %v5499_v45 }
 0x830   :  { %v2321_v19 = vpop.f32.mrb[36].mxu1 }
 0x831   :  { %v2322_v20 = vadd.f32 %v4719_v18, %v2321_v19  ;;  %v5207_v15 = vpop.f32.mrb[37].mxu1 }
 0x832   :  { %v2324_v8 = vpop.f32.mrb[38].mxu1 }
 0x833   :  { %v5208_v23 = vpop.f32.mrb[39].mxu1  ;;  %3024 = vrot.lane.b32.xlu0 %v2322_v20, %s5964_s29  ;;  %2696 = vrot.lane.b32.xlu1 %v2322_v20, %s5963_s30  ;;  %v2325_v24 = vadd.f32 %v4719_v18, %v2324_v8 }
 0x834   :  { %5254 = vmatmul.mubr.msk.f32.vlgmr.msra.gmra.mrb[28].mxu0 %vm527_vm1, %v2322_v20 }
 0x835   :  { %5400 = vmatpush3.bf16.xpose.msk.msra.mxu0 %vm6460_vm7, %v5398_v61  ;;  %5260 = vmatprep.mubr.msk.f32.mxu0 %vm5962_vm0, %v5961_v0 }
 0x836   :  { %5401 = vmatprep.subr.bf16.mxu0 %v5966_v21 }
 0x837   :  { %2778 = vrot.lane.b32.xlu1 %v2325_v24, %s5963_s30 }
 0x83b   :  { %5487 = vrot.lane.b32.xlu1 %v6456_v62, %s6764_s1 }
 0x83c   :  { %5261 = vmatmul.mubr.msk.f32.vlgmr.msra.gmra.mrb[30].mxu0 %vm527_vm1, %v2325_v24 }
 0x83d   :  { %5404 = vmatpush3.bf16.xpose.msk.msra.mxu0 %vm6460_vm7, %v5402_v27  ;;  %5267 = vmatprep.mubr.msk.f32.mxu0 %vm5962_vm0, %v5961_v0 }
 0x83e   :  { %5405 = vmatprep.subr.bf16.mxu0 %v5966_v21 }
 0x83f   :  { %2860 = vrot.lane.b32.xlu1 %v2322_v20, %s6764_s1 }
 0x843   :  { %2942 = vrot.lane.b32.xlu1 %v2325_v24, %s6764_s1 }
 0x847   :  { %3106 = vrot.lane.b32.xlu1 %v2325_v24, %s5964_s29 }
 0x850   :  { %v5247_v55 = vpop.f32.mrb[40].mxu1 }
 0x851   :  { %v6539_v46 = vadd.f32 %v5247_v55, %v4739_v57  ;;  %v2523_v61 = vpop.f32.mrb[41].mxu1 }
 0x852   :  { %v5248_v62 = vpop.f32.mrb[42].mxu1 }
 0x853   :  { %v6541_v63 = vadd.f32 %v5248_v62, %v4739_v57  ;;  %v2526_v2 = vpop.f32.mrb[43].mxu1 }
 0x8a5   :  { %v2697_v31 = vpop.permute.xlu1 %2696  ;;  %v3025_v51 = vpop.permute.xlu0 %3024 }
 0x8a6   :  { %5268 = vmatmul.mubr.msk.f32.vlgmr.msra.gmra.mrb[32].mxu0 %vm527_vm1, %v2697_v31 }
 0x8a7   :  { %5408 = vmatpush3.bf16.xpose.msk.msra.mxu0 %vm6460_vm7, %v5406_v30  ;;  %5274 = vmatprep.mubr.msk.f32.mxu0 %vm5962_vm0, %v5961_v0 }
 0x8a8   :  { %5413 = vmatprep.subr.bf16.mxu0 %v5966_v21 }
 0x8a9   :  { %v2779_v32 = vpop.permute.xlu1 %2778 }
 0x8ad   :  { %v5488_v36 = vpop.permute.xlu1 %5487 }
 0x8ae   :  { %v5490_v37 = vunpack.i.h.bf16 %v5488_v36  ;;  %v5489_v38 = vunpack.i.l.bf16 %v5488_v36  ;;  %5275 = vmatmul.mubr.msk.f32.vlgmr.msra.gmra.mrb[34].mxu0 %vm527_vm1, %v2779_v32 }
 0x8af   :  { %5288 = vmatprep.mubr.msk.f32.mxu0 %vm5962_vm0, %v5961_v0 }
 0x8b0   :  { %v5414_v40 = vpack.c.bf16 %v5490_v37, %v5489_v38  ;;  %v2524_v38 = vadd.f32 %v4739_v57, %v2523_v61 }
 0x8b1   :  { %v2861_v43 = vpop.permute.xlu1 %2860 }
 0x8b2   :  { %5282 = vmatmul.mubr.msk.f32.vlgmr.msra.gmra.mrb[44].mxu1 %vm527_vm1, %v2861_v43  ;;  %5416 = vmatpush3.bf16.xpose.msk.msra.mxu0 %vm6460_vm7, %v5414_v40  ;;  %v2527_v40 = vadd.f32 %v4739_v57, %v2526_v2 }
 0x8b3   :  { %5420 = vmatpush3.bf16.xpose.msk.msra.mxu1 %vm6460_vm7, %v5418_v41  ;;  %5295 = vmatprep.mubr.msk.f32.mxu1 %vm5962_vm0, %v5961_v0 }
 0x8b4   :  { %5421 = vmatprep.subr.bf16.mxu0 %v5966_v21  ;;  %5425 = vmatprep.subr.bf16.mxu1 %v5966_v21  ;;  %v5426_v44 = vpack.c.bf16 %v2527_v40, %v2524_v38  ;;  %v6569_v45 = vpack.i.bf16 %v2527_v40, %v2524_v38 }
 0x8b5   :  { %v2943_v50 = vpop.permute.xlu1 %2942 }
 0x8b9   :  { %5289 = vmatmul.mubr.msk.f32.vlgmr.msra.gmra.mrb[36].mxu0 %vm527_vm1, %v2943_v50  ;;  %v3107_v52 = vpop.permute.xlu1 %3106 }
 0x8ba   :  { %5296 = vmatmul.mubr.msk.f32.vlgmr.msra.gmra.mrb[46].mxu1 %vm527_vm1, %v3025_v51  ;;  %5424 = vmatpush3.bf16.xpose.msk.msra.mxu0 %vm6460_vm7, %v5422_v47  ;;  %v6575_v51 = vpack.i.bf16 %v6541_v63, %v6539_v46 }
 0x8bb   :  { %5302 = vmatprep.mubr.msk.f32.mxu0 %vm5962_vm0, %v5961_v0  ;;  %5309 = vmatprep.mubr.msk.f32.mxu1 %vm5962_vm0, %v5961_v0 }
 0x8bc   :  { %5431 = vmatprep.subr.bf16.mxu0 %v5966_v21  ;;  %5427 = vmatpush3.bf16.msra.mxu1 %v5426_v44 }
 0x8bd   :  { %5428 = vmatprep.subr.bf16.mxu1 %v5966_v21 }
 0x8c1   :  { %5303 = vmatmul.mubr.msk.f32.vlgmr.msra.gmra.mrb[38].mxu0 %vm527_vm1, %v3107_v52  ;;  %v5429_v52 = vpack.c.bf16 %v6541_v63, %v6539_v46 }
 0x8c2   :  { %5323 = vmatprep.mubr.msk.f32.mxu0 %vm5962_vm0, %v5961_v0 }
 0x907   :  { %v2613_v3 = vpop.f32.mrb[28].mxu0 }
 0x908   :  { %v3188_v5 = vmul.f32 0.17677669, %v2613_v3  ;;  %v5255_v6 = vpop.f32.mrb[29].mxu0 }
 0x90a   :  { %v3210_v9 = vsel %vm6543_vm10, %v3188_v5, -1e+10 }
 0x90b   :  { %v3219_v10 = vsel %vm3218_vm11, %v3210_v9, -inf }
 0x90c   :  { %3220 = vmax.xlane.f32.xlu0 %v3219_v10 }
 0x90f   :  { %v2692_v12 = vpop.f32.mrb[30].mxu0 }
 0x910   :  { %v3192_v14 = vmul.f32 0.17677669, %v2692_v12  ;;  %v5262_v16 = vpop.f32.mrb[31].mxu0 }
 0x912   :  { %v3214_v17 = vsel %vm6552_vm12, %v3192_v14, -1e+10 }
 0x913   :  { %v3231_v1 = vsel %vm3218_vm11, %v3214_v17, -inf }
 0x914   :  { %3232 = vmax.xlane.f32.xlu1 %v3231_v1 }
 0x979   :  { %v2774_v18 = vpop.f32.mrb[32].mxu0 }
 0x97a   :  { %v3189_v19 = vmul.f32 0.17677669, %v2774_v18  ;;  %v5269_v20 = vpop.f32.mrb[33].mxu0 }
 0x97c   :  { %v3211_v15 = vsel %vm6543_vm10, %v3189_v19, -1e+10 }
 0x97d   :  { %v3222_v8 = vsel %vm3218_vm11, %v3211_v15, -inf }
 0x97e   :  { %3223 = vmax.xlane.f32.xlu0 %v3222_v8 }
 0x981   :  { %v2856_v22 = vpop.f32.mrb[34].mxu0 }
 0x982   :  { %v3193_v23 = vmul.f32 0.17677669, %v2856_v22  ;;  %v5276_v24 = vpop.f32.mrb[35].mxu0 }
 0x984   :  { %v3215_v25 = vsel %vm6552_vm12, %v3193_v23, -1e+10 }
 0x985   :  { %v2938_v26 = vpop.f32.mrb[44].mxu1  ;;  %v3234_v27 = vsel %vm3218_vm11, %v3215_v25, -inf }
 0x986   :  { %3235 = vmax.xlane.f32.xlu0 %v3234_v27  ;;  %v5283_v28 = vpop.f32.mrb[45].mxu1  ;;  %v3190_v10 = vmul.f32 0.17677669, %v2938_v26 }
 0x988   :  { %v3212_v16 = vsel %vm6543_vm10, %v3190_v10, -1e+10 }
 0x98c   :  { %v6565_v29 = vpop.f32.mrb[36].mxu0 }
 0x98d   :  { %v3102_v30 = vpop.f32.mrb[46].mxu1  ;;  %v5290_v31 = vpop.f32.mrb[37].mxu0  ;;  %v3194_v1 = vmul.f32 0.17677669, %v6565_v29 }
 0x98e   :  { %v5297_v32 = vpop.f32.mrb[47].mxu1  ;;  %v3191_v14 = vmul.f32 0.17677669, %v3102_v30 }
 0x990   :  { %v6601_v18 = vsel %vm6543_vm10, %v3191_v14, -1e+10 }
 0x991   :  { %v3228_v19 = vsel %vm3218_vm11, %v6601_v18, -inf }
 0x994   :  { %v6567_v33 = vpop.f32.mrb[38].mxu0 }
 0x995   :  { %v5304_v34 = vpop.f32.mrb[39].mxu0  ;;  %v3195_v20 = vmul.f32 0.17677669, %v6567_v33 }
 0x997   :  { %v3217_v22 = vsel %vm6552_vm12, %v3195_v20, -1e+10 }
 0x998   :  { %v3240_v23 = vsel %vm3218_vm11, %v3217_v22, -inf }
 0x999   :  { %v3221_v35 = vpop.xlane.xlu0 %3220 }
 0x99a   :  { %v3243_v36 = vsub.f32 %v3210_v9, %v3221_v35  ;;  %v5587_v35 = vld [vmem:[#allocation11 + $0xc0] sm:$0xff]  }
 0x99c   :  { %v3251_v37 = vmul.f32 1.442695, %v3243_v36 }
 0x99e   :  { %5671 = vpow2.f32 %v3251_v37  ;;  %v5588_v37 = vld [vmem:[#allocation11 + $0xc8] sm:$0xff]  }
 0x9a1   :  { %v3233_v41 = vpop.xlane.xlu1 %3232 }
 0x9a2   :  { %v3247_v42 = vsub.f32 %v3214_v17, %v3233_v41  ;;  %v3225_v17 = vsel %vm3218_vm11, %v3212_v16, -inf }
 0x9a4   :  { %v3259_v43 = vmul.f32 1.442695, %v3247_v42 }
 0x9a6   :  { %5673 = vpow2.f32 %v3259_v43 }
 0x9a8   :  { %v5672_v47 = vpop.eup %5671 }
 0x9a9   :  { %v3267_v50 = vsel %vm3218_vm11, %v5672_v47, 0.0 }
 0x9aa   :  { %3268 = vadd.xlane.f32.xlu1 %v3267_v50 }
 0x9b0   :  { %v5674_v53 = vpop.eup %5673 }
 0x9b1   :  { %v3279_v54 = vsel %vm3218_vm11, %v5674_v53, 0.0 }
 0x9b2   :  { %3280 = vadd.xlane.f32.xlu0 %v3279_v54 }
 0xa0b   :  { %v3224_v39 = vpop.xlane.xlu0 %3223 }
 0xa0c   :  { %v3244_v55 = vsub.f32 %v3211_v15, %v3224_v39  ;;  %v3216_v15 = vsel %vm6552_vm12, %v3194_v1, -1e+10 }
 0xa0d   :  { %v3237_v8 = vsel %vm3218_vm11, %v3216_v15, -inf }
 0xa0e   :  { %v3253_v57 = vmul.f32 1.442695, %v3244_v55 }
 0xa10   :  { %5675 = vpow2.f32 %v3253_v57 }
 0xa13   :  { %v3236_v60 = vpop.xlane.xlu0 %3235 }
 0xa14   :  { %v3248_v61 = vsub.f32 %v3215_v25, %v3236_v60 }
 0xa16   :  { %v3261_v62 = vmul.f32 1.442695, %v3248_v61 }
 0xa18   :  { %5677 = vpow2.f32 %v3261_v62  ;;  %v5589_v62 = vld [vmem:[#allocation11 + $0xd0] sm:$0xff]  }
 0xa1a   :  { %v5676_v2 = vpop.eup %5675 }
 0xa1b   :  { %v3270_v3 = vsel %vm3218_vm11, %v5676_v2, 0.0 }
 0xa1c   :  { %3271 = vadd.xlane.f32.xlu1 %v3270_v3  ;;  %v5590_v3 = vld [vmem:[#allocation11 + $0xd8] sm:$0xff]  }
 0xa22   :  { %v5678_v5 = vpop.eup %5677 }
 0xa23   :  { %v3282_v6 = vsel %vm3218_vm11, %v5678_v5, 0.0 }
 0xa24   :  { %3283 = vadd.xlane.f32.xlu0 %v3282_v6 }
 0xa2d   :  { %5502 = vrot.lane.b32.xlu1 %v6569_v45, %s5963_s30 }
 0xa37   :  { %v3269_v46 = vpop.xlane.xlu1 %3268 }
 0xa38   :  { %5679 = vrcp.f32 %v3269_v46 }
 0xa3a   :  { %5507 = vrot.lane.b32.xlu0 %v6575_v51, %s5963_s30 }
 0xa3f   :  { %v3281_v63 = vpop.xlane.xlu0 %3280 }
 0xa40   :  { %5681 = vrcp.f32 %v3281_v63 }
 0xa42   :  { %v5680_v7 = vpop.eup %5679 }
 0xa43   :  { %v3299_v9 = vmul.f32 %v5680_v7, %v5672_v47 }
 0xa45   :  { %4173 = vst.msk [vmem:[#allocation17] sm:$0xff] %vm3218_vm11, %v3299_v9  ;;  %5310 = vmatmul.mubr.msk.f32.vlgmr.msra.gmra.mrb[48].mxu1 %vm3218_vm11, %v3299_v9 }
 0xa46   :  { %5430 = vmatpush3.bf16.msra.mxu1 %v5429_v52  ;;  %5316 = vmatprep.mubr.msk.f32.mxu1 %vm5962_vm0, %v5961_v0 }
 0xa47   :  { %5434 = vmatprep.subr.bf16.mxu1 %v5966_v21 }
 0xa4a   :  { %v5682_v11 = vpop.eup %5681 }
 0xa4b   :  { %v3303_v12 = vmul.f32 %v5682_v11, %v5674_v53 }
 0xa4d   :  { %4177 = vst.msk [vmem:[#allocation17 + $0x20] sm:$0xff] %vm3218_vm11, %v3303_v12  ;;  %5317 = vmatmul.mubr.msk.f32.vlgmr.msra.gmra.mrb[50].mxu1 %vm3218_vm11, %v3303_v12 }
 0xa4e   :  { %5330 = vmatprep.mubr.msk.f32.mxu1 %vm5962_vm0, %v5961_v0 }
 0xa51   :  { %3226 = vmax.xlane.f32.xlu1 %v3225_v17 }
 0xa55   :  { %3229 = vmax.xlane.f32.xlu1 %v3228_v19 }
 0xa59   :  { %3238 = vmax.xlane.f32.xlu0 %v3237_v8 }
 0xa5d   :  { %3241 = vmax.xlane.f32.xlu0 %v3240_v23 }
 0xaa9   :  { %v3272_v4 = vpop.xlane.xlu1 %3271 }
 0xaaa   :  { %5683 = vrcp.f32 %v3272_v4 }
 0xaad   :  { %v5503_v24 = vpop.permute.xlu1 %5502 }
 0xaae   :  { %v5505_v25 = vunpack.i.h.bf16 %v5503_v24  ;;  %v5504_v26 = vunpack.i.l.bf16 %v5503_v24 }
 0xab0   :  { %v5432_v27 = vpack.c.bf16 %v5505_v25, %v5504_v26 }
 0xab1   :  { %v3284_v28 = vpop.xlane.xlu0 %3283 }
 0xab2   :  { %5685 = vrcp.f32 %v3284_v28  ;;  %5433 = vmatpush3.bf16.msra.mxu0 %v5432_v27 }
 0xab3   :  { %5333 = vmatprep.subr.bf16.mxu0 %v5961_v0 }
 0xab4   :  { %v5684_v29 = vpop.eup %5683 }
 0xab5   :  { %v3300_v30 = vmul.f32 %v5684_v29, %v5676_v2  ;;  %v5508_v31 = vpop.permute.xlu0 %5507 }
 0xab6   :  { %v5510_v32 = vunpack.i.h.bf16 %v5508_v31  ;;  %v5509_v13 = vunpack.i.l.bf16 %v5508_v31 }
 0xab7   :  { %4174 = vst.msk [vmem:[#allocation17 + $0x8] sm:$0xff] %vm3218_vm11, %v3300_v30  ;;  %5324 = vmatmul.mubr.msk.f32.vlgmr.msra.gmra.mrb[40].mxu0 %vm3218_vm11, %v3300_v30 }
 0xab8   :  { %v5435_v33 = vpack.c.bf16 %v5510_v32, %v5509_v13  ;;  %5337 = vmatprep.mubr.msk.bf16.mxu0 %vm5962_vm0, %v5961_v0  ;;  %5334 = vmatpush3.bf16.msra.mxu0 %v5589_v62  ;;  %v5593_v62 = vld [vmem:[#allocation11 + $0xf0] sm:$0xff]  }
 0xab9   :  { %5335 = vmatprep.subr.bf16.mxu0 %v5961_v0 }
 0xaba   :  { %5436 = vmatpush3.bf16.msra.mxu1 %v5435_v33 }
 0xabb   :  { %5341 = vmatprep.subr.bf16.mxu1 %v5961_v0 }
 0xabc   :  { %v5686_v34 = vpop.eup %5685  ;;  %5336 = vmatpush3.bf16.msra.mxu0 %v5590_v3 }
 0xabd   :  { %v3304_v36 = vmul.f32 %v5686_v34, %v5678_v5  ;;  %5437 = vmatprep.subr.bf16.mxu0 %v5966_v21 }
 0xabf   :  { %4178 = vst.msk [vmem:[#allocation17 + $0x28] sm:$0xff] %vm3218_vm11, %v3304_v36  ;;  %5331 = vmatmul.mubr.msk.f32.vlgmr.msra.gmra.mrb[52].mxu1 %vm3218_vm11, %v3304_v36 }
 0xac0   :  { %5342 = vmatpush3.bf16.msra.mxu1 %v5587_v35  ;;  %5345 = vmatprep.mubr.msk.bf16.mxu1 %vm5962_vm0, %v5961_v0 }
 0xac1   :  { %5343 = vmatprep.subr.bf16.mxu1 %v5961_v0 }
 0xac4   :  { %5344 = vmatpush3.bf16.msra.mxu1 %v5588_v37 }
 0xac5   :  { %5440 = vmatprep.subr.bf16.mxu1 %v5966_v21 }
 0xade   :  { %v3227_v38 = vpop.xlane.xlu1 %3226 }
 0xadf   :  { %v3245_v40 = vsub.f32 %v3212_v16, %v3227_v38 }
 0xae1   :  { %v3255_v41 = vmul.f32 1.442695, %v3245_v40 }
 0xae2   :  { %v3230_v61 = vpop.xlane.xlu1 %3229 }
 0xae3   :  { %5687 = vpow2.f32 %v3255_v41  ;;  %v3246_v2 = vsub.f32 %v6601_v18, %v3230_v61 }
 0xae5   :  { %v3257_v5 = vmul.f32 1.442695, %v3246_v2 }
 0xae6   :  { %v3239_v42 = vpop.xlane.xlu0 %3238 }
 0xae7   :  { %v3249_v43 = vsub.f32 %v3216_v15, %v3239_v42  ;;  %v5591_v42 = vld [vmem:[#allocation11 + $0xe0] sm:$0xff]  }
 0xae9   :  { %v3263_v44 = vmul.f32 1.442695, %v3249_v43 }
 0xaea   :  { %v3242_v47 = vpop.xlane.xlu0 %3241 }
 0xaeb   :  { %5689 = vpow2.f32 %v3263_v44  ;;  %v3250_v50 = vsub.f32 %v3217_v22, %v3242_v47 }
 0xaed   :  { %v5688_v52 = vpop.eup %5687  ;;  %v3265_v53 = vmul.f32 1.442695, %v3250_v50 }
 0xaee   :  { %v3273_v54 = vsel %vm3218_vm11, %v5688_v52, 0.0 }
 0xaef   :  { %5691 = vpow2.f32 %v3265_v53  ;;  %3274 = vadd.xlane.f32.xlu1 %v3273_v54 }
 0xaf0   :  { %5693 = vpow2.f32 %v3257_v5  ;;  %v5594_v5 = vld [vmem:[#allocation11 + $0xf8] sm:$0xff]  }
 0xaf5   :  { %v5690_v39 = vpop.eup %5689 }
 0xaf6   :  { %v3285_v55 = vsel %vm3218_vm11, %v5690_v39, 0.0 }
 0xaf7   :  { %3286 = vadd.xlane.f32.xlu0 %v3285_v55 }
 0xaf9   :  { %v5692_v57 = vpop.eup %5691 }
 0xafa   :  { %v3288_v60 = vsel %vm3218_vm11, %v5692_v57, 0.0  ;;  %v5694_v63 = vpop.eup %5693 }
 0xafb   :  { %3289 = vadd.xlane.f32.xlu0 %v3288_v60  ;;  %v3276_v11 = vsel %vm3218_vm11, %v5694_v63, 0.0 }
 0xb00   :  { %5512 = vrot.lane.b32.xlu1 %v6569_v45, %s6764_s1 }
 0xb11   :  { %5517 = vrot.lane.b32.xlu0 %v6575_v51, %s6764_s1 }
 0xb18   :  { %v3376_v6 = vpop.f32.mrb[48].mxu1 }
 0xb19   :  { %v5311_v46 = vpop.f32.mrb[49].mxu1 }
 0xb20   :  { %v3449_v7 = vpop.f32.mrb[50].mxu1 }
 0xb21   :  { %v3453_v9 = vpack.c.bf16 %v3449_v7, %v3376_v6  ;;  %v5318_v10 = vpop.f32.mrb[51].mxu1 }
 0xb23   :  { %5346 = vmatmul.mubr.msk.bf16.vlgmr.msra.gmra.mrb[56].mxu1 %vm527_vm1, %v3453_v9 }
 0xb24   :  { %3277 = vadd.xlane.f32.xlu1 %v3276_v11  ;;  %5360 = vmatprep.mubr.msk.f32.mxu1 %vm5962_vm0, %v5961_v0 }
 0xb35   :  { %5522 = vrot.lane.b32.xlu1 %v6569_v45, %s5964_s29 }
 0xb39   :  { %5527 = vrot.lane.b32.xlu1 %v6575_v51, %s5964_s29 }
 0xb7c   :  { %v3275_v12 = vpop.xlane.xlu1 %3274 }
 0xb7d   :  { %5695 = vrcp.f32 %v3275_v12 }
 0xb80   :  { %v5513_v15 = vpop.permute.xlu1 %5512 }
 0xb81   :  { %v5515_v4 = vunpack.i.h.bf16 %v5513_v15  ;;  %v5514_v51 = vunpack.i.l.bf16 %v5513_v15 }
 0xb83   :  { %v5438_v29 = vpack.c.bf16 %v5515_v4, %v5514_v51 }
 0xb84   :  { %v3287_v14 = vpop.xlane.xlu0 %3286 }
 0xb85   :  { %5697 = vrcp.f32 %v3287_v14 }
 0xb87   :  { %v5696_v16 = vpop.eup %5695 }
 0xb88   :  { %v3301_v17 = vmul.f32 %v5696_v16, %v5688_v52  ;;  %v3290_v1 = vpop.xlane.xlu0 %3289 }
 0xb89   :  { %5699 = vrcp.f32 %v3290_v1 }
 0xb8a   :  { %4175 = vst.msk [vmem:[#allocation17 + $0x10] sm:$0xff] %vm3218_vm11, %v3301_v17  ;;  %v3531_v18 = vpop.f32.mrb[40].mxu0 }
 0xb8b   :  { %v5325_v19 = vpop.f32.mrb[41].mxu0 }
 0xb8c   :  { %v5518_v20 = vpop.permute.xlu0 %5517 }
 0xb8d   :  { %v5520_v8 = vunpack.i.h.bf16 %v5518_v20  ;;  %v5519_v22 = vunpack.i.l.bf16 %v5518_v20 }
 0xb8f   :  { %v5698_v45 = vpop.eup %5697  ;;  %v5441_v23 = vpack.c.bf16 %v5520_v8, %v5519_v22 }
 0xb90   :  { %v3305_v24 = vmul.f32 %v5698_v45, %v5690_v39 }
 0xb91   :  { %5442 = vmatpush3.bf16.msra.mxu1 %v5441_v23 }
 0xb92   :  { %4179 = vst.msk [vmem:[#allocation17 + $0x30] sm:$0xff] %vm3218_vm11, %v3305_v24  ;;  %v3612_v25 = vpop.f32.mrb[52].mxu1  ;;  %5443 = vmatprep.subr.bf16.mxu1 %v5966_v21 }
 0xb93   :  { %v5700_v26 = vpop.eup %5699  ;;  %v3616_v27 = vpack.c.bf16 %v3612_v25, %v3531_v18  ;;  %v5332_v28 = vpop.f32.mrb[53].mxu1  ;;  %v4793_v18 = vld [vmem:[%s6744_s7 + $0x3] ss:$0 sm:$0xff] }
 0xb94   :  { %v3306_v30 = vmul.f32 %v5700_v26, %v5692_v57  ;;  %5361 = vmatmul.mubr.msk.f32.vlgmr.msra.gmra.mrb[54].mxu1 %vm3218_vm11, %v3305_v24  ;;  %v5597_v25 = vld [vmem:[#allocation13 + $0x4] ss:$8 sps:$4 sm:$0xff]   ;;  %v5595_v26 = vld [vmem:[#allocation13] ss:$8 sps:$4 sm:$0xff]  }
 0xb95   :  { %5338 = vmatmul.mubr.msk.bf16.vlgmr.msra.gmra.mrb[44].mxu0 %vm527_vm1, %v3616_v27  ;;  %5375 = vmatprep.mubr.msk.f32.mxu1 %vm5962_vm0, %v5961_v0  ;;  %v5598_v27 = vld [vmem:[#allocation13 + $0x10] ss:$8 sps:$4 sm:$0xff]   ;;  %v5601_v28 = vld [vmem:[#allocation13 + $0x20] ss:$8 sps:$4 sm:$0xff]  }
 0xb96   :  { %4180 = vst.msk [vmem:[#allocation17 + $0x38] sm:$0xff] %vm3218_vm11, %v3306_v30  ;;  %5439 = vmatpush3.bf16.msra.mxu0 %v5438_v29  ;;  %5353 = vmatprep.mubr.msk.f32.mxu0 %vm5962_vm0, %v5961_v0  ;;  %v5606_v29 = vld [vmem:[#allocation13 + $0x34] ss:$8 sps:$4 sm:$0xff]  }
 0xb97   :  { %5363 = vmatprep.subr.bf16.mxu0 %v5961_v0 }
 0xb9d   :  { %5354 = vmatmul.mubr.msk.f32.vlgmr.msra.gmra.mrb[42].mxu0 %vm3218_vm11, %v3301_v17 }
 0xb9e   :  { %5367 = vmatprep.mubr.msk.bf16.mxu0 %vm5962_vm0, %v5961_v0  ;;  %5364 = vmatpush3.bf16.msra.mxu0 %v5591_v42  ;;  %v5622_v42 = vld [vmem:[#allocation14 + $0x8] sm:$0xff]  }
 0xb9f   :  { %5365 = vmatprep.subr.bf16.mxu0 %v5961_v0 }
 0xbb1   :  { %v3278_v31 = vpop.xlane.xlu1 %3277 }
 0xbb2   :  { %5701 = vrcp.f32 %v3278_v31  ;;  %v5609_v31 = vld [vmem:[#allocation13 + $0x44] ss:$8 sps:$4 sm:$0xff]  }
 0xbb5   :  { %v5523_v32 = vpop.permute.xlu1 %5522 }
 0xbb6   :  { %v5525_v13 = vunpack.i.h.bf16 %v5523_v32  ;;  %v5524_v33 = vunpack.i.l.bf16 %v5523_v32  ;;  %v5607_v32 = vld [vmem:[#allocation13 + $0x40] ss:$8 sps:$4 sm:$0xff]  }
 0xbb8   :  { %v5444_v34 = vpack.c.bf16 %v5525_v13, %v5524_v33  ;;  %v5612_v13 = vld [vmem:[#allocation13 + $0x54] ss:$8 sps:$4 sm:$0xff]   ;;  %v5610_v33 = vld [vmem:[#allocation13 + $0x50] ss:$8 sps:$4 sm:$0xff]  }
 0xbb9   :  { %v5528_v35 = vpop.permute.xlu1 %5527 }
 0xbba   :  { %v5530_v36 = vunpack.i.h.bf16 %v5528_v35  ;;  %v5529_v37 = vunpack.i.l.bf16 %v5528_v35  ;;  %5445 = vmatpush3.bf16.msra.mxu1 %v5444_v34  ;;  %v5615_v34 = vld [vmem:[#allocation13 + $0x64] ss:$8 sps:$4 sm:$0xff]   ;;  %v5613_v35 = vld [vmem:[#allocation13 + $0x60] ss:$8 sps:$4 sm:$0xff]  }
 0xbbb   :  { %5446 = vmatprep.subr.bf16.mxu1 %v5966_v21  ;;  %v5592_v21 = vld [vmem:[#allocation11 + $0xe8] sm:$0xff]  }
 0xbbc   :  { %v5702_v38 = vpop.eup %5701  ;;  %v5447_v40 = vpack.c.bf16 %v5530_v36, %v5529_v37  ;;  %5366 = vmatpush3.bf16.msra.mxu0 %v5592_v21  ;;  %v5618_v36 = vld [vmem:[#allocation13 + $0x74] ss:$8 sps:$4 sm:$0xff]   ;;  %v5616_v37 = vld [vmem:[#allocation13 + $0x70] ss:$8 sps:$4 sm:$0xff]  }
 0xbbd   :  { %v3302_v41 = vmul.f32 %v5702_v38, %v5694_v63  ;;  %5385 = vmatprep.subr.bf16.mxu0 %v5961_v0  ;;  %v5619_v38 = vld [vmem:[#allocation14 + $0x40] sm:$0xff]   ;;  %v5623_v21 = vld [vmem:[#allocation14 + $0x50] sm:$0xff]  }
 0xbbf   :  { %4176 = vst.msk [vmem:[#allocation17 + $0x18] sm:$0xff] %vm3218_vm11, %v3302_v41  ;;  %5376 = vmatmul.mubr.msk.f32.vlgmr.msra.gmra.mrb[60].mxu1 %vm3218_vm11, %v3302_v41  ;;  %v5621_v41 = vld [vmem:[#allocation14 + $0x48] sm:$0xff]  }
 0xbc0   :  { %5448 = vmatpush3.bf16.msra.mxu1 %v5447_v40  ;;  %5382 = vmatprep.mubr.msk.f32.mxu1 %vm5962_vm0, %v5961_v0  ;;  %v5620_v40 = vld [vmem:[#allocation14] sm:$0xff]  }
 0xbc1   :  { %4338 = vmatprep.subr.bf16.mxu1 %v5597_v25 }
 0xbc3   :  { %5383 = vmatmul.mubr.msk.f32.vlgmr.msra.gmra.mrb[62].mxu1 %vm3218_vm11, %v3306_v30  ;;  %v5604_v30 = vld [vmem:[#allocation13 + $0x30] ss:$8 sps:$4 sm:$0xff]  }
 0xbc4   :  { %4370 = vmatprep.mubr.bf16.mxu1 %v5965_v59  ;;  %4339 = vmatpush1.bf16.msra.mxu1 %v5595_v26 }
 0xbf6   :  { %v3722_v43 = vpop.f32.mrb[56].mxu1 }
 0xbf7   :  { %v5347_v44 = vpop.f32.mrb[57].mxu1 }
 0xbf8   :  { %v3725_v47 = vpop.f32.mrb[58].mxu1  ;;  %v5625_v44 = vld [vmem:[#allocation14 + $0x58] sm:$0xff]  }
 0xbf9   :  { %v5348_v50 = vpop.f32.mrb[59].mxu1 }
 0xbfa   :  { %v5627_v50 = vld [vmem:[#allocation14 + $0x60] sm:$0xff]  }
 0xc67   :  { %v3883_v52 = vpop.f32.mrb[54].mxu1 }
 0xc68   :  { %v3666_v53 = vpop.f32.mrb[44].mxu0  ;;  %v5362_v54 = vpop.f32.mrb[55].mxu1 }
 0xc69   :  { %v3723_v39 = vadd.f32 %v3722_v43, %v3666_v53  ;;  %v5339_v55 = vpop.f32.mrb[45].mxu0  ;;  %v5624_v43 = vld [vmem:[#allocation14 + $0x10] sm:$0xff]   ;;  %v5629_v53 = vld [vmem:[#allocation14 + $0x68] sm:$0xff]  }
 0xc6a   :  { %v3669_v57 = vpop.f32.mrb[46].mxu0 }
 0xc6b   :  { %v3726_v60 = vadd.f32 %v3725_v47, %v3669_v57  ;;  %v5340_v59 = vpop.f32.mrb[47].mxu0  ;;  %v5626_v47 = vld [vmem:[#allocation14 + $0x18] sm:$0xff]  }
 0xc70   :  { %v3804_v61 = vpop.f32.mrb[42].mxu0 }
 0xc71   :  { %v3887_v2 = vpack.c.bf16 %v3883_v52, %v3804_v61  ;;  %v5355_v3 = vpop.f32.mrb[43].mxu0  ;;  %v5628_v52 = vld [vmem:[#allocation14 + $0x20] sm:$0xff]  }
 0xc73   :  { %5368 = vmatmul.mubr.msk.bf16.vlgmr.msra.gmra.mrb[48].mxu0 %vm527_vm1, %v3887_v2 }
 0xc74   :  { %5386 = vmatpush3.bf16.msra.mxu0 %v5593_v62  ;;  %5389 = vmatprep.mubr.msk.bf16.mxu0 %vm5962_vm0, %v5961_v0 }
 0xc75   :  { %5387 = vmatprep.subr.bf16.mxu0 %v5961_v0 }
 0xc78   :  { %5388 = vmatpush3.bf16.msra.mxu0 %v5594_v5 }
 0xc79   :  { %4995 = vmatprep.subr.bf16.mxu0 %v5619_v38 }
 0xc92   :  { %v4021_v6 = vpop.f32.mrb[60].mxu1 }
 0xc93   :  { %v5377_v46 = vpop.f32.mrb[61].mxu1 }
 0xc96   :  { %v4100_v63 = vpop.f32.mrb[62].mxu1 }
 0xc97   :  { %v4104_v7 = vpack.c.bf16 %v4100_v63, %v4021_v6  ;;  %v5384_v9 = vpop.f32.mrb[63].mxu1 }
 0xc99   :  { %5390 = vmatmul.mubr.msk.bf16.vlgmr.msra.gmra.mrb[52].mxu0 %vm527_vm1, %v4104_v7 }
 0xc9a   :  { %4996 = vmatpush3.bf16.msra.mxu0 %v5620_v40 }
 0xc9b   :  { %4997 = vmatprep.subr.bf16.mxu0 %v5621_v41 }
 0xc9e   :  { %4998 = vmatpush3.bf16.msra.mxu0 %v5622_v42 }
 0xc9f   :  { %4999 = vmatprep.subr.bf16.mxu0 %v5623_v21 }
 0xca2   :  { %5000 = vmatpush3.bf16.msra.mxu0 %v5624_v43 }
 0xca3   :  { %5001 = vmatprep.subr.bf16.mxu0 %v5625_v44 }
 0xca6   :  { %5002 = vmatpush3.bf16.msra.mxu0 %v5626_v47 }
 0xca7   :  { %5003 = vmatprep.subr.bf16.mxu0 %v5627_v50 }
 0xcaa   :  { %5004 = vmatpush3.bf16.msra.mxu0 %v5628_v52 }
 0xcab   :  { %5005 = vmatprep.subr.bf16.mxu0 %v5629_v53 }
 0xd46   :  { %v3937_v10 = vpop.f32.mrb[48].mxu0 }
 0xd47   :  { %v3944_v11 = vadd.f32 %v3937_v10, %v3723_v39  ;;  %v5369_v12 = vpop.f32.mrb[49].mxu0 }
 0xd48   :  { %v3940_v14 = vpop.f32.mrb[50].mxu0 }
 0xd49   :  { %v3945_v16 = vadd.f32 %v3940_v14, %v3726_v60  ;;  %v5370_v17 = vpop.f32.mrb[51].mxu0 }
 0xd6c   :  { %v4154_v1 = vpop.f32.mrb[52].mxu0 }
 0xd6d   :  { %v4161_v0 = vadd.f32 %v4154_v1, %v3944_v11  ;;  %v5391_v19 = vpop.f32.mrb[53].mxu0  ;;  %v4796_v11 = vld [vmem:[%s6749_s12 + $0x1] ss:$0 sm:$0xff] }
 0xd6e   :  { %v4157_v20 = vpop.f32.mrb[54].mxu0  ;;  %v4797_v1 = vld [vmem:[%s6750_s13 + $0x1] ss:$0 sm:$0xff] }
 0xd6f   :  { %v4171_v15 = vadd.f32 %v4793_v18, %v4161_v0  ;;  %v4162_v8 = vadd.f32 %v4157_v20, %v3945_v16  ;;  %v5392_v22 = vpop.f32.mrb[55].mxu0 }
 0xd70   :  { %v5632_v22 = vld [vmem:[#allocation14 + $0x30] sm:$0xff]  }
 0xd71   :  { %v4172_v45 = vadd.f32 %v4793_v18, %v4162_v8  ;;  %v6674_v23 = vadd.f32 %v4171_v15, %v6443_v48  ;;  %v5600_v48 = vld [vmem:[#allocation13 + $0x14] ss:$8 sps:$4 sm:$0xff]   ;;  %v5630_v15 = vld [vmem:[#allocation14 + $0x28] sm:$0xff]  }
 0xd72   :  { %4340 = vmatprep.subr.bf16.mxu1 %v5600_v48  ;;  %5006 = vmatpush3.bf16.msra.mxu0 %v5630_v15  ;;  %v5631_v8 = vld [vmem:[#allocation14 + $0x70] sm:$0xff]  }
 0xd73   :  { %4187 = vadd.xlane.f32.xlu0 %v6674_v23  ;;  %v6678_v4 = vadd.f32 %v4172_v45, %v6445_v49  ;;  %v4193_v51 = vmul.f32 %v6674_v23, %v6674_v23  ;;  %4341 = vmatpush1.bf16.msra.mxu1 %v5598_v27  ;;  %v5603_v49 = vld [vmem:[#allocation13 + $0x24] ss:$8 sps:$4 sm:$0xff]   ;;  %v5633_v45 = vld [vmem:[#allocation14 + $0x78] sm:$0xff]  }
 0xd74   :  { %4342 = vmatprep.subr.bf16.mxu1 %v5603_v49  ;;  %5007 = vmatprep.subr.bf16.mxu0 %v5631_v8 }
 0xd75   :  { %4189 = vadd.xlane.f32.xlu1 %v6678_v4  ;;  %v4194_v24 = vmul.f32 %v6678_v4, %v6678_v4 }
 0xd76   :  { %5008 = vmatpush3.bf16.msra.mxu0 %v5632_v22 }
 0xd77   :  { %4195 = vadd.xlane.f32.xlu0 %v4193_v51  ;;  %4343 = vmatpush1.bf16.msra.mxu1 %v5601_v28  ;;  %v4254_v51 = vsub.s32 1, %v6289_v56 }
 0xd78   :  { %4344 = vmatprep.subr.bf16.mxu1 %v5606_v29  ;;  %5009 = vmatprep.subr.bf16.mxu0 %v5633_v45 }
 0xd7b   :  { %4197 = vadd.xlane.f32.xlu0 %v4194_v24  ;;  %4345 = vmatpush1.bf16.msra.mxu1 %v5604_v30 }
 0xd7c   :  { %4346 = vmatprep.subr.bf16.mxu1 %v5609_v31 }
 0xd7f   :  { %4347 = vmatpush1.bf16.msra.mxu1 %v5607_v32 }
 0xd80   :  { %4348 = vmatprep.subr.bf16.mxu1 %v5612_v13 }
 0xd83   :  { %4349 = vmatpush1.bf16.msra.mxu1 %v5610_v33 }
 0xd84   :  { %4350 = vmatprep.subr.bf16.mxu1 %v5615_v34 }
 0xd87   :  { %4351 = vmatpush1.bf16.msra.mxu1 %v5613_v35 }
 0xd88   :  { %4352 = vmatprep.subr.bf16.mxu1 %v5618_v36 }
 0xd8b   :  { %4353 = vmatpush1.bf16.msra.mxu1 %v5616_v37 }
 0xe00   :  { %v4188_v54 = vpop.xlane.xlu0 %4187 }
 0xe01   :  { %v4191_v39 = vmul.f32 0.0078125, %v4188_v54 }
 0xe02   :  { %v4190_v55 = vpop.xlane.xlu1 %4189 }
 0xe03   :  { %v4201_v60 = vmul.f32 %v4191_v39, %v4191_v39  ;;  %v4192_v59 = vmul.f32 0.0078125, %v4190_v55  ;;  %v4205_v7 = vsub.f32 %v6674_v23, %v4191_v39  ;;  %v5634_v23 = vld [vmem:[#allocation14 + $0x38] sm:$0xff]  }
 0xe04   :  { %v4196_v57 = vpop.xlane.xlu0 %4195  ;;  %5010 = vmatpush3.bf16.msra.mxu0 %v5634_v23 }
 0xe05   :  { %v4199_v61 = vmul.f32 0.0078125, %v4196_v57  ;;  %v4202_v3 = vmul.f32 %v4192_v59, %v4192_v59  ;;  %v4206_v12 = vsub.f32 %v6678_v4, %v4192_v59  ;;  %v4246_v4 = vld [vmem:[%s6746_s9] sm:$0x3] }
 0xe06   :  { %v4251_v24 = vrot.slane %v4246_v4, %v6292_v58  ;;  %v4255_v25 = vrot.slane %v4246_v4, %v4254_v51  ;;  %v4814_v58 = vld [vmem:[%s6748_s11] ss:$0 sm:$0xff] }
 0xe07   :  { %v4203_v62 = vsub.f32 %v4199_v61, %v4201_v60 }
 0xe08   :  { %v4198_v2 = vpop.xlane.xlu0 %4197 }
 0xe09   :  { %v4207_v5 = vadd.f32 1e-06, %v4203_v62  ;;  %v4200_v6 = vmul.f32 0.0078125, %v4198_v2 }
 0xe0b   :  { %5703 = vrsqrt.f32 %v4207_v5  ;;  %v4204_v46 = vsub.f32 %v4200_v6, %v4202_v3 }
 0xe0d   :  { %v4208_v63 = vadd.f32 1e-06, %v4204_v46 }
 0xe0f   :  { %5705 = vrsqrt.f32 %v4208_v63 }
 0xe15   :  { %v5704_v9 = vpop.eup %5703 }
 0xe16   :  { %v4211_v10 = vmul.f32 %v5704_v9, %v4205_v7 }
 0xe18   :  { %v4219_v17 = vmul.f32 %v4796_v11, %v4211_v10 }
 0xe19   :  { %v5706_v14 = vpop.eup %5705 }
 0xe1a   :  { %v4212_v16 = vmul.f32 %v5706_v14, %v4206_v12  ;;  %v4227_v0 = vadd.f32 %v4797_v1, %v4219_v17 }
 0xe1c   :  { %v4220_v18 = vmul.f32 %v4796_v11, %v4212_v16 }
 0xe1e   :  { %v4228_v19 = vadd.f32 %v4797_v1, %v4220_v18 }
 0xe20   :  { %v4229_v20 = vpack.c.bf16 %v4228_v19, %v4227_v0 }
 0xe22   :  { %4371 = vmatmul.mubr.bf16.vlgmr.msra.gmra.mrb[64].mxu1 %v4229_v20 }
 0xef5   :  { %v4372_v26 = vpop.f32.mrb[64].mxu1 }
 0xef6   :  { %v4373_v48 = vadd.f32 %v4372_v26, %v4251_v24  ;;  %v4374_v27 = vpop.f32.mrb[65].mxu1 }
 0xef7   :  { %v4375_v49 = vadd.f32 %v4374_v27, %v4255_v25  ;;  %v4376_v28 = vpop.f32.mrb[66].mxu1 }
 0xef8   :  { %v4377_v29 = vadd.f32 %v4376_v28, %v4251_v24  ;;  %v4378_v30 = vpop.f32.mrb[67].mxu1  ;;  %v4381_v32 = vmax.f32 %v4373_v48, 0.0 }
 0xef9   :  { %v4379_v31 = vadd.f32 %v4378_v30, %v4255_v25  ;;  %v4382_v33 = vmax.f32 %v4375_v49, 0.0 }
 0xefa   :  { %v4383_v13 = vmax.f32 %v4377_v29, 0.0 }
 0xefb   :  { %v4384_v34 = vmax.f32 %v4379_v31, 0.0 }
 0xefc   :  { %v4385_v35 = vpack.c.bf16 %v4383_v13, %v4381_v32 }
 0xefd   :  { %v4386_v36 = vpack.c.bf16 %v4384_v34, %v4382_v33 }
 0xeff   :  { %4554 = vmatprep.mubr.bf16.mxu0 %v4386_v36 }
 0xf00   :  { %4555 = vmatmul.mubr.bf16.vlgmr.msra.gmra.mrb[56].mxu0 %v4385_v35 }
 0xfd3   :  { %v5011_v56 = vpop.f32.mrb[56].mxu0 }
 0xfd4   :  { %v5012_v37 = vpop.f32.mrb[57].mxu0 }
 0xfd5   :  { %v5013_v38 = vadd.f32 %v5012_v37, %v5011_v56  ;;  %v5014_v40 = vpop.f32.mrb[58].mxu0 }
 0xfd6   :  { %v5015_v41 = vpop.f32.mrb[59].mxu0 }
 0xfd7   :  { %v4557_v42 = vadd.f32 %v5013_v38, %v4814_v58  ;;  %v5016_v21 = vadd.f32 %v5015_v41, %v5014_v40 }
 0xfd9   :  { %v4560_v43 = vadd.f32 %v5016_v21, %v4814_v58  ;;  %v4563_v44 = vadd.f32 %v4557_v42, %v4227_v0 }
 0xfdb   :  { %4569 = vadd.xlane.f32.xlu1 %v4563_v44  ;;  %v4564_v47 = vadd.f32 %v4560_v43, %v4228_v19  ;;  %v4575_v50 = vmul.f32 %v4563_v44, %v4563_v44 }
 0xfdd   :  { %4571 = vadd.xlane.f32.xlu0 %v4564_v47  ;;  %v4576_v52 = vmul.f32 %v4564_v47, %v4564_v47 }
 0xfdf   :  { %4577 = vadd.xlane.f32.xlu1 %v4575_v50 }
 0xfe1   :  { %4579 = vadd.xlane.f32.xlu0 %v4576_v52 }
 0xfe2   :  { %5900 = shalt.err (!%p5897_p12)
}
 0xfe3   :  { %s5901_s5 = scalar_lea.hbm %s6752_s15, 1024 }
 0xfe4   :  { %p5902_p13 = scmp.ne.s32.totalorder %s6752_s15, %s5901_s5  ;;  %p5905_p0 = scmp.lt.u32.totalorder %s5901_s5, %s6752_s15 }
 0xfe6   :  { %p5907_p1 = pnand %p5905_p0, %p5902_p13 }
 0xfe8   :  { %5910 = shalt.err (!%p5907_p1)
}
 0xfe9   :  { %4636 = dma.vmem_to_hbm [thread:$0]  %s4631_s4, 1024, %s6752_s15, [#allocation18], %s6762_s20, %s6762_s20, %s6761_s6  }
 0xfea   :  { %v4833_v9 = vld [vmem:[%s6749_s12 + $0x2] ss:$0 sm:$0xff]  ;;  %s5968_s1 = smov [#allocation16]  }
 0xfeb   :  { %v4834_v14 = vld [vmem:[%s6750_s13 + $0x2] ss:$0 sm:$0xff]  ;;  %s4618_s27 = sshll.u32 %s5968_s1, 4  ;;  %s4619_s27 = int_to_ptr.vmem [resolvable:$true] %s4618_s27 }
 0xfec   :  { %s5911_s7 = scalar_lea.vmem %s4619_s27, 256  ;;  %p5916_p3 = scmp.lt.s32.totalorder %s4619_s27, %s4619_s27 }
 0xfed   :  { %p5912_p2 = scmp.ne.s32.totalorder %s4619_s27, %s5911_s7  ;;  %p5917_p4 = scmp.lt.s32.totalorder %s5911_s7, %s5911_s7 }
 0xfef   :  { %p5918_p5 = por %p5917_p4, %p5916_p3 }
 0xff1   :  { %p5919_p6 = pnand %p5918_p5, %p5912_p2 }
0x1068   :  { %v4570_v53 = vpop.xlane.xlu1 %4569 }
0x1069   :  { %v4573_v54 = vmul.f32 0.0078125, %v4570_v53 }
0x106a   :  { %v4572_v39 = vpop.xlane.xlu0 %4571 }
0x106b   :  { %v4574_v55 = vmul.f32 0.0078125, %v4572_v39  ;;  %v4583_v60 = vmul.f32 %v4573_v54, %v4573_v54  ;;  %v4587_v63 = vsub.f32 %v4563_v44, %v4573_v54 }
0x106c   :  { %v4578_v57 = vpop.xlane.xlu1 %4577 }
0x106d   :  { %v4581_v59 = vmul.f32 0.0078125, %v4578_v57  ;;  %v4584_v62 = vmul.f32 %v4574_v55, %v4574_v55  ;;  %v4588_v10 = vsub.f32 %v4564_v47, %v4574_v55 }
0x106e   :  { %v4580_v61 = vpop.xlane.xlu0 %4579 }
0x106f   :  { %v4585_v2 = vsub.f32 %v4581_v59, %v4583_v60  ;;  %v4582_v3 = vmul.f32 0.0078125, %v4580_v61 }
0x1071   :  { %v4589_v5 = vadd.f32 1e-06, %v4585_v2  ;;  %v4586_v6 = vsub.f32 %v4582_v3, %v4584_v62 }
0x1073   :  { %5707 = vrsqrt.f32 %v4589_v5  ;;  %v4590_v46 = vadd.f32 1e-06, %v4586_v6 }
0x1075   :  { %5709 = vrsqrt.f32 %v4590_v46 }
0x107d   :  { %v5708_v7 = vpop.eup %5707 }
0x107e   :  { %v4593_v11 = vmul.f32 %v5708_v7, %v4587_v63 }
0x107f   :  { %v5710_v12 = vpop.eup %5709 }
0x1080   :  { %v4594_v16 = vmul.f32 %v5710_v12, %v4588_v10  ;;  %v4601_v17 = vmul.f32 %v4833_v9, %v4593_v11 }
0x1082   :  { %v4602_v1 = vmul.f32 %v4833_v9, %v4594_v16  ;;  %v4609_v18 = vadd.f32 %v4834_v14, %v4601_v17 }
0x1084   :  { %v4610_v0 = vadd.f32 %v4834_v14, %v4602_v1  ;;  %4611 = vst [vmem:[#allocation16] sm:$0xff] %v4609_v18 }
0x1086   :  { %4612 = vst [vmem:[#allocation16 + $0x8] sm:$0xff] %v4610_v0 }
0x1087   :  { %5922 = shalt.err (!%p5919_p6)
}
0x1088   :  { %s5923_s13 = scalar_lea.hbm %s6751_s14, 256 }
0x1089   :  { %p5924_p7 = scmp.ne.s32.totalorder %s6751_s14, %s5923_s13  ;;  %p5927_p8 = scmp.lt.u32.totalorder %s5923_s13, %s6751_s14 }
0x108b   :  { %p5929_p9 = pnand %p5927_p8, %p5924_p7 }
0x108d   :  { %5932 = shalt.err (!%p5929_p9)
}
0x108e   :  { %4624 = dma.vmem_to_hbm [thread:$0]  %s4619_s27, 256, %s6751_s14, [#allocation4], %s6762_s20, %s6762_s20, %s6761_s6  }
0x108f   :  { %5943 = dma.done.wait [#allocation4], 256  }
0x1090   :  { %5944 = vsyncadd [#allocation4], 4294967040 }
0x1091   :  { %5945 = dma.done.wait [#allocation18], 1024  }
0x1092   :  { %5946 = vsyncadd [#allocation18], 4294966272 }
0x1093   :  { %4643 = vsyncpa [#allocation3], 1 }
0x1094   :  { %4644 = vsyncpa [#allocation6], 1 }
0x1095   :  { %4645 = vsyncpa [#allocation9], 1 }
0x1096   :  { %4646 = vsyncpa [#allocation12], 1 }
0x1097   :  { %4647 = vsyncpa [#allocation15], 1 }
0x1098   :  { %4648 = vsyncpa [#allocation4], 1 }
0x1099   :  { %4649 = vsyncpa [#allocation18], 1 }

</bundles_post_ra>
